<compile_context>
chip_gen: v5e
topology: v5e:2x2
jax: 0.10.0
libtpu: 0.0.40
codegen_flags: <defaults>
</compile_context>

<pallas_src>
import functools
import math

import jax
import jax.numpy as jnp
from jax.experimental import pallas as pl
from jax.experimental.pallas import tpu as pltpu

_LN_EPS = 1e-5
_INV_SQRT2 = 1.0 / math.sqrt(2.0)


# ---------------------------------------------------------------------------
# Fused kernel: LN1 -> GELU -> conv1 -> LN2 -> GELU -> conv2 -> + residual
# ---------------------------------------------------------------------------
def _cnn_block_kernel(x_ref, red_ref, bca_ref, m_ref,
                      g1_ref, be1_ref, g2_ref, be2_ref,
                      w1_ref, cb1_ref, w2_ref, cb2_ref,
                      o_ref, *, k, H, W, TB, mxu_dtype):
    C = x_ref.shape[1]
    Cout = o_ref.shape[1]
    HW = H * W
    L = TB * HW
    p = k // 2
    pad = p * W + p
    inv_h = jnp.float32(1.0 / H)

    # --- lane-fuse the TB batch elements of this grid step: (TB,C,HW) -> (C, TB*HW)
    if TB == 1:
        x = x_ref[0].astype(jnp.float32)
    else:
        x = jnp.concatenate([x_ref[t].astype(jnp.float32) for t in range(TB)],
                            axis=1)

    red = red_ref[...]            # (L, TB*W)  hoisted 0/1 reduce-over-num_feats
    bca = bca_ref[...]            # (TB*W, L)  hoisted broadcast-back matrix

    def layer_norm(z, g, b):
        # mean and E[z^2] are two independent depth-2 MXU chains;
        # var = E[z^2] - mean^2 (mild cancellation risk, fine for activations).
        zr = jnp.dot(z, red, preferred_element_type=jnp.float32) * inv_h
        z2r = jnp.dot(z * z, red, preferred_element_type=jnp.float32) * inv_h
        mean = jnp.dot(zr, bca, preferred_element_type=jnp.float32)
        ex2 = jnp.dot(z2r, bca, preferred_element_type=jnp.float32)
        var = ex2 - mean * mean
        return (z - mean) * jax.lax.rsqrt(var + _LN_EPS) * g + b

    def gelu(z):                  # exact (erf) GELU == PyTorch F.gelu default
        return 0.5 * z * (1.0 + jax.lax.erf(z * _INV_SQRT2))

    def conv(a_f32, w_ref, cb_ref):
        # Conv2d(k, stride=1, padding=k//2) on the flattened (Cchan, L) layout:
        # k*k statically shifted views of a zero-extended copy, each multiplied
        # by a hoisted 0/1 boundary mask (zeros wrapped / out-of-image /
        # cross-batch lanes) and contracted on the MXU into one f32 accumulator.
        cch = a_f32.shape[0]
        zp = jnp.zeros((cch, pad), jnp.float32)
        a_wide = jnp.concatenate([zp, a_f32, zp], axis=1)      # (Cchan, L + 2*pad)
        acc = jnp.broadcast_to(cb_ref[...].astype(jnp.float32), (Cout, L))
        for dy in range(k):
            for dx in range(k):
                tap = dy * k + dx
                s = (dy - p) * W + (dx - p)
                view = a_wide[:, pad + s: pad + s + L]         # (Cchan, L)
                if not (dy == p and dx == p):                  # center tap: no mask
                    view = view * m_ref[tap]                   # (1, L) broadcast
                acc = acc + jnp.dot(w_ref[tap].astype(mxu_dtype),
                                    view.astype(mxu_dtype),
                                    preferred_element_type=jnp.float32)
        return acc

    y = conv(gelu(layer_norm(x, g1_ref[...], be1_ref[...])), w1_ref, cb1_ref)
    y = conv(gelu(layer_norm(y, g2_ref[...], be2_ref[...])), w2_ref, cb2_ref)
    y = y + x                                                   # residual (Cin == Cout)

    out = y.astype(o_ref.dtype)
    if TB == 1:
        o_ref[0] = out
    else:
        for t in range(TB):                                     # lane-aligned splits
            o_ref[t] = out[:, t * HW:(t + 1) * HW]


# ---------------------------------------------------------------------------
# Host wrapper
# ---------------------------------------------------------------------------
def _pick_batch_tile(B, HW):
    """Largest divisor of B whose fused lane width stays modest (<= 2048)."""
    tb = 1
    for cand in range(1, B + 1):
        if B % cand == 0 and cand * HW <= 2048:
            tb = cand
    return tb


def cnn_forward(x, params, kernel, *, mxu_bf16=False):
    """Forward pass of the PyTorch `CNN` block (dropout = identity / eval mode)."""
    B, C, H, W = x.shape
    k = kernel
    HW = H * W
    Cout = params["w1"].shape[0]
    assert params["w1"].shape[1] == C
    assert params["w2"].shape == (Cout, Cout, k, k)
    assert Cout == C, "residual add requires out_channels == in_channels"

    TB = _pick_batch_tile(B, HW)
    L = TB * HW
    p = k // 2
    f32 = jnp.float32

    # Per-column (t, h, w) coordinates of the lane-fused layout col = t*HW + h*W + w.
    cols = jnp.arange(L, dtype=jnp.int32)
    h_of = (cols % HW) // W
    w_of = cols % W
    grp = (cols // HW) * W + w_of                       # LayerNorm group id (t, w)

    # Hoisted LayerNorm reduce / broadcast 0/1 matrices.
    red = (grp[:, None] == jnp.arange(TB * W, dtype=jnp.int32)[None, :]).astype(f32)
    bca = red.T

    # Hoisted per-tap conv boundary masks.
    masks = []
    for dy in range(k):
        for dx in range(k):
            oy, ox = dy - p, dx - p
            ok = ((h_of + oy >= 0) & (h_of + oy < H) &
                  (w_of + ox >= 0) & (w_of + ox < W))
            masks.append(ok)
    tap_mask = jnp.stack(masks).astype(f32).reshape(k * k, 1, L)

    def ln_vec(v):                                      # (num_feats,) -> (1, L)
        return v.astype(f32)[h_of].reshape(1, L)

    def conv_taps(w):                                   # (Co,Ci,k,k) -> (k*k,Co,Ci)
        return jnp.transpose(w, (2, 3, 0, 1)).reshape(k * k, w.shape[0], w.shape[1])

    mxu_dtype = jnp.bfloat16 if (mxu_bf16 and x.dtype == jnp.float32) else x.dtype

    x_flat = x.reshape(B, C, HW)                        # free (contiguous), no transpose
    grid = (B // TB,)
    act_map = lambda i: (i, 0, 0)                       # one batch tile per grid step
    c2 = lambda i: (0, 0)                               # constants: DMA'd once
    c3 = lambda i: (0, 0, 0)

    kernel_fn = functools.partial(_cnn_block_kernel, k=k, H=H, W=W, TB=TB,
                                  mxu_dtype=mxu_dtype)

    out_flat = pl.pallas_call(
        kernel_fn,
        out_shape=jax.ShapeDtypeStruct((B, Cout, HW), x.dtype),
        grid=grid,
        in_specs=[
            pl.BlockSpec((TB, C, HW), act_map),          # x (LN1 input + residual)
            pl.BlockSpec((L, TB * W), c2),               # LN reduce matrix
            pl.BlockSpec((TB * W, L), c2),               # LN broadcast matrix
            pl.BlockSpec((k * k, 1, L), c3),             # conv boundary masks
            pl.BlockSpec((1, L), c2),                    # ln1 gamma (time-broadcast)
            pl.BlockSpec((1, L), c2),                    # ln1 beta
            pl.BlockSpec((1, L), c2),                    # ln2 gamma
            pl.BlockSpec((1, L), c2),                    # ln2 beta
            pl.BlockSpec((k * k, Cout, C), c3),          # conv1 weight taps
            pl.BlockSpec((Cout, 1), c2),                 # conv1 bias
            pl.BlockSpec((k * k, Cout, Cout), c3),       # conv2 weight taps
            pl.BlockSpec((Cout, 1), c2),                 # conv2 bias
        ],
        out_specs=pl.BlockSpec((TB, Cout, HW), act_map),
        compiler_params=pltpu.CompilerParams(
            dimension_semantics=("parallel",),           # shards over 2 TCs on v7x
            vmem_limit_bytes=32 * 1024 * 1024),          # small footprint; safe on 64 MiB v7x
    )(x_flat, red, bca, tap_mask,
      ln_vec(params["ln1_g"]), ln_vec(params["ln1_b"]),
      ln_vec(params["ln2_g"]), ln_vec(params["ln2_b"]),
      conv_taps(params["w1"]).astype(mxu_dtype), params["b1"].astype(f32).reshape(-1, 1),
      conv_taps(params["w2"]).astype(mxu_dtype), params["b2"].astype(f32).reshape(-1, 1))

    return out_flat.reshape(B, Cout, H, W)


# ---------------------------------------------------------------------------
# Pure-JAX reference (for correctness check)
# ---------------------------------------------------------------------------
def _ref_ln_gelu(x, g, b):
    xt = jnp.swapaxes(x, 2, 3)
    mean = jnp.mean(xt, axis=-1, keepdims=True)
    var = jnp.mean(jnp.square(xt - mean), axis=-1, keepdims=True)
    y = (xt - mean) / jnp.sqrt(var + _LN_EPS) * g + b
    y = 0.5 * y * (1.0 + jax.lax.erf(y / jnp.sqrt(2.0)))
    return jnp.swapaxes(y, 2, 3)


def _ref_conv(x, w, b, k):
    out = jax.lax.conv_general_dilated(
        x, w, window_strides=(1, 1), padding=[(k // 2, k // 2)] * 2,
        dimension_numbers=("NCHW", "OIHW", "NCHW"))
    return out + b.reshape(1, -1, 1, 1)


def _ref_forward(x, params, k):
    residual = x
    x = _ref_ln_gelu(x, params["ln1_g"], params["ln1_b"])
    x = _ref_conv(x, params["w1"], params["b1"], k)
    x = _ref_ln_gelu(x, params["ln2_g"], params["ln2_b"])
    x = _ref_conv(x, params["w2"], params["b2"], k)
    return x + residual


# ---------------------------------------------------------------------------
if __name__ == "__main__":
    B, Cin, Cout = 2, 4, 4          # residual requires Cin == Cout
    num_feats, time_len = 16, 16    # x: (B, C, num_feats, time)
    kernel, stride = 3, 1           # residual requires stride == 1
    dtype = jnp.float32

    key = jax.random.PRNGKey(0)
    kx, kw1, kb1, kw2, kb2, kg1, kbt1, kg2, kbt2 = jax.random.split(key, 9)

    x = jax.random.normal(kx, (B, Cin, num_feats, time_len), dtype)

    fan1 = Cin * kernel * kernel
    fan2 = Cout * kernel * kernel
    params = {
        "ln1_g": 1.0 + 0.1 * jax.random.normal(kg1, (num_feats,), dtype),
        "ln1_b": 0.1 * jax.random.normal(kbt1, (num_feats,), dtype),
        "ln2_g": 1.0 + 0.1 * jax.random.normal(kg2, (num_feats,), dtype),
        "ln2_b": 0.1 * jax.random.normal(kbt2, (num_feats,), dtype),
        "w1": jax.random.normal(kw1, (Cout, Cin, kernel, kernel), dtype) / math.sqrt(fan1),
        "b1": jax.random.normal(kb1, (Cout,), dtype) * 0.01,
        "w2": jax.random.normal(kw2, (Cout, Cout, kernel, kernel), dtype) / math.sqrt(fan2),
        "b2": jax.random.normal(kb2, (Cout,), dtype) * 0.01,
    }

    fwd = jax.jit(functools.partial(cnn_forward, kernel=kernel))
    out = jax.block_until_ready(fwd(x, params))
    ref = jax.block_until_ready(_ref_forward(x, params, kernel))

    assert out.shape == (B, Cout, num_feats, time_len)
    assert jnp.allclose(out, ref, rtol=1e-4, atol=1e-4), "mismatch vs reference"

    print("KERNEL_OK")
</pallas_src>

<mosaic_0001>
module attributes {stable_mosaic.version = 11 : i64} {
  func.func @_cnn_block_kernel(%arg0: i32, %arg1: memref<2x4x256xf32, #tpu.memory_space<vmem>>, %arg2: memref<512x32xf32, #tpu.memory_space<vmem>>, %arg3: memref<32x512xf32, #tpu.memory_space<vmem>>, %arg4: memref<9x1x512xf32, #tpu.memory_space<vmem>>, %arg5: memref<1x512xf32, #tpu.memory_space<vmem>>, %arg6: memref<1x512xf32, #tpu.memory_space<vmem>>, %arg7: memref<1x512xf32, #tpu.memory_space<vmem>>, %arg8: memref<1x512xf32, #tpu.memory_space<vmem>>, %arg9: memref<9x4x4xf32, #tpu.memory_space<vmem>>, %arg10: memref<4x1xf32, #tpu.memory_space<vmem>>, %arg11: memref<9x4x4xf32, #tpu.memory_space<vmem>>, %arg12: memref<4x1xf32, #tpu.memory_space<vmem>>, %arg13: memref<2x4x256xf32, #tpu.memory_space<vmem>>) attributes {dimension_semantics = [#tpu.dimension_semantics<parallel>], iteration_bounds = array<i64: 1>, scalar_prefetch = 0 : i64, scratch_operands = 0 : i64, tpu.core_type = #tpu.core_type<tc>, window_params = [{transform_indices = @transform_0, window_bounds = array<i64: 2, 4, 256>}, {pipeline_mode = #tpu.pipeline_mode<synchronous>, transform_indices = @transform_1, window_bounds = array<i64: 512, 32>}, {pipeline_mode = #tpu.pipeline_mode<synchronous>, transform_indices = @transform_2, window_bounds = array<i64: 32, 512>}, {pipeline_mode = #tpu.pipeline_mode<synchronous>, transform_indices = @transform_3, window_bounds = array<i64: 9, 1, 512>}, {pipeline_mode = #tpu.pipeline_mode<synchronous>, transform_indices = @transform_4, window_bounds = array<i64: 1, 512>}, {pipeline_mode = #tpu.pipeline_mode<synchronous>, transform_indices = @transform_5, window_bounds = array<i64: 1, 512>}, {pipeline_mode = #tpu.pipeline_mode<synchronous>, transform_indices = @transform_6, window_bounds = array<i64: 1, 512>}, {pipeline_mode = #tpu.pipeline_mode<synchronous>, transform_indices = @transform_7, window_bounds = array<i64: 1, 512>}, {pipeline_mode = #tpu.pipeline_mode<synchronous>, transform_indices = @transform_8, window_bounds = array<i64: 9, 4, 4>}, {pipeline_mode = #tpu.pipeline_mode<synchronous>, transform_indices = @transform_9, window_bounds = array<i64: 4, 1>}, {pipeline_mode = #tpu.pipeline_mode<synchronous>, transform_indices = @transform_10, window_bounds = array<i64: 9, 4, 4>}, {pipeline_mode = #tpu.pipeline_mode<synchronous>, transform_indices = @transform_11, window_bounds = array<i64: 4, 1>}, {transform_indices = @transform_12, window_bounds = array<i64: 2, 4, 256>}]} {
    %c0 = arith.constant 0 : index
    %c0_0 = arith.constant 0 : index
    %c0_1 = arith.constant 0 : index
    %0 = vector.load %arg1[%c0, %c0_0, %c0_1] : memref<2x4x256xf32, #tpu.memory_space<vmem>>, vector<1x4x256xf32>
    %1 = vector.shape_cast %0 : vector<1x4x256xf32> to vector<4x256xf32>
    %c1 = arith.constant 1 : index
    %c0_2 = arith.constant 0 : index
    %c0_3 = arith.constant 0 : index
    %2 = vector.load %arg1[%c1, %c0_2, %c0_3] : memref<2x4x256xf32, #tpu.memory_space<vmem>>, vector<1x4x256xf32>
    %3 = vector.shape_cast %2 : vector<1x4x256xf32> to vector<4x256xf32>
    %4 = tpu.concatenate %1, %3 in 1 : vector<4x256xf32>, vector<4x256xf32> -> vector<4x512xf32>
    %c0_4 = arith.constant 0 : index
    %c0_5 = arith.constant 0 : index
    %5 = vector.load %arg2[%c0_4, %c0_5] : memref<512x32xf32, #tpu.memory_space<vmem>>, vector<512x32xf32>
    %c0_6 = arith.constant 0 : index
    %c0_7 = arith.constant 0 : index
    %6 = vector.load %arg3[%c0_6, %c0_7] : memref<32x512xf32, #tpu.memory_space<vmem>>, vector<32x512xf32>
    %c0_8 = arith.constant 0 : index
    %c0_9 = arith.constant 0 : index
    %7 = vector.load %arg5[%c0_8, %c0_9] : memref<1x512xf32, #tpu.memory_space<vmem>>, vector<1x512xf32>
    %c0_10 = arith.constant 0 : index
    %c0_11 = arith.constant 0 : index
    %8 = vector.load %arg6[%c0_10, %c0_11] : memref<1x512xf32, #tpu.memory_space<vmem>>, vector<1x512xf32>
    %cst = arith.constant dense<0.000000e+00> : vector<4x32xf32>
    %9 = tpu.matmul %4, %5, %cst {dimension_numbers = #tpu.dot_dimension_numbers<[1], [0], [0], [1], [0, 0, 1, 1], [], []>} : vector<4x512xf32>, vector<512x32xf32>, vector<4x32xf32> -> vector<4x32xf32>
    %cst_12 = arith.constant 6.250000e-02 : f32
    %10 = vector.broadcast %cst_12 : f32 to vector<4x32xf32>
    %11 = arith.mulf %9, %10 : vector<4x32xf32>
    %12 = arith.mulf %4, %4 : vector<4x512xf32>
    %cst_13 = arith.constant dense<0.000000e+00> : vector<4x32xf32>
    %13 = tpu.matmul %12, %5, %cst_13 {dimension_numbers = #tpu.dot_dimension_numbers<[1], [0], [0], [1], [0, 0, 1, 1], [], []>} : vector<4x512xf32>, vector<512x32xf32>, vector<4x32xf32> -> vector<4x32xf32>
    %cst_14 = arith.constant 6.250000e-02 : f32
    %14 = vector.broadcast %cst_14 : f32 to vector<4x32xf32>
    %15 = arith.mulf %13, %14 : vector<4x32xf32>
    %cst_15 = arith.constant dense<0.000000e+00> : vector<4x512xf32>
    %16 = tpu.matmul %11, %6, %cst_15 {dimension_numbers = #tpu.dot_dimension_numbers<[1], [0], [0], [1], [0, 0, 1, 1], [], []>} : vector<4x32xf32>, vector<32x512xf32>, vector<4x512xf32> -> vector<4x512xf32>
    %cst_16 = arith.constant dense<0.000000e+00> : vector<4x512xf32>
    %17 = tpu.matmul %15, %6, %cst_16 {dimension_numbers = #tpu.dot_dimension_numbers<[1], [0], [0], [1], [0, 0, 1, 1], [], []>} : vector<4x32xf32>, vector<32x512xf32>, vector<4x512xf32> -> vector<4x512xf32>
    %18 = arith.mulf %16, %16 : vector<4x512xf32>
    %19 = arith.subf %17, %18 : vector<4x512xf32>
    %20 = arith.subf %4, %16 : vector<4x512xf32>
    %cst_17 = arith.constant 9.99999974E-6 : f32
    %21 = vector.broadcast %cst_17 : f32 to vector<4x512xf32>
    %22 = arith.addf %19, %21 : vector<4x512xf32>
    %23 = math.rsqrt %22 : vector<4x512xf32>
    %24 = arith.mulf %20, %23 : vector<4x512xf32>
    %25 = vector.broadcast %7 : vector<1x512xf32> to vector<4x512xf32>
    %26 = arith.mulf %24, %25 : vector<4x512xf32>
    %27 = vector.broadcast %8 : vector<1x512xf32> to vector<4x512xf32>
    %28 = arith.addf %26, %27 : vector<4x512xf32>
    %cst_18 = arith.constant 5.000000e-01 : f32
    %29 = vector.broadcast %cst_18 : f32 to vector<4x512xf32>
    %30 = arith.mulf %29, %28 : vector<4x512xf32>
    %cst_19 = arith.constant 0.707106769 : f32
    %31 = vector.broadcast %cst_19 : f32 to vector<4x512xf32>
    %32 = arith.mulf %28, %31 : vector<4x512xf32>
    %33 = math.erf %32 : vector<4x512xf32>
    %cst_20 = arith.constant 1.000000e+00 : f32
    %34 = vector.broadcast %cst_20 : f32 to vector<4x512xf32>
    %35 = arith.addf %34, %33 : vector<4x512xf32>
    %36 = arith.mulf %30, %35 : vector<4x512xf32>
    %cst_21 = arith.constant 0.000000e+00 : f32
    %37 = vector.broadcast %cst_21 : f32 to vector<4x17xf32>
    %38 = tpu.concatenate %37, %36, %37 in 1 : vector<4x17xf32>, vector<4x512xf32>, vector<4x17xf32> -> vector<4x546xf32>
    %c0_22 = arith.constant 0 : index
    %c0_23 = arith.constant 0 : index
    %39 = vector.load %arg10[%c0_22, %c0_23] : memref<4x1xf32, #tpu.memory_space<vmem>>, vector<4x1xf32>
    %40 = vector.shape_cast %39 : vector<4x1xf32> to vector<4x1xf32>
    %41 = vector.broadcast %40 : vector<4x1xf32> to vector<4x512xf32>
    %42 = vector.extract_strided_slice %38 {offsets = [0, 0], sizes = [4, 512], strides = [1, 1]} : vector<4x546xf32> to vector<4x512xf32>
    %c0_24 = arith.constant 0 : index
    %c0_25 = arith.constant 0 : index
    %c0_26 = arith.constant 0 : index
    %43 = vector.load %arg4[%c0_24, %c0_25, %c0_26] : memref<9x1x512xf32, #tpu.memory_space<vmem>>, vector<1x1x512xf32>
    %44 = vector.shape_cast %43 : vector<1x1x512xf32> to vector<1x512xf32>
    %45 = vector.broadcast %44 : vector<1x512xf32> to vector<4x512xf32>
    %46 = arith.mulf %42, %45 : vector<4x512xf32>
    %c0_27 = arith.constant 0 : index
    %c0_28 = arith.constant 0 : index
    %c0_29 = arith.constant 0 : index
    %47 = vector.load %arg9[%c0_27, %c0_28, %c0_29] : memref<9x4x4xf32, #tpu.memory_space<vmem>>, vector<1x4x4xf32>
    %48 = vector.shape_cast %47 : vector<1x4x4xf32> to vector<4x4xf32>
    %cst_30 = arith.constant dense<0.000000e+00> : vector<4x512xf32>
    %49 = tpu.matmul %48, %46, %cst_30 {dimension_numbers = #tpu.dot_dimension_numbers<[1], [0], [0], [1], [0, 0, 1, 1], [], []>} : vector<4x4xf32>, vector<4x512xf32>, vector<4x512xf32> -> vector<4x512xf32>
    %50 = arith.addf %41, %49 : vector<4x512xf32>
    %51 = vector.extract_strided_slice %38 {offsets = [0, 1], sizes = [4, 512], strides = [1, 1]} : vector<4x546xf32> to vector<4x512xf32>
    %c1_31 = arith.constant 1 : index
    %c0_32 = arith.constant 0 : index
    %c0_33 = arith.constant 0 : index
    %52 = vector.load %arg4[%c1_31, %c0_32, %c0_33] : memref<9x1x512xf32, #tpu.memory_space<vmem>>, vector<1x1x512xf32>
    %53 = vector.shape_cast %52 : vector<1x1x512xf32> to vector<1x512xf32>
    %54 = vector.broadcast %53 : vector<1x512xf32> to vector<4x512xf32>
    %55 = arith.mulf %51, %54 : vector<4x512xf32>
    %c1_34 = arith.constant 1 : index
    %c0_35 = arith.constant 0 : index
    %c0_36 = arith.constant 0 : index
    %56 = vector.load %arg9[%c1_34, %c0_35, %c0_36] : memref<9x4x4xf32, #tpu.memory_space<vmem>>, vector<1x4x4xf32>
    %57 = vector.shape_cast %56 : vector<1x4x4xf32> to vector<4x4xf32>
    %cst_37 = arith.constant dense<0.000000e+00> : vector<4x512xf32>
    %58 = tpu.matmul %57, %55, %cst_37 {dimension_numbers = #tpu.dot_dimension_numbers<[1], [0], [0], [1], [0, 0, 1, 1], [], []>} : vector<4x4xf32>, vector<4x512xf32>, vector<4x512xf32> -> vector<4x512xf32>
    %59 = arith.addf %50, %58 : vector<4x512xf32>
    %60 = vector.extract_strided_slice %38 {offsets = [0, 2], sizes = [4, 512], strides = [1, 1]} : vector<4x546xf32> to vector<4x512xf32>
    %c2 = arith.constant 2 : index
    %c0_38 = arith.constant 0 : index
    %c0_39 = arith.constant 0 : index
    %61 = vector.load %arg4[%c2, %c0_38, %c0_39] : memref<9x1x512xf32, #tpu.memory_space<vmem>>, vector<1x1x512xf32>
    %62 = vector.shape_cast %61 : vector<1x1x512xf32> to vector<1x512xf32>
    %63 = vector.broadcast %62 : vector<1x512xf32> to vector<4x512xf32>
    %64 = arith.mulf %60, %63 : vector<4x512xf32>
    %c2_40 = arith.constant 2 : index
    %c0_41 = arith.constant 0 : index
    %c0_42 = arith.constant 0 : index
    %65 = vector.load %arg9[%c2_40, %c0_41, %c0_42] : memref<9x4x4xf32, #tpu.memory_space<vmem>>, vector<1x4x4xf32>
    %66 = vector.shape_cast %65 : vector<1x4x4xf32> to vector<4x4xf32>
    %cst_43 = arith.constant dense<0.000000e+00> : vector<4x512xf32>
    %67 = tpu.matmul %66, %64, %cst_43 {dimension_numbers = #tpu.dot_dimension_numbers<[1], [0], [0], [1], [0, 0, 1, 1], [], []>} : vector<4x4xf32>, vector<4x512xf32>, vector<4x512xf32> -> vector<4x512xf32>
    %68 = arith.addf %59, %67 : vector<4x512xf32>
    %69 = vector.extract_strided_slice %38 {offsets = [0, 16], sizes = [4, 512], strides = [1, 1]} : vector<4x546xf32> to vector<4x512xf32>
    %c3 = arith.constant 3 : index
    %c0_44 = arith.constant 0 : index
    %c0_45 = arith.constant 0 : index
    %70 = vector.load %arg4[%c3, %c0_44, %c0_45] : memref<9x1x512xf32, #tpu.memory_space<vmem>>, vector<1x1x512xf32>
    %71 = vector.shape_cast %70 : vector<1x1x512xf32> to vector<1x512xf32>
    %72 = vector.broadcast %71 : vector<1x512xf32> to vector<4x512xf32>
    %73 = arith.mulf %69, %72 : vector<4x512xf32>
    %c3_46 = arith.constant 3 : index
    %c0_47 = arith.constant 0 : index
    %c0_48 = arith.constant 0 : index
    %74 = vector.load %arg9[%c3_46, %c0_47, %c0_48] : memref<9x4x4xf32, #tpu.memory_space<vmem>>, vector<1x4x4xf32>
    %75 = vector.shape_cast %74 : vector<1x4x4xf32> to vector<4x4xf32>
    %cst_49 = arith.constant dense<0.000000e+00> : vector<4x512xf32>
    %76 = tpu.matmul %75, %73, %cst_49 {dimension_numbers = #tpu.dot_dimension_numbers<[1], [0], [0], [1], [0, 0, 1, 1], [], []>} : vector<4x4xf32>, vector<4x512xf32>, vector<4x512xf32> -> vector<4x512xf32>
    %77 = arith.addf %68, %76 : vector<4x512xf32>
    %78 = vector.extract_strided_slice %38 {offsets = [0, 17], sizes = [4, 512], strides = [1, 1]} : vector<4x546xf32> to vector<4x512xf32>
    %c4 = arith.constant 4 : index
    %c0_50 = arith.constant 0 : index
    %c0_51 = arith.constant 0 : index
    %79 = vector.load %arg9[%c4, %c0_50, %c0_51] : memref<9x4x4xf32, #tpu.memory_space<vmem>>, vector<1x4x4xf32>
    %80 = vector.shape_cast %79 : vector<1x4x4xf32> to vector<4x4xf32>
    %cst_52 = arith.constant dense<0.000000e+00> : vector<4x512xf32>
    %81 = tpu.matmul %80, %78, %cst_52 {dimension_numbers = #tpu.dot_dimension_numbers<[1], [0], [0], [1], [0, 0, 1, 1], [], []>} : vector<4x4xf32>, vector<4x512xf32>, vector<4x512xf32> -> vector<4x512xf32>
    %82 = arith.addf %77, %81 : vector<4x512xf32>
    %83 = vector.extract_strided_slice %38 {offsets = [0, 18], sizes = [4, 512], strides = [1, 1]} : vector<4x546xf32> to vector<4x512xf32>
    %c5 = arith.constant 5 : index
    %c0_53 = arith.constant 0 : index
    %c0_54 = arith.constant 0 : index
    %84 = vector.load %arg4[%c5, %c0_53, %c0_54] : memref<9x1x512xf32, #tpu.memory_space<vmem>>, vector<1x1x512xf32>
    %85 = vector.shape_cast %84 : vector<1x1x512xf32> to vector<1x512xf32>
    %86 = vector.broadcast %85 : vector<1x512xf32> to vector<4x512xf32>
    %87 = arith.mulf %83, %86 : vector<4x512xf32>
    %c5_55 = arith.constant 5 : index
    %c0_56 = arith.constant 0 : index
    %c0_57 = arith.constant 0 : index
    %88 = vector.load %arg9[%c5_55, %c0_56, %c0_57] : memref<9x4x4xf32, #tpu.memory_space<vmem>>, vector<1x4x4xf32>
    %89 = vector.shape_cast %88 : vector<1x4x4xf32> to vector<4x4xf32>
    %cst_58 = arith.constant dense<0.000000e+00> : vector<4x512xf32>
    %90 = tpu.matmul %89, %87, %cst_58 {dimension_numbers = #tpu.dot_dimension_numbers<[1], [0], [0], [1], [0, 0, 1, 1], [], []>} : vector<4x4xf32>, vector<4x512xf32>, vector<4x512xf32> -> vector<4x512xf32>
    %91 = arith.addf %82, %90 : vector<4x512xf32>
    %92 = vector.extract_strided_slice %38 {offsets = [0, 32], sizes = [4, 512], strides = [1, 1]} : vector<4x546xf32> to vector<4x512xf32>
    %c6 = arith.constant 6 : index
    %c0_59 = arith.constant 0 : index
    %c0_60 = arith.constant 0 : index
    %93 = vector.load %arg4[%c6, %c0_59, %c0_60] : memref<9x1x512xf32, #tpu.memory_space<vmem>>, vector<1x1x512xf32>
    %94 = vector.shape_cast %93 : vector<1x1x512xf32> to vector<1x512xf32>
    %95 = vector.broadcast %94 : vector<1x512xf32> to vector<4x512xf32>
    %96 = arith.mulf %92, %95 : vector<4x512xf32>
    %c6_61 = arith.constant 6 : index
    %c0_62 = arith.constant 0 : index
    %c0_63 = arith.constant 0 : index
    %97 = vector.load %arg9[%c6_61, %c0_62, %c0_63] : memref<9x4x4xf32, #tpu.memory_space<vmem>>, vector<1x4x4xf32>
    %98 = vector.shape_cast %97 : vector<1x4x4xf32> to vector<4x4xf32>
    %cst_64 = arith.constant dense<0.000000e+00> : vector<4x512xf32>
    %99 = tpu.matmul %98, %96, %cst_64 {dimension_numbers = #tpu.dot_dimension_numbers<[1], [0], [0], [1], [0, 0, 1, 1], [], []>} : vector<4x4xf32>, vector<4x512xf32>, vector<4x512xf32> -> vector<4x512xf32>
    %100 = arith.addf %91, %99 : vector<4x512xf32>
    %101 = vector.extract_strided_slice %38 {offsets = [0, 33], sizes = [4, 512], strides = [1, 1]} : vector<4x546xf32> to vector<4x512xf32>
    %c7 = arith.constant 7 : index
    %c0_65 = arith.constant 0 : index
    %c0_66 = arith.constant 0 : index
    %102 = vector.load %arg4[%c7, %c0_65, %c0_66] : memref<9x1x512xf32, #tpu.memory_space<vmem>>, vector<1x1x512xf32>
    %103 = vector.shape_cast %102 : vector<1x1x512xf32> to vector<1x512xf32>
    %104 = vector.broadcast %103 : vector<1x512xf32> to vector<4x512xf32>
    %105 = arith.mulf %101, %104 : vector<4x512xf32>
    %c7_67 = arith.constant 7 : index
    %c0_68 = arith.constant 0 : index
    %c0_69 = arith.constant 0 : index
    %106 = vector.load %arg9[%c7_67, %c0_68, %c0_69] : memref<9x4x4xf32, #tpu.memory_space<vmem>>, vector<1x4x4xf32>
    %107 = vector.shape_cast %106 : vector<1x4x4xf32> to vector<4x4xf32>
    %cst_70 = arith.constant dense<0.000000e+00> : vector<4x512xf32>
    %108 = tpu.matmul %107, %105, %cst_70 {dimension_numbers = #tpu.dot_dimension_numbers<[1], [0], [0], [1], [0, 0, 1, 1], [], []>} : vector<4x4xf32>, vector<4x512xf32>, vector<4x512xf32> -> vector<4x512xf32>
    %109 = arith.addf %100, %108 : vector<4x512xf32>
    %110 = vector.extract_strided_slice %38 {offsets = [0, 34], sizes = [4, 512], strides = [1, 1]} : vector<4x546xf32> to vector<4x512xf32>
    %c8 = arith.constant 8 : index
    %c0_71 = arith.constant 0 : index
    %c0_72 = arith.constant 0 : index
    %111 = vector.load %arg4[%c8, %c0_71, %c0_72] : memref<9x1x512xf32, #tpu.memory_space<vmem>>, vector<1x1x512xf32>
    %112 = vector.shape_cast %111 : vector<1x1x512xf32> to vector<1x512xf32>
    %113 = vector.broadcast %112 : vector<1x512xf32> to vector<4x512xf32>
    %114 = arith.mulf %110, %113 : vector<4x512xf32>
    %c8_73 = arith.constant 8 : index
    %c0_74 = arith.constant 0 : index
    %c0_75 = arith.constant 0 : index
    %115 = vector.load %arg9[%c8_73, %c0_74, %c0_75] : memref<9x4x4xf32, #tpu.memory_space<vmem>>, vector<1x4x4xf32>
    %116 = vector.shape_cast %115 : vector<1x4x4xf32> to vector<4x4xf32>
    %cst_76 = arith.constant dense<0.000000e+00> : vector<4x512xf32>
    %117 = tpu.matmul %116, %114, %cst_76 {dimension_numbers = #tpu.dot_dimension_numbers<[1], [0], [0], [1], [0, 0, 1, 1], [], []>} : vector<4x4xf32>, vector<4x512xf32>, vector<4x512xf32> -> vector<4x512xf32>
    %118 = arith.addf %109, %117 : vector<4x512xf32>
    %c0_77 = arith.constant 0 : index
    %c0_78 = arith.constant 0 : index
    %119 = vector.load %arg7[%c0_77, %c0_78] : memref<1x512xf32, #tpu.memory_space<vmem>>, vector<1x512xf32>
    %c0_79 = arith.constant 0 : index
    %c0_80 = arith.constant 0 : index
    %120 = vector.load %arg8[%c0_79, %c0_80] : memref<1x512xf32, #tpu.memory_space<vmem>>, vector<1x512xf32>
    %cst_81 = arith.constant dense<0.000000e+00> : vector<4x32xf32>
    %121 = tpu.matmul %118, %5, %cst_81 {dimension_numbers = #tpu.dot_dimension_numbers<[1], [0], [0], [1], [0, 0, 1, 1], [], []>} : vector<4x512xf32>, vector<512x32xf32>, vector<4x32xf32> -> vector<4x32xf32>
    %cst_82 = arith.constant 6.250000e-02 : f32
    %122 = vector.broadcast %cst_82 : f32 to vector<4x32xf32>
    %123 = arith.mulf %121, %122 : vector<4x32xf32>
    %124 = arith.mulf %118, %118 : vector<4x512xf32>
    %cst_83 = arith.constant dense<0.000000e+00> : vector<4x32xf32>
    %125 = tpu.matmul %124, %5, %cst_83 {dimension_numbers = #tpu.dot_dimension_numbers<[1], [0], [0], [1], [0, 0, 1, 1], [], []>} : vector<4x512xf32>, vector<512x32xf32>, vector<4x32xf32> -> vector<4x32xf32>
    %cst_84 = arith.constant 6.250000e-02 : f32
    %126 = vector.broadcast %cst_84 : f32 to vector<4x32xf32>
    %127 = arith.mulf %125, %126 : vector<4x32xf32>
    %cst_85 = arith.constant dense<0.000000e+00> : vector<4x512xf32>
    %128 = tpu.matmul %123, %6, %cst_85 {dimension_numbers = #tpu.dot_dimension_numbers<[1], [0], [0], [1], [0, 0, 1, 1], [], []>} : vector<4x32xf32>, vector<32x512xf32>, vector<4x512xf32> -> vector<4x512xf32>
    %cst_86 = arith.constant dense<0.000000e+00> : vector<4x512xf32>
    %129 = tpu.matmul %127, %6, %cst_86 {dimension_numbers = #tpu.dot_dimension_numbers<[1], [0], [0], [1], [0, 0, 1, 1], [], []>} : vector<4x32xf32>, vector<32x512xf32>, vector<4x512xf32> -> vector<4x512xf32>
    %130 = arith.mulf %128, %128 : vector<4x512xf32>
    %131 = arith.subf %129, %130 : vector<4x512xf32>
    %132 = arith.subf %118, %128 : vector<4x512xf32>
    %cst_87 = arith.constant 9.99999974E-6 : f32
    %133 = vector.broadcast %cst_87 : f32 to vector<4x512xf32>
    %134 = arith.addf %131, %133 : vector<4x512xf32>
    %135 = math.rsqrt %134 : vector<4x512xf32>
    %136 = arith.mulf %132, %135 : vector<4x512xf32>
    %137 = vector.broadcast %119 : vector<1x512xf32> to vector<4x512xf32>
    %138 = arith.mulf %136, %137 : vector<4x512xf32>
    %139 = vector.broadcast %120 : vector<1x512xf32> to vector<4x512xf32>
    %140 = arith.addf %138, %139 : vector<4x512xf32>
    %cst_88 = arith.constant 5.000000e-01 : f32
    %141 = vector.broadcast %cst_88 : f32 to vector<4x512xf32>
    %142 = arith.mulf %141, %140 : vector<4x512xf32>
    %cst_89 = arith.constant 0.707106769 : f32
    %143 = vector.broadcast %cst_89 : f32 to vector<4x512xf32>
    %144 = arith.mulf %140, %143 : vector<4x512xf32>
    %145 = math.erf %144 : vector<4x512xf32>
    %cst_90 = arith.constant 1.000000e+00 : f32
    %146 = vector.broadcast %cst_90 : f32 to vector<4x512xf32>
    %147 = arith.addf %146, %145 : vector<4x512xf32>
    %148 = arith.mulf %142, %147 : vector<4x512xf32>
    %cst_91 = arith.constant 0.000000e+00 : f32
    %149 = vector.broadcast %cst_91 : f32 to vector<4x17xf32>
    %150 = tpu.concatenate %149, %148, %149 in 1 : vector<4x17xf32>, vector<4x512xf32>, vector<4x17xf32> -> vector<4x546xf32>
    %c0_92 = arith.constant 0 : index
    %c0_93 = arith.constant 0 : index
    %151 = vector.load %arg12[%c0_92, %c0_93] : memref<4x1xf32, #tpu.memory_space<vmem>>, vector<4x1xf32>
    %152 = vector.shape_cast %151 : vector<4x1xf32> to vector<4x1xf32>
    %153 = vector.broadcast %152 : vector<4x1xf32> to vector<4x512xf32>
    %154 = vector.extract_strided_slice %150 {offsets = [0, 0], sizes = [4, 512], strides = [1, 1]} : vector<4x546xf32> to vector<4x512xf32>
    %c0_94 = arith.constant 0 : index
    %c0_95 = arith.constant 0 : index
    %c0_96 = arith.constant 0 : index
    %155 = vector.load %arg4[%c0_94, %c0_95, %c0_96] : memref<9x1x512xf32, #tpu.memory_space<vmem>>, vector<1x1x512xf32>
    %156 = vector.shape_cast %155 : vector<1x1x512xf32> to vector<1x512xf32>
    %157 = vector.broadcast %156 : vector<1x512xf32> to vector<4x512xf32>
    %158 = arith.mulf %154, %157 : vector<4x512xf32>
    %c0_97 = arith.constant 0 : index
    %c0_98 = arith.constant 0 : index
    %c0_99 = arith.constant 0 : index
    %159 = vector.load %arg11[%c0_97, %c0_98, %c0_99] : memref<9x4x4xf32, #tpu.memory_space<vmem>>, vector<1x4x4xf32>
    %160 = vector.shape_cast %159 : vector<1x4x4xf32> to vector<4x4xf32>
    %cst_100 = arith.constant dense<0.000000e+00> : vector<4x512xf32>
    %161 = tpu.matmul %160, %158, %cst_100 {dimension_numbers = #tpu.dot_dimension_numbers<[1], [0], [0], [1], [0, 0, 1, 1], [], []>} : vector<4x4xf32>, vector<4x512xf32>, vector<4x512xf32> -> vector<4x512xf32>
    %162 = arith.addf %153, %161 : vector<4x512xf32>
    %163 = vector.extract_strided_slice %150 {offsets = [0, 1], sizes = [4, 512], strides = [1, 1]} : vector<4x546xf32> to vector<4x512xf32>
    %c1_101 = arith.constant 1 : index
    %c0_102 = arith.constant 0 : index
    %c0_103 = arith.constant 0 : index
    %164 = vector.load %arg4[%c1_101, %c0_102, %c0_103] : memref<9x1x512xf32, #tpu.memory_space<vmem>>, vector<1x1x512xf32>
    %165 = vector.shape_cast %164 : vector<1x1x512xf32> to vector<1x512xf32>
    %166 = vector.broadcast %165 : vector<1x512xf32> to vector<4x512xf32>
    %167 = arith.mulf %163, %166 : vector<4x512xf32>
    %c1_104 = arith.constant 1 : index
    %c0_105 = arith.constant 0 : index
    %c0_106 = arith.constant 0 : index
    %168 = vector.load %arg11[%c1_104, %c0_105, %c0_106] : memref<9x4x4xf32, #tpu.memory_space<vmem>>, vector<1x4x4xf32>
    %169 = vector.shape_cast %168 : vector<1x4x4xf32> to vector<4x4xf32>
    %cst_107 = arith.constant dense<0.000000e+00> : vector<4x512xf32>
    %170 = tpu.matmul %169, %167, %cst_107 {dimension_numbers = #tpu.dot_dimension_numbers<[1], [0], [0], [1], [0, 0, 1, 1], [], []>} : vector<4x4xf32>, vector<4x512xf32>, vector<4x512xf32> -> vector<4x512xf32>
    %171 = arith.addf %162, %170 : vector<4x512xf32>
    %172 = vector.extract_strided_slice %150 {offsets = [0, 2], sizes = [4, 512], strides = [1, 1]} : vector<4x546xf32> to vector<4x512xf32>
    %c2_108 = arith.constant 2 : index
    %c0_109 = arith.constant 0 : index
    %c0_110 = arith.constant 0 : index
    %173 = vector.load %arg4[%c2_108, %c0_109, %c0_110] : memref<9x1x512xf32, #tpu.memory_space<vmem>>, vector<1x1x512xf32>
    %174 = vector.shape_cast %173 : vector<1x1x512xf32> to vector<1x512xf32>
    %175 = vector.broadcast %174 : vector<1x512xf32> to vector<4x512xf32>
    %176 = arith.mulf %172, %175 : vector<4x512xf32>
    %c2_111 = arith.constant 2 : index
    %c0_112 = arith.constant 0 : index
    %c0_113 = arith.constant 0 : index
    %177 = vector.load %arg11[%c2_111, %c0_112, %c0_113] : memref<9x4x4xf32, #tpu.memory_space<vmem>>, vector<1x4x4xf32>
    %178 = vector.shape_cast %177 : vector<1x4x4xf32> to vector<4x4xf32>
    %cst_114 = arith.constant dense<0.000000e+00> : vector<4x512xf32>
    %179 = tpu.matmul %178, %176, %cst_114 {dimension_numbers = #tpu.dot_dimension_numbers<[1], [0], [0], [1], [0, 0, 1, 1], [], []>} : vector<4x4xf32>, vector<4x512xf32>, vector<4x512xf32> -> vector<4x512xf32>
    %180 = arith.addf %171, %179 : vector<4x512xf32>
    %181 = vector.extract_strided_slice %150 {offsets = [0, 16], sizes = [4, 512], strides = [1, 1]} : vector<4x546xf32> to vector<4x512xf32>
    %c3_115 = arith.constant 3 : index
    %c0_116 = arith.constant 0 : index
    %c0_117 = arith.constant 0 : index
    %182 = vector.load %arg4[%c3_115, %c0_116, %c0_117] : memref<9x1x512xf32, #tpu.memory_space<vmem>>, vector<1x1x512xf32>
    %183 = vector.shape_cast %182 : vector<1x1x512xf32> to vector<1x512xf32>
    %184 = vector.broadcast %183 : vector<1x512xf32> to vector<4x512xf32>
    %185 = arith.mulf %181, %184 : vector<4x512xf32>
    %c3_118 = arith.constant 3 : index
    %c0_119 = arith.constant 0 : index
    %c0_120 = arith.constant 0 : index
    %186 = vector.load %arg11[%c3_118, %c0_119, %c0_120] : memref<9x4x4xf32, #tpu.memory_space<vmem>>, vector<1x4x4xf32>
    %187 = vector.shape_cast %186 : vector<1x4x4xf32> to vector<4x4xf32>
    %cst_121 = arith.constant dense<0.000000e+00> : vector<4x512xf32>
    %188 = tpu.matmul %187, %185, %cst_121 {dimension_numbers = #tpu.dot_dimension_numbers<[1], [0], [0], [1], [0, 0, 1, 1], [], []>} : vector<4x4xf32>, vector<4x512xf32>, vector<4x512xf32> -> vector<4x512xf32>
    %189 = arith.addf %180, %188 : vector<4x512xf32>
    %190 = vector.extract_strided_slice %150 {offsets = [0, 17], sizes = [4, 512], strides = [1, 1]} : vector<4x546xf32> to vector<4x512xf32>
    %c4_122 = arith.constant 4 : index
    %c0_123 = arith.constant 0 : index
    %c0_124 = arith.constant 0 : index
    %191 = vector.load %arg11[%c4_122, %c0_123, %c0_124] : memref<9x4x4xf32, #tpu.memory_space<vmem>>, vector<1x4x4xf32>
    %192 = vector.shape_cast %191 : vector<1x4x4xf32> to vector<4x4xf32>
    %cst_125 = arith.constant dense<0.000000e+00> : vector<4x512xf32>
    %193 = tpu.matmul %192, %190, %cst_125 {dimension_numbers = #tpu.dot_dimension_numbers<[1], [0], [0], [1], [0, 0, 1, 1], [], []>} : vector<4x4xf32>, vector<4x512xf32>, vector<4x512xf32> -> vector<4x512xf32>
    %194 = arith.addf %189, %193 : vector<4x512xf32>
    %195 = vector.extract_strided_slice %150 {offsets = [0, 18], sizes = [4, 512], strides = [1, 1]} : vector<4x546xf32> to vector<4x512xf32>
    %c5_126 = arith.constant 5 : index
    %c0_127 = arith.constant 0 : index
    %c0_128 = arith.constant 0 : index
    %196 = vector.load %arg4[%c5_126, %c0_127, %c0_128] : memref<9x1x512xf32, #tpu.memory_space<vmem>>, vector<1x1x512xf32>
    %197 = vector.shape_cast %196 : vector<1x1x512xf32> to vector<1x512xf32>
    %198 = vector.broadcast %197 : vector<1x512xf32> to vector<4x512xf32>
    %199 = arith.mulf %195, %198 : vector<4x512xf32>
    %c5_129 = arith.constant 5 : index
    %c0_130 = arith.constant 0 : index
    %c0_131 = arith.constant 0 : index
    %200 = vector.load %arg11[%c5_129, %c0_130, %c0_131] : memref<9x4x4xf32, #tpu.memory_space<vmem>>, vector<1x4x4xf32>
    %201 = vector.shape_cast %200 : vector<1x4x4xf32> to vector<4x4xf32>
    %cst_132 = arith.constant dense<0.000000e+00> : vector<4x512xf32>
    %202 = tpu.matmul %201, %199, %cst_132 {dimension_numbers = #tpu.dot_dimension_numbers<[1], [0], [0], [1], [0, 0, 1, 1], [], []>} : vector<4x4xf32>, vector<4x512xf32>, vector<4x512xf32> -> vector<4x512xf32>
    %203 = arith.addf %194, %202 : vector<4x512xf32>
    %204 = vector.extract_strided_slice %150 {offsets = [0, 32], sizes = [4, 512], strides = [1, 1]} : vector<4x546xf32> to vector<4x512xf32>
    %c6_133 = arith.constant 6 : index
    %c0_134 = arith.constant 0 : index
    %c0_135 = arith.constant 0 : index
    %205 = vector.load %arg4[%c6_133, %c0_134, %c0_135] : memref<9x1x512xf32, #tpu.memory_space<vmem>>, vector<1x1x512xf32>
    %206 = vector.shape_cast %205 : vector<1x1x512xf32> to vector<1x512xf32>
    %207 = vector.broadcast %206 : vector<1x512xf32> to vector<4x512xf32>
    %208 = arith.mulf %204, %207 : vector<4x512xf32>
    %c6_136 = arith.constant 6 : index
    %c0_137 = arith.constant 0 : index
    %c0_138 = arith.constant 0 : index
    %209 = vector.load %arg11[%c6_136, %c0_137, %c0_138] : memref<9x4x4xf32, #tpu.memory_space<vmem>>, vector<1x4x4xf32>
    %210 = vector.shape_cast %209 : vector<1x4x4xf32> to vector<4x4xf32>
    %cst_139 = arith.constant dense<0.000000e+00> : vector<4x512xf32>
    %211 = tpu.matmul %210, %208, %cst_139 {dimension_numbers = #tpu.dot_dimension_numbers<[1], [0], [0], [1], [0, 0, 1, 1], [], []>} : vector<4x4xf32>, vector<4x512xf32>, vector<4x512xf32> -> vector<4x512xf32>
    %212 = arith.addf %203, %211 : vector<4x512xf32>
    %213 = vector.extract_strided_slice %150 {offsets = [0, 33], sizes = [4, 512], strides = [1, 1]} : vector<4x546xf32> to vector<4x512xf32>
    %c7_140 = arith.constant 7 : index
    %c0_141 = arith.constant 0 : index
    %c0_142 = arith.constant 0 : index
    %214 = vector.load %arg4[%c7_140, %c0_141, %c0_142] : memref<9x1x512xf32, #tpu.memory_space<vmem>>, vector<1x1x512xf32>
    %215 = vector.shape_cast %214 : vector<1x1x512xf32> to vector<1x512xf32>
    %216 = vector.broadcast %215 : vector<1x512xf32> to vector<4x512xf32>
    %217 = arith.mulf %213, %216 : vector<4x512xf32>
    %c7_143 = arith.constant 7 : index
    %c0_144 = arith.constant 0 : index
    %c0_145 = arith.constant 0 : index
    %218 = vector.load %arg11[%c7_143, %c0_144, %c0_145] : memref<9x4x4xf32, #tpu.memory_space<vmem>>, vector<1x4x4xf32>
    %219 = vector.shape_cast %218 : vector<1x4x4xf32> to vector<4x4xf32>
    %cst_146 = arith.constant dense<0.000000e+00> : vector<4x512xf32>
    %220 = tpu.matmul %219, %217, %cst_146 {dimension_numbers = #tpu.dot_dimension_numbers<[1], [0], [0], [1], [0, 0, 1, 1], [], []>} : vector<4x4xf32>, vector<4x512xf32>, vector<4x512xf32> -> vector<4x512xf32>
    %221 = arith.addf %212, %220 : vector<4x512xf32>
    %222 = vector.extract_strided_slice %150 {offsets = [0, 34], sizes = [4, 512], strides = [1, 1]} : vector<4x546xf32> to vector<4x512xf32>
    %c8_147 = arith.constant 8 : index
    %c0_148 = arith.constant 0 : index
    %c0_149 = arith.constant 0 : index
    %223 = vector.load %arg4[%c8_147, %c0_148, %c0_149] : memref<9x1x512xf32, #tpu.memory_space<vmem>>, vector<1x1x512xf32>
    %224 = vector.shape_cast %223 : vector<1x1x512xf32> to vector<1x512xf32>
    %225 = vector.broadcast %224 : vector<1x512xf32> to vector<4x512xf32>
    %226 = arith.mulf %222, %225 : vector<4x512xf32>
    %c8_150 = arith.constant 8 : index
    %c0_151 = arith.constant 0 : index
    %c0_152 = arith.constant 0 : index
    %227 = vector.load %arg11[%c8_150, %c0_151, %c0_152] : memref<9x4x4xf32, #tpu.memory_space<vmem>>, vector<1x4x4xf32>
    %228 = vector.shape_cast %227 : vector<1x4x4xf32> to vector<4x4xf32>
    %cst_153 = arith.constant dense<0.000000e+00> : vector<4x512xf32>
    %229 = tpu.matmul %228, %226, %cst_153 {dimension_numbers = #tpu.dot_dimension_numbers<[1], [0], [0], [1], [0, 0, 1, 1], [], []>} : vector<4x4xf32>, vector<4x512xf32>, vector<4x512xf32> -> vector<4x512xf32>
    %230 = arith.addf %221, %229 : vector<4x512xf32>
    %231 = arith.addf %230, %4 : vector<4x512xf32>
    %232 = vector.extract_strided_slice %231 {offsets = [0, 0], sizes = [4, 256], strides = [1, 1]} : vector<4x512xf32> to vector<4x256xf32>
    %c0_154 = arith.constant 0 : index
    %c0_155 = arith.constant 0 : index
    %c0_156 = arith.constant 0 : index
    %233 = vector.load %arg13[%c0_154, %c0_155, %c0_156] : memref<2x4x256xf32, #tpu.memory_space<vmem>>, vector<1x4x256xf32>
    %234 = vector.shape_cast %233 : vector<1x4x256xf32> to vector<4x256xf32>
    %235 = vector.shape_cast %232 : vector<4x256xf32> to vector<1x4x256xf32>
    tpu.vector_store %arg13[%c0_154, %c0_155, %c0_156], %235 {strides = array<i32>} : memref<2x4x256xf32, #tpu.memory_space<vmem>>, vector<1x4x256xf32>,
    %236 = vector.extract_strided_slice %231 {offsets = [0, 256], sizes = [4, 256], strides = [1, 1]} : vector<4x512xf32> to vector<4x256xf32>
    %c1_157 = arith.constant 1 : index
    %c0_158 = arith.constant 0 : index
    %c0_159 = arith.constant 0 : index
    %237 = vector.load %arg13[%c1_157, %c0_158, %c0_159] : memref<2x4x256xf32, #tpu.memory_space<vmem>>, vector<1x4x256xf32>
    %238 = vector.shape_cast %237 : vector<1x4x256xf32> to vector<4x256xf32>
    %239 = vector.shape_cast %236 : vector<4x256xf32> to vector<1x4x256xf32>
    tpu.vector_store %arg13[%c1_157, %c0_158, %c0_159], %239 {strides = array<i32>} : memref<2x4x256xf32, #tpu.memory_space<vmem>>, vector<1x4x256xf32>,
    return
  }
  func.func @transform_0(%arg0: i32) -> (i32, i32, i32) {
    %c0_i32 = arith.constant 0 : i32
    %c0_i32_0 = arith.constant 0 : i32
    %c0_i32_1 = arith.constant 0 : i32
    return %arg0, %c0_i32, %c0_i32_0 : i32, i32, i32
  }
  func.func @transform_1(%arg0: i32) -> (i32, i32) {
    %c0_i32 = arith.constant 0 : i32
    %c0_i32_0 = arith.constant 0 : i32
    %c0_i32_1 = arith.constant 0 : i32
    return %c0_i32, %c0_i32_0 : i32, i32
  }
  func.func @transform_2(%arg0: i32) -> (i32, i32) {
    %c0_i32 = arith.constant 0 : i32
    %c0_i32_0 = arith.constant 0 : i32
    %c0_i32_1 = arith.constant 0 : i32
    return %c0_i32, %c0_i32_0 : i32, i32
  }
  func.func @transform_3(%arg0: i32) -> (i32, i32, i32) {
    %c0_i32 = arith.constant 0 : i32
    %c0_i32_0 = arith.constant 0 : i32
    %c0_i32_1 = arith.constant 0 : i32
    %c0_i32_2 = arith.constant 0 : i32
    return %c0_i32, %c0_i32_0, %c0_i32_1 : i32, i32, i32
  }
  func.func @transform_4(%arg0: i32) -> (i32, i32) {
    %c0_i32 = arith.constant 0 : i32
    %c0_i32_0 = arith.constant 0 : i32
    %c0_i32_1 = arith.constant 0 : i32
    return %c0_i32, %c0_i32_0 : i32, i32
  }
  func.func @transform_5(%arg0: i32) -> (i32, i32) {
    %c0_i32 = arith.constant 0 : i32
    %c0_i32_0 = arith.constant 0 : i32
    %c0_i32_1 = arith.constant 0 : i32
    return %c0_i32, %c0_i32_0 : i32, i32
  }
  func.func @transform_6(%arg0: i32) -> (i32, i32) {
    %c0_i32 = arith.constant 0 : i32
    %c0_i32_0 = arith.constant 0 : i32
    %c0_i32_1 = arith.constant 0 : i32
    return %c0_i32, %c0_i32_0 : i32, i32
  }
  func.func @transform_7(%arg0: i32) -> (i32, i32) {
    %c0_i32 = arith.constant 0 : i32
    %c0_i32_0 = arith.constant 0 : i32
    %c0_i32_1 = arith.constant 0 : i32
    return %c0_i32, %c0_i32_0 : i32, i32
  }
  func.func @transform_8(%arg0: i32) -> (i32, i32, i32) {
    %c0_i32 = arith.constant 0 : i32
    %c0_i32_0 = arith.constant 0 : i32
    %c0_i32_1 = arith.constant 0 : i32
    %c0_i32_2 = arith.constant 0 : i32
    return %c0_i32, %c0_i32_0, %c0_i32_1 : i32, i32, i32
  }
  func.func @transform_9(%arg0: i32) -> (i32, i32) {
    %c0_i32 = arith.constant 0 : i32
    %c0_i32_0 = arith.constant 0 : i32
    %c0_i32_1 = arith.constant 0 : i32
    return %c0_i32, %c0_i32_0 : i32, i32
  }
  func.func @transform_10(%arg0: i32) -> (i32, i32, i32) {
    %c0_i32 = arith.constant 0 : i32
    %c0_i32_0 = arith.constant 0 : i32
    %c0_i32_1 = arith.constant 0 : i32
    %c0_i32_2 = arith.constant 0 : i32
    return %c0_i32, %c0_i32_0, %c0_i32_1 : i32, i32, i32
  }
  func.func @transform_11(%arg0: i32) -> (i32, i32) {
    %c0_i32 = arith.constant 0 : i32
    %c0_i32_0 = arith.constant 0 : i32
    %c0_i32_1 = arith.constant 0 : i32
    return %c0_i32, %c0_i32_0 : i32, i32
  }
  func.func @transform_12(%arg0: i32) -> (i32, i32, i32) {
    %c0_i32 = arith.constant 0 : i32
    %c0_i32_0 = arith.constant 0 : i32
    %c0_i32_1 = arith.constant 0 : i32
    return %arg0, %c0_i32, %c0_i32_0 : i32, i32, i32
  }
}

</mosaic_0001>

<bundles_post_ra>
// kernel: cnn_forward.1
= control target key start
LH: loop header
LB: loop body
LE: loop exit
PB: predicated region body
PF: predicated region fallthrough
CT: control target
= control target key end

     0   :  { %vm304_vm0 = vcmask 261120   ;;  %s4049_s25 = smov 2   ;;  %s4050_s28 = smov 16   ;;  %s6244_s1 = inlined_call_operand.vmem [shape: f32[512,32], index: 1, kind: input, shape index: {}]   ;;  %s6245_s0 = inlined_call_operand.vmem [shape: f32[2,4,256], index: 0, kind: input, shape index: {}]   ;;  %s6246_s2 = inlined_call_operand.vmem [shape: f32[32,512], index: 2, kind: input, shape index: {}]   ;;  %s6247_s3 = inlined_call_operand.vmem [shape: f32[9,1,512], index: 3, kind: input, shape index: {}]   ;;  %s6248_s4 = inlined_call_operand.vmem [shape: f32[1,512], index: 4, kind: input, shape index: {}]   ;;  %s6249_s5 = inlined_call_operand.vmem [shape: f32[1,512], index: 5, kind: input, shape index: {}]   ;;  %s6250_s8 = inlined_call_operand.vmem [shape: f32[9,4,4], index: 8, kind: input, shape index: {}]   ;;  %s6251_s9 = inlined_call_operand.vmem [shape: f32[4,1], index: 9, kind: input, shape index: {}]   ;;  %s6252_s6 = inlined_call_operand.vmem [shape: f32[1,512], index: 6, kind: input, shape index: {}]   ;;  %s6253_s7 = inlined_call_operand.vmem [shape: f32[1,512], index: 7, kind: input, shape index: {}]   ;;  %s6254_s10 = inlined_call_operand.vmem [shape: f32[9,4,4], index: 10, kind: input, shape index: {}]   ;;  %s6255_s11 = inlined_call_operand.vmem [shape: f32[4,1], index: 11, kind: input, shape index: {}]   ;;  %s6256_s12 = inlined_call_operand.vmem [shape: f32[2,4,256], index: 12, kind: output, shape index: {}]  }
   0x1   :  { %v4133_v0 = vld [vmem:[%s6244_s1 + $0x178] sm:$0xff]  ;;  %v4138_v1 = vld [vmem:[%s6244_s1 + $0x170] sm:$0xff]  ;;  %v4160_v5 = vld [vmem:[%s6244_s1 + $0x168] sm:$0xff]  ;;  %s4051_s13 = smov 18   ;;  %s4052_s16 = smov 32  }
   0x2   :  { %v4143_v2 = vld [vmem:[%s6244_s1 + $0x1f8] sm:$0xff]  ;;  %178 = vmatpush.msra.mxu2 %v4133_v0  ;;  %v4167_v6 = vld [vmem:[%s6244_s1 + $0x1f0] sm:$0xff]  ;;  %v4184_v9 = vld [vmem:[%s6244_s1 + $0x1e8] sm:$0xff]  ;;  %s4053_s22 = smov 33   ;;  %s4054_s23 = smov 34  }
   0x3   :  { %198 = vmatpush.msra.mxu3 %v4143_v2  ;;  %v4150_v3 = vld [vmem:[%s6244_s1 + $0x78] sm:$0xff]  ;;  %v4172_v7 = vld [vmem:[%s6244_s1 + $0x70] sm:$0xff]  ;;  %v4189_v10 = vld [vmem:[%s6244_s1 + $0x68] sm:$0xff]  ;;  %s4055_s24 = smov 17   ;;  %s4057_s27 = smov 127  }
   0x4   :  { %v4155_v4 = vld [vmem:[%s6244_s1 + $0xf8] sm:$0xff]  ;;  %138 = vmatpush.msra.mxu0 %v4150_v3  ;;  %v4177_v8 = vld [vmem:[%s6244_s1 + $0xf0] sm:$0xff]  ;;  %179 = vmatpush.msra.mxu2 %v4138_v1  ;;  %v4196_v11 = vld [vmem:[%s6244_s1 + $0x160] sm:$0xff]  ;;  %s4059_s29 = smov 112   ;;  %s4060_s30 = smov 110  }
   0x5   :  { %158 = vmatpush.msra.mxu1 %v4155_v4  ;;  %199 = vmatpush.msra.mxu3 %v4167_v6  ;;  %v4201_v12 = vld [vmem:[%s6244_s1 + $0xe8] sm:$0xff]  ;;  %v4206_v13 = vld [vmem:[%s6244_s1 + $0x1e0] sm:$0xff]  ;;  %v4225_v16 = vld [vmem:[%s6244_s1 + $0x158] sm:$0xff]  ;;  %s4062_s14 = smov 95   ;;  %s4063_s17 = smov 94  }
   0x6   :  { %139 = vmatpush.msra.mxu0 %v4172_v7  ;;  %180 = vmatpush.msra.mxu2 %v4160_v5  ;;  %v4213_v14 = vld [vmem:[%s6244_s1 + $0x60] sm:$0xff]  ;;  %v4230_v17 = vld [vmem:[%s6244_s1 + $0x1d8] sm:$0xff]  ;;  %v4249_v20 = vld [vmem:[%s6244_s1 + $0x150] sm:$0xff] }
   0x7   :  { %159 = vmatpush.msra.mxu1 %v4177_v8  ;;  %200 = vmatpush.msra.mxu3 %v4184_v9  ;;  %v4218_v15 = vld [vmem:[%s6244_s1 + $0xe0] sm:$0xff]  ;;  %v4237_v18 = vld [vmem:[%s6244_s1 + $0x58] sm:$0xff]  ;;  %v4254_v21 = vld [vmem:[%s6244_s1 + $0x1d0] sm:$0xff] }
   0x8   :  { %140 = vmatpush.msra.mxu0 %v4189_v10  ;;  %181 = vmatpush.msra.mxu2 %v4196_v11  ;;  %v4242_v19 = vld [vmem:[%s6244_s1 + $0xd8] sm:$0xff]  ;;  %v4261_v22 = vld [vmem:[%s6244_s1 + $0x50] sm:$0xff]  ;;  %v4273_v24 = vld [vmem:[%s6244_s1 + $0x148] sm:$0xff] }
   0x9   :  { %160 = vmatpush.msra.mxu1 %v4201_v12  ;;  %201 = vmatpush.msra.mxu3 %v4206_v13  ;;  %v4266_v23 = vld [vmem:[%s6244_s1 + $0xd0] sm:$0xff]  ;;  %v4278_v25 = vld [vmem:[%s6244_s1 + $0x1c8] sm:$0xff]  ;;  %v4297_v28 = vld [vmem:[%s6244_s1 + $0x140] sm:$0xff] }
   0xa   :  { %141 = vmatpush.msra.mxu0 %v4213_v14  ;;  %182 = vmatpush.msra.mxu2 %v4225_v16  ;;  %v4285_v26 = vld [vmem:[%s6244_s1 + $0x48] sm:$0xff]  ;;  %v4302_v29 = vld [vmem:[%s6244_s1 + $0x1c0] sm:$0xff]  ;;  %v4321_v32 = vld [vmem:[%s6244_s1 + $0x138] sm:$0xff] }
   0xb   :  { %161 = vmatpush.msra.mxu1 %v4218_v15  ;;  %202 = vmatpush.msra.mxu3 %v4230_v17  ;;  %v4290_v27 = vld [vmem:[%s6244_s1 + $0xc8] sm:$0xff]  ;;  %v4309_v30 = vld [vmem:[%s6244_s1 + $0x40] sm:$0xff]  ;;  %v4326_v33 = vld [vmem:[%s6244_s1 + $0x1b8] sm:$0xff] }
   0xc   :  { %142 = vmatpush.msra.mxu0 %v4237_v18  ;;  %183 = vmatpush.msra.mxu2 %v4249_v20  ;;  %v4314_v31 = vld [vmem:[%s6244_s1 + $0xc0] sm:$0xff]  ;;  %v4333_v34 = vld [vmem:[%s6244_s1 + $0x38] sm:$0xff]  ;;  %v4345_v36 = vld [vmem:[%s6244_s1 + $0x130] sm:$0xff] }
   0xd   :  { %162 = vmatpush.msra.mxu1 %v4242_v19  ;;  %203 = vmatpush.msra.mxu3 %v4254_v21  ;;  %v4338_v35 = vld [vmem:[%s6244_s1 + $0xb8] sm:$0xff]  ;;  %v4350_v37 = vld [vmem:[%s6244_s1 + $0x1b0] sm:$0xff]  ;;  %v4369_v40 = vld [vmem:[%s6244_s1 + $0x128] sm:$0xff] }
   0xe   :  { %143 = vmatpush.msra.mxu0 %v4261_v22  ;;  %184 = vmatpush.msra.mxu2 %v4273_v24  ;;  %v4357_v38 = vld [vmem:[%s6244_s1 + $0x30] sm:$0xff]  ;;  %v4374_v41 = vld [vmem:[%s6244_s1 + $0x1a8] sm:$0xff]  ;;  %v4393_v44 = vld [vmem:[%s6244_s1 + $0x120] sm:$0xff] }
   0xf   :  { %163 = vmatpush.msra.mxu1 %v4266_v23  ;;  %204 = vmatpush.msra.mxu3 %v4278_v25  ;;  %v4362_v39 = vld [vmem:[%s6244_s1 + $0xb0] sm:$0xff]  ;;  %v4381_v42 = vld [vmem:[%s6244_s1 + $0x28] sm:$0xff]  ;;  %v4398_v45 = vld [vmem:[%s6244_s1 + $0x1a0] sm:$0xff] }
  0x10   :  { %144 = vmatpush.msra.mxu0 %v4285_v26  ;;  %185 = vmatpush.msra.mxu2 %v4297_v28  ;;  %v4386_v43 = vld [vmem:[%s6244_s1 + $0xa8] sm:$0xff]  ;;  %v4405_v46 = vld [vmem:[%s6244_s1 + $0x20] sm:$0xff]  ;;  %v4420_v49 = vld [vmem:[%s6244_s1 + $0x118] sm:$0xff] }
  0x11   :  { %164 = vmatpush.msra.mxu1 %v4290_v27  ;;  %205 = vmatpush.msra.mxu3 %v4302_v29  ;;  %v4410_v47 = vld [vmem:[%s6244_s1 + $0xa0] sm:$0xff]  ;;  %v4425_v50 = vld [vmem:[%s6244_s1 + $0x198] sm:$0xff]  ;;  %v4444_v53 = vld [vmem:[%s6244_s1 + $0x110] sm:$0xff] }
  0x12   :  { %145 = vmatpush.msra.mxu0 %v4309_v30  ;;  %186 = vmatpush.msra.mxu2 %v4321_v32  ;;  %v41_v48 = vld [vmem:[%s6245_s0] sm:$0xff]  ;;  %v4432_v51 = vld [vmem:[%s6244_s1 + $0x18] sm:$0xff]  ;;  %v4449_v54 = vld [vmem:[%s6244_s1 + $0x190] sm:$0xff] }
  0x13   :  { %165 = vmatpush.msra.mxu1 %v4314_v31  ;;  %206 = vmatpush.msra.mxu3 %v4326_v33  ;;  %45 = vst [vmem:[#allocation1] ss:$2 sm:$0xff] %v41_v48  ;;  %v4437_v52 = vld [vmem:[%s6244_s1 + $0x98] sm:$0xff]  ;;  %v4456_v55 = vld [vmem:[%s6244_s1 + $0x10] sm:$0xff]  ;;  %v4468_v57 = vld [vmem:[%s6244_s1 + $0x108] sm:$0xff] }
  0x14   :  { %146 = vmatpush.msra.mxu0 %v4333_v34  ;;  %187 = vmatpush.msra.mxu2 %v4345_v36  ;;  %6298 = vst [vmem:[#allocation2_spill] sm:$0xff] %v4449_v54  ;;  %v4461_v56 = vld [vmem:[%s6244_s1 + $0x90] sm:$0xff]  ;;  %v4473_v58 = vld [vmem:[%s6244_s1 + $0x188] sm:$0xff]  ;;  %v4495_v62 = vld [vmem:[%s6244_s1 + $0x100] sm:$0xff] }
  0x15   :  { %166 = vmatpush.msra.mxu1 %v4338_v35  ;;  %207 = vmatpush.msra.mxu3 %v4350_v37  ;;  %6299 = vst [vmem:[#allocation3_spill] sm:$0xff] %v4456_v55  ;;  %v4480_v59 = vld [vmem:[%s6244_s1 + $0x8] sm:$0xff]  ;;  %v4500_v63 = vld [vmem:[%s6244_s1 + $0x180] sm:$0xff] }
  0x16   :  { %147 = vmatpush.msra.mxu0 %v4357_v38  ;;  %188 = vmatpush.msra.mxu2 %v4369_v40  ;;  %6300 = vst [vmem:[#allocation4_spill] sm:$0xff] %v4461_v56  ;;  %v4485_v60 = vld [vmem:[%s6244_s1 + $0x88] sm:$0xff] }
  0x17   :  { %167 = vmatpush.msra.mxu1 %v4362_v39  ;;  %208 = vmatpush.msra.mxu3 %v4374_v41  ;;  %v3722_v61 = vld [vmem:[%s6245_s0 + $0x8] sm:$0xff]  ;;  %s4048_s0 = smov 1  }
  0x18   :  { %148 = vmatpush.msra.mxu0 %v4381_v42  ;;  %189 = vmatpush.msra.mxu2 %v4393_v44 }
  0x19   :  { %168 = vmatpush.msra.mxu1 %v4386_v43  ;;  %209 = vmatpush.msra.mxu3 %v4398_v45 }
  0x1a   :  { %149 = vmatpush.msra.mxu0 %v4405_v46  ;;  %190 = vmatpush.msra.mxu2 %v4420_v49  ;;  %v4504_v48 = vld.sshfl [vmem:[#allocation1] sm:$0xff pattern:$0x75316420] }
  0x1b   :  { %169 = vmatpush.msra.mxu1 %v4410_v47  ;;  %210 = vmatpush.msra.mxu3 %v4425_v50  ;;  %6301 = vst [vmem:[#allocation5_spill] sm:$0xff] %v4504_v48 }
  0x1c   :  { %150 = vmatpush.msra.mxu0 %v4432_v51  ;;  %191 = vmatpush.msra.mxu2 %v4444_v53 }
  0x1d   :  { %170 = vmatpush.msra.mxu1 %v4437_v52  ;;  %211 = vmatpush.msra.mxu3 %v4449_v54  ;;  %v4506_v54 = vld.sshfl [vmem:[#allocation1 + $0x8] sm:$0xff pattern:$0x75316420] }
  0x1e   :  { %151 = vmatpush.msra.mxu0 %v4456_v55  ;;  %192 = vmatpush.msra.mxu2 %v4468_v57  ;;  %6302 = vst [vmem:[#allocation6_spill] sm:$0xff] %v4506_v54  ;;  %v4518_v55 = vld [vmem:[%s6244_s1 + $0x80] sm:$0xff] }
  0x1f   :  { %171 = vmatpush.msra.mxu1 %v4461_v56  ;;  %212 = vmatpush.msra.mxu3 %v4473_v58  ;;  %v4513_v56 = vld [vmem:[%s6244_s1] sm:$0xff]  ;;  %51 = vst [vmem:[#allocation1] ss:$2 sm:$0xff] %v3722_v61  ;;  %v4687_v61 = vld [vmem:[%s6247_s3 + $0x14] sm:$0xf] }
  0x20   :  { %152 = vmatpush.msra.mxu0 %v4480_v59  ;;  %193 = vmatpush.msra.mxu2 %v4495_v62 }
  0x21   :  { %172 = vmatpush.msra.mxu1 %v4485_v60  ;;  %213 = vmatpush.msra.mxu3 %v4500_v63 }
  0x22   :  { %263 = vmatpush.msrb.mxu2 %v4133_v0  ;;  %153 = vmatpush.msra.mxu0 %v4513_v56 }
  0x23   :  { %283 = vmatpush.msrb.mxu3 %v4143_v2  ;;  %173 = vmatpush.msra.mxu1 %v4518_v55 }
  0x24   :  { %264 = vmatpush.msrb.mxu2 %v4138_v1  ;;  %223 = vmatpush.msrb.mxu0 %v4150_v3  ;;  %v6303_v3 = vld [vmem:[#allocation2_spill] sm:$0xff] }
  0x25   :  { %243 = vmatpush.msrb.mxu1 %v4155_v4  ;;  %284 = vmatpush.msrb.mxu3 %v4167_v6  ;;  %v6304_v4 = vld [vmem:[#allocation3_spill] sm:$0xff] }
  0x26   :  { %265 = vmatpush.msrb.mxu2 %v4160_v5  ;;  %224 = vmatpush.msrb.mxu0 %v4172_v7  ;;  %v4564_v0 = vld.sshfl [vmem:[#allocation1] sm:$0xff pattern:$0x75316420]  ;;  %v4570_v1 = vld.sshfl [vmem:[#allocation1 + $0x8] sm:$0xff pattern:$0x75316420]  ;;  %v219_v7 = vmul.f32 %v4504_v48, %v4504_v48 }
  0x27   :  { %244 = vmatpush.msrb.mxu1 %v4177_v8  ;;  %285 = vmatpush.msrb.mxu3 %v4184_v9  ;;  %v221_v2 = vmul.f32 %v4564_v0, %v4564_v0  ;;  %v6305_v5 = vld [vmem:[#allocation4_spill] sm:$0xff]  ;;  %v222_v6 = vmul.f32 %v4570_v1, %v4570_v1  ;;  %v220_v8 = vmul.f32 %v4506_v54, %v4506_v54  ;;  %v132_v9 = vld [vmem:[%s6246_s2 + $0x60] sm:$0xff] }
  0x28   :  { %266 = vmatpush.msrb.mxu2 %v4196_v11  ;;  %225 = vmatpush.msrb.mxu0 %v4189_v10  ;;  %v133_v10 = vld [vmem:[%s6246_s2 + $0x68] sm:$0xff]  ;;  %v134_v11 = vld [vmem:[%s6246_s2 + $0x70] sm:$0xff] }
  0x29   :  { %245 = vmatpush.msrb.mxu1 %v4201_v12  ;;  %286 = vmatpush.msrb.mxu3 %v4206_v13  ;;  %v135_v12 = vld [vmem:[%s6246_s2 + $0x78] sm:$0xff]  ;;  %v128_v13 = vld [vmem:[%s6246_s2 + $0x40] sm:$0xff] }
  0x2a   :  { %267 = vmatpush.msrb.mxu2 %v4225_v16  ;;  %226 = vmatpush.msrb.mxu0 %v4213_v14  ;;  %v129_v14 = vld [vmem:[%s6246_s2 + $0x48] sm:$0xff]  ;;  %v131_v16 = vld [vmem:[%s6246_s2 + $0x58] sm:$0xff] }
  0x2b   :  { %246 = vmatpush.msrb.mxu1 %v4218_v15  ;;  %287 = vmatpush.msrb.mxu3 %v4230_v17  ;;  %v130_v15 = vld [vmem:[%s6246_s2 + $0x50] sm:$0xff]  ;;  %v124_v17 = vld [vmem:[%s6246_s2 + $0x20] sm:$0xff] }
  0x2c   :  { %268 = vmatpush.msrb.mxu2 %v4249_v20  ;;  %227 = vmatpush.msrb.mxu0 %v4237_v18  ;;  %v125_v18 = vld [vmem:[%s6246_s2 + $0x28] sm:$0xff]  ;;  %v127_v20 = vld [vmem:[%s6246_s2 + $0x38] sm:$0xff] }
  0x2d   :  { %247 = vmatpush.msrb.mxu1 %v4242_v19  ;;  %288 = vmatpush.msrb.mxu3 %v4254_v21  ;;  %v126_v19 = vld [vmem:[%s6246_s2 + $0x30] sm:$0xff]  ;;  %v120_v21 = vld [vmem:[%s6246_s2] sm:$0xff] }
  0x2e   :  { %269 = vmatpush.msrb.mxu2 %v4273_v24  ;;  %228 = vmatpush.msrb.mxu0 %v4261_v22  ;;  %v121_v22 = vld [vmem:[%s6246_s2 + $0x8] sm:$0xff]  ;;  %v123_v24 = vld [vmem:[%s6246_s2 + $0x18] sm:$0xff] }
  0x2f   :  { %248 = vmatpush.msrb.mxu1 %v4266_v23  ;;  %289 = vmatpush.msrb.mxu3 %v4278_v25  ;;  %v122_v23 = vld [vmem:[%s6246_s2 + $0x10] sm:$0xff] }
  0x30   :  { %270 = vmatpush.msrb.mxu2 %v4297_v28  ;;  %229 = vmatpush.msrb.mxu0 %v4285_v26 }
  0x31   :  { %249 = vmatpush.msrb.mxu1 %v4290_v27  ;;  %290 = vmatpush.msrb.mxu3 %v4302_v29 }
  0x32   :  { %271 = vmatpush.msrb.mxu2 %v4321_v32  ;;  %230 = vmatpush.msrb.mxu0 %v4309_v30 }
  0x33   :  { %250 = vmatpush.msrb.mxu1 %v4314_v31  ;;  %291 = vmatpush.msrb.mxu3 %v4326_v33 }
  0x34   :  { %272 = vmatpush.msrb.mxu2 %v4345_v36  ;;  %231 = vmatpush.msrb.mxu0 %v4333_v34 }
  0x35   :  { %251 = vmatpush.msrb.mxu1 %v4338_v35  ;;  %292 = vmatpush.msrb.mxu3 %v4350_v37 }
  0x36   :  { %273 = vmatpush.msrb.mxu2 %v4369_v40  ;;  %232 = vmatpush.msrb.mxu0 %v4357_v38 }
  0x37   :  { %252 = vmatpush.msrb.mxu1 %v4362_v39  ;;  %293 = vmatpush.msrb.mxu3 %v4374_v41  ;;  %v3743_v41 = vld [vmem:[%s6247_s3 + $0x4] sm:$0xf] }
  0x38   :  { %274 = vmatpush.msrb.mxu2 %v4393_v44  ;;  %233 = vmatpush.msrb.mxu0 %v4381_v42  ;;  %v882_v42 = vperm.slane %v3743_v41, 1  ;;  %v883_v44 = vperm.slane %v3743_v41, 2 }
  0x39   :  { %194 = vmatmul.f32.vlgmr.msra.gmra.mxu2 %v4564_v0  ;;  %253 = vmatpush.msrb.mxu1 %v4386_v43  ;;  %v3753_v43 = vld [vmem:[%s6247_s3 + $0x8] sm:$0xf] }
  0x3a   :  { %275 = vmatpush.msrb.mxu2 %v4420_v49  ;;  %294 = vmatpush.msrb.mxu3 %v4398_v45  ;;  %v1029_v45 = vperm.slane %v3753_v43, 2  ;;  %v881_v49 = vperm.slane %v3743_v41, 0 }
  0x3b   :  { %214 = vmatmul.f32.vlgmr.msra.gmra.mxu3 %v4570_v1  ;;  %234 = vmatpush.msrb.mxu0 %v4405_v46  ;;  %v1028_v46 = vperm.slane %v3753_v43, 1 }
  0x3c   :  { %254 = vmatpush.msrb.mxu1 %v4410_v47  ;;  %276 = vmatpush.msrb.mxu2 %v4444_v53  ;;  %v884_v47 = vperm.slane %v3743_v41, 3  ;;  %v4738_v41 = vld [vmem:[%s6249_s5] sm:$0xf] }
  0x3d   :  { %295 = vmatpush.msrb.mxu3 %v4425_v50  ;;  %154 = vmatmul.f32.vlgmr.msra.gmra.mxu0 %v4504_v48 }
  0x3e   :  { %174 = vmatmul.f32.vlgmr.msra.gmra.mxu1 %v4506_v54  ;;  %235 = vmatpush.msrb.mxu0 %v4432_v51 }
  0x3f   :  { %255 = vmatpush.msrb.mxu1 %v4437_v52  ;;  %277 = vmatpush.msrb.mxu2 %v4468_v57  ;;  %v3763_v52 = vld [vmem:[%s6247_s3 + $0xc] sm:$0xf] }
  0x40   :  { %296 = vmatpush.msrb.mxu3 %v6303_v3  ;;  %236 = vmatpush.msrb.mxu0 %v6304_v4  ;;  %v1175_v53 = vperm.slane %v3763_v52, 2  ;;  %v1174_v3 = vperm.slane %v3763_v52, 1 }
  0x41   :  { %256 = vmatpush.msrb.mxu1 %v6305_v5  ;;  %278 = vmatpush.msrb.mxu2 %v4495_v62 }
  0x42   :  { %297 = vmatpush.msrb.mxu3 %v4473_v58  ;;  %279 = vmatmul.f32.vlgmr.msrb.gmra.mxu2 %v221_v2  ;;  %v1173_v2 = vperm.slane %v3763_v52, 0 }
  0x43   :  { %237 = vmatpush.msrb.mxu0 %v4480_v59  ;;  %257 = vmatpush.msrb.mxu1 %v4485_v60 }
  0x44   :  { %298 = vmatpush.msrb.mxu3 %v4500_v63  ;;  %360 = vmatpush.msra.mxu2 %v134_v11 }
  0x45   :  { %299 = vmatmul.f32.vlgmr.msrb.gmra.mxu3 %v222_v6  ;;  %238 = vmatpush.msrb.mxu0 %v4513_v56  ;;  %v1176_v56 = vperm.slane %v3763_v52, 3  ;;  %v1434_v6 = vperm.slane %v4687_v61, 1  ;;  %v545_v52 = vperm.slane %v4738_v41, 0 }
  0x46   :  { %258 = vmatpush.msrb.mxu1 %v4518_v55  ;;  %239 = vmatmul.f32.vlgmr.msrb.gmra.mxu0 %v219_v7  ;;  %v1030_v55 = vperm.slane %v3753_v43, 3 }
  0x47   :  { %259 = vmatmul.f32.vlgmr.msrb.gmra.mxu1 %v220_v8  ;;  %320 = vmatpush.msra.mxu0 %v132_v9 }
  0x48   :  { %340 = vmatpush.msra.mxu1 %v133_v10  ;;  %380 = vmatpush.msra.mxu3 %v135_v12 }
  0x49   :  { %321 = vmatpush.msra.mxu0 %v128_v13  ;;  %361 = vmatpush.msra.mxu2 %v130_v15 }
  0x4a   :  { %341 = vmatpush.msra.mxu1 %v129_v14  ;;  %381 = vmatpush.msra.mxu3 %v131_v16 }
  0x4b   :  { %322 = vmatpush.msra.mxu0 %v124_v17  ;;  %362 = vmatpush.msra.mxu2 %v126_v19 }
  0x4c   :  { %342 = vmatpush.msra.mxu1 %v125_v18  ;;  %382 = vmatpush.msra.mxu3 %v127_v20 }
  0x4d   :  { %323 = vmatpush.msra.mxu0 %v120_v21  ;;  %363 = vmatpush.msra.mxu2 %v122_v23 }
  0x4e   :  { %343 = vmatpush.msra.mxu1 %v121_v22  ;;  %383 = vmatpush.msra.mxu3 %v123_v24 }
  0x4f   :  { %403 = vmatpush.msrb.mxu0 %v132_v9  ;;  %443 = vmatpush.msrb.mxu2 %v134_v11  ;;  %v4696_v9 = vld [vmem:[%s6247_s3 + $0x18] sm:$0xf] }
  0x50   :  { %423 = vmatpush.msrb.mxu1 %v133_v10  ;;  %463 = vmatpush.msrb.mxu3 %v135_v12 }
  0x51   :  { %404 = vmatpush.msrb.mxu0 %v128_v13  ;;  %444 = vmatpush.msrb.mxu2 %v130_v15  ;;  %v1027_v15 = vperm.slane %v3753_v43, 0 }
  0x52   :  { %424 = vmatpush.msrb.mxu1 %v129_v14  ;;  %464 = vmatpush.msrb.mxu3 %v131_v16  ;;  %v1436_v14 = vperm.slane %v4687_v61, 3 }
  0x53   :  { %405 = vmatpush.msrb.mxu0 %v124_v17  ;;  %445 = vmatpush.msrb.mxu2 %v126_v19 }
  0x54   :  { %425 = vmatpush.msrb.mxu1 %v125_v18  ;;  %465 = vmatpush.msrb.mxu3 %v127_v20  ;;  %v1580_v18 = vperm.slane %v4696_v9, 1 }
  0x55   :  { %406 = vmatpush.msrb.mxu0 %v120_v21  ;;  %446 = vmatpush.msrb.mxu2 %v122_v23 }
  0x56   :  { %426 = vmatpush.msrb.mxu1 %v121_v22  ;;  %466 = vmatpush.msrb.mxu3 %v123_v24 }
  0x57   :  { %887 = vrot.lane.b32.xlu1 %v882_v42, %s4048_s0  ;;  %889 = vrot.lane.b32.xlu2 %v883_v44, %s4048_s0 }
  0x58   :  { %1033 = vrot.lane.b32.xlu0 %v1028_v46, %s4049_s25 }
  0x5f   :  { %1035 = vrot.lane.b32.xlu1 %v1029_v45, %s4049_s25  ;;  %891 = vrot.lane.b32.xlu2 %v884_v47, %s4048_s0 }
  0x60   :  { %1181 = vrot.lane.b32.xlu0 %v1175_v53, %s4050_s28 }
  0x67   :  { %885 = vrot.lane.b32.xlu1 %v881_v49, %s4048_s0  ;;  %1037 = vrot.lane.b32.xlu2 %v1030_v55, %s4049_s25 }
  0x68   :  { %1177 = vrot.lane.b32.xlu0 %v1173_v2, %s4050_s28  ;;  %v546_v2 = vperm.slane %v4738_v41, 1 }
  0x6f   :  { %1183 = vrot.lane.b32.xlu1 %v1176_v56, %s4050_s28  ;;  %1179 = vrot.lane.b32.xlu2 %v1174_v3, %s4050_s28  ;;  %s4058_s28 = smov 126  }
  0x70   :  { %1443 = vrot.lane.b32.xlu0 %v1436_v14, %s4051_s13 }
  0x77   :  { %1439 = vrot.lane.b32.xlu1 %v1434_v6, %s4051_s13  ;;  %1031 = vrot.lane.b32.xlu2 %v1027_v15, %s4049_s25 }
  0x7f   :  { %1585 = vrot.lane.b32.xlu1 %v1580_v18, %s4052_s16 }
  0xba   :  { %v155_v25 = vpop.f32.mrf.mxu0 }
  0xbb   :  { %v175_v26 = vpop.f32.mrf.mxu1 }
  0xbc   :  { %v176_v27 = vadd.f32 %v175_v26, %v155_v25  ;;  %v195_v28 = vpop.f32.mrf.mxu2  ;;  %v4718_v25 = vld [vmem:[%s6247_s3 + $0x1c] sm:$0xf] }
  0xbe   :  { %v196_v29 = vadd.f32 %v195_v28, %v176_v27  ;;  %v215_v30 = vpop.f32.mrf.mxu3  ;;  %v1582_v28 = vperm.slane %v4696_v9, 3 }
  0xc0   :  { %v216_v31 = vadd.f32 %v215_v30, %v196_v29  ;;  %v1435_v29 = vperm.slane %v4687_v61, 2  ;;  %1589 = vrot.lane.b32.xlu0 %v1582_v28, %s4052_s16 }
  0xc2   :  { %v218_v32 = vmul.f32 0.0625, %v216_v31  ;;  %v1727_v31 = vperm.slane %v4718_v25, 3  ;;  %1441 = vrot.lane.b32.xlu2 %v1435_v29, %s4051_s13 }
  0xc3   :  { %v240_v33 = vpop.f32.mrf.mxu0 }
  0xc4   :  { %v260_v34 = vpop.f32.mrf.mxu1  ;;  %3723 = vmatmul.msk.f32.vlgmr.msra.gmra.mxu0 %vm304_vm0, %v218_v32  ;;  %3724 = vmatmul.msk.f32.vlgmr.msra.gmra.mxu1 %vm304_vm0, %v218_v32 }
  0xc5   :  { %v261_v35 = vadd.f32 %v260_v34, %v240_v33  ;;  %3725 = vmatmul.msk.f32.vlgmr.msra.gmra.mxu2 %vm304_vm0, %v218_v32  ;;  %3726 = vmatmul.msk.f32.vlgmr.msra.gmra.mxu3 %vm304_vm0, %v218_v32  ;;  %v280_v36 = vpop.f32.mrf.mxu2  ;;  %v4726_v33 = vld [vmem:[%s6248_s4] sm:$0xf] }
  0xc6   :  { %1734 = vrot.lane.b32.xlu1 %v1727_v31, %s4053_s22  ;;  %v533_v44 = vperm.slane %v4726_v33, 1  ;;  %v532_v47 = vperm.slane %v4726_v33, 0 }
  0xc7   :  { %v281_v37 = vadd.f32 %v280_v36, %v261_v35 }
  0xc8   :  { %v300_v38 = vpop.f32.mrf.mxu3 }
  0xc9   :  { %v301_v39 = vadd.f32 %v300_v38, %v281_v37 }
  0xcb   :  { %v303_v40 = vmul.f32 0.0625, %v301_v39 }
  0xcd   :  { %3727 = vmatmul.msk.f32.vlgmr.msrb.gmra.mxu0 %vm304_vm0, %v303_v40  ;;  %3728 = vmatmul.msk.f32.vlgmr.msrb.gmra.mxu1 %vm304_vm0, %v303_v40 }
  0xce   :  { %3729 = vmatmul.msk.f32.vlgmr.msrb.gmra.mxu2 %vm304_vm0, %v303_v40  ;;  %3730 = vmatmul.msk.f32.vlgmr.msrb.gmra.mxu3 %vm304_vm0, %v303_v40 }
 0x141   :  { %v4668_v50 = vpop.f32.mrf.mxu0  ;;  %v4670_v51 = vpop.f32.mrf.mxu1 }
 0x142   :  { %v471_v59 = vmul.f32 %v4668_v50, %v4668_v50  ;;  %v472_v60 = vmul.f32 %v4670_v51, %v4670_v51  ;;  %v479_v35 = vsub.f32 %v4504_v48, %v4668_v50  ;;  %v480_v38 = vsub.f32 %v4506_v54, %v4670_v51  ;;  %v5489_v48 = vld [vmem:[%s6244_s1 + $0x148] sm:$0xff]  ;;  %v5495_v54 = vld [vmem:[%s6244_s1 + $0xb8] sm:$0xff] }
 0x143   :  { %v1433_v51 = vperm.slane %v4687_v61, 0 }
 0x145   :  { %1437 = vrot.lane.b32.xlu0 %v1433_v51, %s4051_s13  ;;  %s4061_s13 = smov 96  }
 0x148   :  { %v4676_v57 = vpop.f32.mrf.mxu2  ;;  %v4678_v58 = vpop.f32.mrf.mxu3 }
 0x149   :  { %v473_v10 = vmul.f32 %v4676_v57, %v4676_v57  ;;  %v474_v11 = vmul.f32 %v4678_v58, %v4678_v58  ;;  %v481_v61 = vsub.f32 %v4564_v0, %v4676_v57  ;;  %v482_v0 = vsub.f32 %v4570_v1, %v4678_v58 }
 0x14a   :  { %v408_v62 = vpop.f32.mrf.mxu0  ;;  %v428_v63 = vpop.f32.mrf.mxu1  ;;  %v548_v58 = vperm.slane %v4738_v41, 3 }
 0x14b   :  { %v475_v4 = vsub.f32 %v408_v62, %v471_v59  ;;  %v476_v5 = vsub.f32 %v428_v63, %v472_v60  ;;  %v1581_v59 = vperm.slane %v4696_v9, 2  ;;  %v1579_v63 = vperm.slane %v4696_v9, 0 }
 0x14d   :  { %v483_v7 = vadd.f32 1e-05, %v475_v4  ;;  %v4690_v8 = vadd.f32 1e-05, %v476_v5  ;;  %1587 = vrot.lane.b32.xlu2 %v1581_v59, %s4052_s16  ;;  %1583 = vrot.lane.b32.xlu1 %v1579_v63, %s4052_s16 }
 0x14f   :  { %3934 = vrsqrt.f32 %v483_v7  ;;  %vm493_vm3 = vweird.f32 %v483_v7  ;;  %vm503_vm5 = vweird.f32 %v4690_v8 }
 0x150   :  { %3936 = vrsqrt.f32 %v4690_v8 }
 0x151   :  { %v448_v12 = vpop.f32.mrf.mxu2  ;;  %v468_v13 = vpop.f32.mrf.mxu3 }
 0x152   :  { %v477_v16 = vsub.f32 %v448_v12, %v473_v10  ;;  %v478_v17 = vsub.f32 %v468_v13, %v474_v11  ;;  %v534_v11 = vperm.slane %v4726_v33, 2  ;;  %v4770_v12 = vld [vmem:[%s6247_s3 + $0x20] sm:$0xf]  ;;  %v535_v13 = vperm.slane %v4726_v33, 3 }
 0x154   :  { %v4705_v19 = vadd.f32 1e-05, %v477_v16  ;;  %v4707_v20 = vadd.f32 1e-05, %v478_v17  ;;  %v1726_v17 = vperm.slane %v4718_v25, 2 }
 0x155   :  { %v3935_v21 = vpop.eup %3934 }
 0x156   :  { %v3937_v22 = vpop.eup %3936  ;;  %v488_v23 = vmul.f32 %v3935_v21, %v483_v7  ;;  %3938 = vrsqrt.f32 %v4705_v19  ;;  %vm494_vm1 = vweird.f32 %v3935_v21  ;;  %vm513_vm9 = vweird.f32 %v4705_v19  ;;  %1732 = vrot.lane.b32.xlu0 %v1726_v17, %s4053_s22 }
 0x157   :  { %v498_v24 = vmul.f32 %v3937_v22, %v4690_v8  ;;  %3940 = vrsqrt.f32 %v4707_v20  ;;  %vm504_vm2 = vweird.f32 %v3937_v22  ;;  %vm495_vm4 = vmor %vm493_vm3, %vm494_vm1  ;;  %vm523_vm11 = vweird.f32 %v4707_v20 }
 0x158   :  { %v489_v26 = vmul.f32 %v3935_v21, %v488_v23  ;;  %vm505_vm6 = vmor %vm503_vm5, %vm504_vm2 }
 0x159   :  { %v499_v27 = vmul.f32 %v3937_v22, %v498_v24 }
 0x15a   :  { %v490_v30 = vmul.f32 0.5, %v489_v26 }
 0x15b   :  { %v500_v32 = vmul.f32 0.5, %v499_v27 }
 0x15c   :  { %v3939_v34 = vpop.eup %3938  ;;  %v491_v36 = vsub.f32 1.5, %v490_v30 }
 0x15d   :  { %v3941_v37 = vpop.eup %3940  ;;  %v501_v39 = vsub.f32 1.5, %v500_v32  ;;  %v508_v40 = vmul.f32 %v3939_v34, %v4705_v19  ;;  %vm514_vm7 = vweird.f32 %v3939_v34 }
 0x15e   :  { %v492_v42 = vmul.f32 %v3935_v21, %v491_v36  ;;  %v518_v43 = vmul.f32 %v3941_v37, %v4707_v20  ;;  %vm524_vm8 = vweird.f32 %v3941_v37  ;;  %vm515_vm10 = vmor %vm513_vm9, %vm514_vm7  ;;  %v547_v20 = vperm.slane %v4738_v41, 2 }
 0x15f   :  { %v502_v45 = vmul.f32 %v3937_v22, %v501_v39  ;;  %v509_v46 = vmul.f32 %v3939_v34, %v508_v40  ;;  %vm525_vm12 = vmor %vm523_vm11, %vm524_vm8  ;;  %v1872_v39 = vperm.slane %v4770_v12, 2 }
 0x160   :  { %v496_v49 = vsel %vm495_vm4, %v3935_v21, %v492_v42  ;;  %v519_v50 = vmul.f32 %v3941_v37, %v518_v43  ;;  %v1873_v21 = vperm.slane %v4770_v12, 3 }
 0x161   :  { %v527_v53 = vmul.f32 %v496_v49, %v479_v35  ;;  %v506_v55 = vsel %vm505_vm6, %v3937_v22, %v502_v45  ;;  %v510_v56 = vmul.f32 0.5, %v509_v46  ;;  %1878 = vrot.lane.b32.xlu0 %v1872_v39, %s4054_s23 }
 0x162   :  { %v528_v60 = vmul.f32 %v506_v55, %v480_v38  ;;  %v520_v62 = vmul.f32 0.5, %v519_v50  ;;  %1880 = vrot.lane.b32.xlu1 %v1873_v21, %s4054_s23 }
 0x163   :  { %v511_v3 = vsub.f32 1.5, %v510_v56  ;;  %v540_v4 = vmul.f32 %v532_v47, %v527_v53 }
 0x164   :  { %v521_v5 = vsub.f32 1.5, %v520_v62  ;;  %v541_v6 = vmul.f32 %v533_v44, %v528_v60 }
 0x165   :  { %v512_v7 = vmul.f32 %v3939_v34, %v511_v3  ;;  %v4757_v8 = vadd.f32 %v545_v52, %v540_v4 }
 0x166   :  { %v522_v9 = vmul.f32 %v3941_v37, %v521_v5  ;;  %v4761_v10 = vadd.f32 %v546_v2, %v541_v6 }
 0x167   :  { %v516_v57 = vsel %vm515_vm10, %v3939_v34, %v512_v7  ;;  %v4774_v14 = vmul.f32 0.70710677, %v4757_v8 }
 0x168   :  { %v529_v15 = vmul.f32 %v516_v57, %v481_v61  ;;  %v526_v16 = vsel %vm525_vm12, %v3941_v37, %v522_v9  ;;  %v4778_v18 = vmul.f32 0.70710677, %v4761_v10 }
 0x169   :  { %v530_v1 = vmul.f32 %v526_v16, %v482_v0  ;;  %v565_v19 = vmul.f32 %v4774_v14, %v4774_v14 }
 0x16a   :  { %v605_v22 = vmul.f32 %v4778_v18, %v4778_v18  ;;  %v542_v23 = vmul.f32 %v534_v11, %v529_v15 }
 0x16b   :  { %v543_v24 = vmul.f32 %v535_v13, %v530_v1  ;;  %v4787_v26 = vmin.f32 %v565_v19, 16.0 }
 0x16c   :  { %v4789_v27 = vmin.f32 %v605_v22, 16.0  ;;  %v4796_v31 = vadd.f32 %v547_v20, %v542_v23 }
 0x16d   :  { %v4792_v28 = vadd.f32 %v548_v58, %v543_v24  ;;  %v567_v29 = vmul.f32 2.1237322e-06, %v4787_v26  ;;  %v578_v30 = vmul.f32 3.8918573e-05, %v4787_v26 }
 0x16e   :  { %v607_v32 = vmul.f32 2.1237322e-06, %v4789_v27  ;;  %v618_v33 = vmul.f32 3.8918573e-05, %v4789_v27  ;;  %v4809_v42 = vmul.f32 0.70710677, %v4796_v31 }
 0x16f   :  { %v4802_v34 = vmul.f32 0.70710677, %v4792_v28  ;;  %v568_v35 = vadd.f32 0.00028619796, %v567_v29  ;;  %v579_v38 = vadd.f32 0.001143296, %v578_v30 }
 0x170   :  { %v608_v36 = vadd.f32 0.00028619796, %v607_v32  ;;  %v619_v37 = vadd.f32 0.001143296, %v618_v33  ;;  %v645_v49 = vmul.f32 %v4809_v42, %v4809_v42 }
 0x171   :  { %v685_v40 = vmul.f32 %v4802_v34, %v4802_v34  ;;  %v569_v41 = vmul.f32 %v568_v35, %v4787_v26  ;;  %v580_v45 = vmul.f32 %v579_v38, %v4787_v26 }
 0x172   :  { %v609_v43 = vmul.f32 %v608_v36, %v4789_v27  ;;  %v620_v44 = vmul.f32 %v619_v37, %v4789_v27  ;;  %v4825_v63 = vmin.f32 %v645_v49, 16.0 }
 0x173   :  { %v4814_v46 = vmin.f32 %v685_v40, 16.0  ;;  %v570_v47 = vadd.f32 0.0036580483, %v569_v41  ;;  %v581_v52 = vadd.f32 0.014752088, %v580_v45 }
 0x174   :  { %v610_v50 = vadd.f32 0.0036580483, %v609_v43  ;;  %v621_v51 = vadd.f32 0.014752088, %v620_v44  ;;  %v658_v13 = vmul.f32 3.8918573e-05, %v4825_v63 }
 0x175   :  { %v687_v53 = vmul.f32 2.1237322e-06, %v4814_v46  ;;  %v698_v55 = vmul.f32 3.8918573e-05, %v4814_v46  ;;  %v571_v56 = vmul.f32 %v570_v47, %v4787_v26  ;;  %v582_v62 = vmul.f32 %v581_v52, %v4787_v26 }
 0x176   :  { %v611_v59 = vmul.f32 %v610_v50, %v4789_v27  ;;  %v622_v60 = vmul.f32 %v621_v51, %v4789_v27  ;;  %v647_v1 = vmul.f32 2.1237322e-06, %v4825_v63  ;;  %v659_v29 = vadd.f32 0.001143296, %v658_v13 }
 0x177   :  { %v688_v2 = vadd.f32 0.00028619796, %v687_v53  ;;  %v699_v3 = vadd.f32 0.001143296, %v698_v55  ;;  %v572_v4 = vadd.f32 0.05243302, %v571_v56 }
 0x178   :  { %v612_v5 = vadd.f32 0.05243302, %v611_v59  ;;  %v623_v6 = vadd.f32 0.112945676, %v622_v60  ;;  %v583_v61 = vadd.f32 0.112945676, %v582_v62  ;;  %v660_v40 = vmul.f32 %v659_v29, %v4825_v63 }
 0x179   :  { %v689_v7 = vmul.f32 %v688_v2, %v4814_v46  ;;  %v700_v9 = vmul.f32 %v699_v3, %v4814_v46  ;;  %v573_v0 = vmul.f32 %v572_v4, %v4787_v26  ;;  %v648_v33 = vadd.f32 0.00028619796, %v647_v1 }
 0x17a   :  { %v624_v11 = vmul.f32 %v623_v6, %v4789_v27  ;;  %v584_v57 = vmul.f32 %v583_v61, %v4787_v26  ;;  %v613_v15 = vmul.f32 %v612_v5, %v4789_v27  ;;  %v1725_v44 = vperm.slane %v4718_v25, 1 }
 0x17b   :  { %v690_v16 = vadd.f32 0.0036580483, %v689_v7  ;;  %v701_v17 = vadd.f32 0.014752088, %v700_v9  ;;  %v574_v23 = vadd.f32 0.18741608, %v573_v0  ;;  %v649_v45 = vmul.f32 %v648_v33, %v4825_v63 }
 0x17c   :  { %v625_v58 = vadd.f32 0.4994258, %v624_v11  ;;  %v585_v19 = vadd.f32 0.4994258, %v584_v57  ;;  %v614_v30 = vadd.f32 0.18741608, %v613_v15  ;;  %1730 = vrot.lane.b32.xlu2 %v1725_v44, %s4053_s22 }
 0x17d   :  { %v691_v20 = vmul.f32 %v690_v16, %v4814_v46  ;;  %v702_v21 = vmul.f32 %v701_v17, %v4814_v46  ;;  %v575_v39 = vmul.f32 %v574_v23, %v4787_v26  ;;  %v661_v51 = vadd.f32 0.014752088, %v660_v40 }
 0x17e   :  { %v626_v22 = vmul.f32 %v625_v58, %v4789_v27  ;;  %v586_v24 = vmul.f32 %v585_v19, %v4787_v26  ;;  %v615_v41 = vmul.f32 %v614_v30, %v4789_v27  ;;  %v650_v53 = vadd.f32 0.0036580483, %v649_v45 }
 0x17f   :  { %v703_v32 = vadd.f32 0.112945676, %v702_v21  ;;  %v692_v36 = vadd.f32 0.05243302, %v691_v20  ;;  %v576_v50 = vadd.f32 1.1283791, %v575_v39  ;;  %v662_v56 = vmul.f32 %v661_v51, %v4825_v63 }
 0x180   :  { %v627_v35 = vadd.f32 1.0, %v626_v22  ;;  %v587_v37 = vadd.f32 1.0, %v586_v24  ;;  %v616_v52 = vadd.f32 1.1283791, %v615_v41  ;;  %v1871_v3 = vperm.slane %v4770_v12, 1 }
 0x181   :  { %v704_v38 = vmul.f32 %v703_v32, %v4814_v46  ;;  %v693_v47 = vmul.f32 %v692_v36, %v4814_v46  ;;  %v577_v2 = vmul.f32 %v576_v50, %v4774_v14  ;;  %v651_v61 = vmul.f32 %v650_v53, %v4825_v63 }
 0x182   :  { %3942 = vrcp.f32 %v627_v35  ;;  %v637_v62 = vand.u32 2147483647, %v627_v35  ;;  %v617_v4 = vmul.f32 %v616_v52, %v4778_v18  ;;  %v639_v7 = vand.u32 2147483648, %v627_v35 }
 0x183   :  { %v705_v43 = vadd.f32 0.4994258, %v704_v38  ;;  %3944 = vrcp.f32 %v587_v37  ;;  %v694_v27 = vadd.f32 0.18741608, %v693_v47  ;;  %v597_v11 = vand.u32 2147483647, %v587_v37 }
 0x184   :  { %v663_v0 = vadd.f32 0.112945676, %v662_v56  ;;  %v599_v15 = vand.u32 2147483648, %v587_v37  ;;  %1876 = vrot.lane.b32.xlu2 %v1871_v3, %s4054_s23  ;;  %vm633_vm14 = vweird.f32 %v627_v35  ;;  %vm4858_vm15 = vcmp.eq.f32.partialorder %v637_v62, 8.507059e+37 }
 0x185   :  { %v706_v49 = vmul.f32 %v705_v43, %v4814_v46  ;;  %v695_v9 = vmul.f32 %v694_v27, %v4814_v46  ;;  %vm593_vm1 = vweird.f32 %v587_v37  ;;  %v652_v46 = vadd.f32 0.05243302, %v651_v61 }
 0x186   :  { %v664_v18 = vmul.f32 %v663_v0, %v4825_v63  ;;  %v640_v58 = vor.u32 1.1754944e-38, %v639_v7  ;;  %vm4864_vm4 = vcmp.eq.f32.partialorder %v597_v11, 8.507059e+37  ;;  %v600_v29 = vor.u32 1.1754944e-38, %v599_v15 }
 0x187   :  { %v4848_v26 = vadd.f32 1.0, %v706_v49  ;;  %v696_v23 = vadd.f32 1.1283791, %v695_v9  ;;  %v653_v40 = vmul.f32 %v652_v46, %v4825_v63  ;;  %v1724_v14 = vperm.slane %v4718_v25, 0 }
 0x188   :  { %v3943_v55 = vpop.eup %3942  ;;  %v665_v21 = vadd.f32 0.4994258, %v664_v18 }
 0x189   :  { %v629_v59 = vmul.f32 %v3943_v55, %v627_v35  ;;  %3946 = vrcp.f32 %v4848_v26  ;;  %v3945_v60 = vpop.eup %3944  ;;  %vm634_vm13 = vweird.f32 %v3943_v55  ;;  %v717_v33 = vand.u32 2147483647, %v4848_v26 }
 0x18a   :  { %v589_v6 = vmul.f32 %v3945_v60, %v587_v37  ;;  %vm594_vm2 = vweird.f32 %v3945_v60  ;;  %vm635_vm3 = vmor %vm633_vm14, %vm634_vm13  ;;  %v666_v35 = vmul.f32 %v665_v21, %v4825_v63  ;;  %v719_v38 = vand.u32 2147483648, %v4848_v26  ;;  %v1034_v21 = vpop.permute.xlu0 %1033 }
 0x18b   :  { %v630_v5 = vsub.f32 1.0, %v629_v59  ;;  %vm595_vm5 = vmor %vm593_vm1, %vm594_vm2  ;;  %vm713_vm7 = vweird.f32 %v4848_v26  ;;  %v558_v37 = vmul.f32 0.5, %v4761_v10  ;;  %v697_v52 = vmul.f32 %v696_v23, %v4802_v34 }
 0x18c   :  { %v590_v13 = vsub.f32 1.0, %v589_v6  ;;  %v667_v44 = vadd.f32 1.0, %v666_v35  ;;  %v720_v51 = vor.u32 1.1754944e-38, %v719_v38  ;;  %vm718_vm9 = vcmp.eq.f32.partialorder %v717_v33, 8.507059e+37 }
 0x18d   :  { %v631_v57 = vmul.f32 %v3943_v55, %v630_v5  ;;  %v557_v34 = vmul.f32 0.5, %v4757_v8  ;;  %vm1039_vm14 = vcmask 15360   ;;  %vm745_vm1 = vcmask 138240  }
 0x18e   :  { %v591_v1 = vmul.f32 %v3945_v60, %v590_v13  ;;  %3948 = vrcp.f32 %v667_v44  ;;  %v679_v9 = vand.u32 2147483648, %v667_v44  ;;  %vm673_vm11 = vweird.f32 %v667_v44 }
 0x18f   :  { %v3947_v16 = vpop.eup %3946  ;;  %v632_v17 = vadd.f32 %v3943_v55, %v631_v57  ;;  %v677_v57 = vand.u32 2147483647, %v667_v44  ;;  %vm781_vm2 = vcmask 1043456  }
 0x190   :  { %v709_v19 = vmul.f32 %v3947_v16, %v4848_v26  ;;  %v592_v24 = vadd.f32 %v3945_v60, %v591_v1  ;;  %vm714_vm6 = vweird.f32 %v3947_v16  ;;  %v680_v13 = vor.u32 1.1754944e-38, %v679_v9 }
 0x191   :  { %v636_v22 = vsel %vm635_vm3, %v3943_v55, %v632_v17  ;;  %vm715_vm8 = vmor %vm713_vm7, %vm714_vm6  ;;  %v654_v55 = vadd.f32 0.18741608, %v653_v40  ;;  %vm678_vm13 = vcmp.eq.f32.partialorder %v677_v57, 8.507059e+37  ;;  %v559_v1 = vmul.f32 0.5, %v4796_v31 }
 0x192   :  { %v641_v30 = vsel %vm4858_vm15, %v640_v58, %v636_v22  ;;  %v710_v32 = vsub.f32 1.0, %v709_v19  ;;  %v596_v39 = vsel %vm595_vm5, %v3945_v60, %v592_v24  ;;  %v1870_v19 = vperm.slane %v4770_v12, 0 }
 0x193   :  { %v642_v36 = vmul.f32 %v641_v30, %v617_v4  ;;  %v601_v43 = vsel %vm4864_vm4, %v600_v29, %v596_v39  ;;  %v560_v4 = vmul.f32 0.5, %v4792_v28  ;;  %v4886_v28 = vpop.permute.xlu1 %887  ;;  %vm893_vm15 = vcmask 7168  }
 0x194   :  { %v711_v41 = vmul.f32 %v3947_v16, %v710_v32  ;;  %v602_v47 = vmul.f32 %v601_v43, %v577_v2  ;;  %v3949_v62 = vpop.eup %3948  ;;  %v655_v2 = vmul.f32 %v654_v55, %v4825_v63  ;;  %v4917_v32 = vpop.permute.xlu2 %889  ;;  %vm1185_vm3 = vcmask 130048  }
 0x195   :  { %v3732_v45 = vclamps-f32 %v642_v36, 1.0  ;;  %v669_v3 = vmul.f32 %v3949_v62, %v667_v44  ;;  %vm674_vm10 = vweird.f32 %v3949_v62  ;;  %v4936_v44 = vld [vmem:[%s6247_s3] sm:$0xf]  ;;  %s4056_s3 = smov 111   ;;  %v5004_v9 = vsel %vm893_vm15, %v4886_v28, %v4917_v32 }
 0x196   :  { %v712_v49 = vadd.f32 %v3947_v16, %v711_v41  ;;  %v3731_v59 = vclamps-f32 %v602_v47, 1.0  ;;  %v656_v7 = vadd.f32 1.1283791, %v655_v2  ;;  %vm675_vm12 = vmor %vm673_vm11, %vm674_vm10  ;;  %6320 = vst [vmem:[#allocation14_spill] sm:$0xff] %v5004_v9  ;;  %vm1445_vm4 = vcmask 146432  }
 0x197   :  { %v726_v50 = vadd.f32 1.0, %v3732_v45  ;;  %v670_v6 = vsub.f32 1.0, %v669_v3  ;;  %v6261_v3 = vperm.slane %v4936_v44, 2  ;;  %vm1736_vm5 = vcmask 269312  }
 0x198   :  { %v716_v53 = vsel %vm715_vm8, %v3947_v16, %v712_v49  ;;  %v725_v10 = vadd.f32 1.0, %v3731_v59  ;;  %v657_v8 = vmul.f32 %v656_v7, %v4809_v42  ;;  %v4901_v42 = vpop.permute.xlu0 %1181  ;;  %v6263_v49 = vperm.slane %v4936_v44, 0 }
 0x199   :  { %v730_v27 = vmul.f32 %v726_v50, %v558_v37  ;;  %v721_v56 = vsel %vm718_vm9, %v720_v51, %v716_v53  ;;  %v671_v0 = vmul.f32 %v3949_v62, %v670_v6  ;;  %v6262_v37 = vperm.slane %v4936_v44, 1 }
 0x19a   :  { %v722_v60 = vmul.f32 %v721_v56, %v697_v52  ;;  %v729_v11 = vmul.f32 %v725_v10, %v557_v34  ;;  %vm1882_vm6 = vcmask 277504   ;;  %vm777_vm7 = vcmask 31744  }
 0x19b   :  { %739 = vrot.lane.b32.xlu0 %v730_v27, %s4055_s24  ;;  %v672_v63 = vadd.f32 %v3949_v62, %v671_v0  ;;  %v4893_v20 = vpop.permute.xlu1 %1035  ;;  %vm924_vm8 = vcmask 1039360   ;;  %vm1070_vm9 = vcmask 1031168   ;;  %vm1216_vm10 = vcmask 916480  }
 0x19c   :  { %v3734_v26 = vclamps-f32 %v722_v60, 1.0  ;;  %v4898_v25 = vsel %vm1039_vm14, %v1034_v21, %v4893_v20  ;;  %v4923_v36 = vpop.permute.xlu2 %891  ;;  %vm1330_vm11 = vcmask 908288  }
 0x19d   :  { %v676_v15 = vsel %vm675_vm12, %v3949_v62, %v672_v63  ;;  %6310 = vst [vmem:[#allocation2_spill] sm:$0xff] %v4898_v25  ;;  %vm1476_vm12 = vcmask 900096  }
 0x19e   :  { %v728_v5 = vadd.f32 1.0, %v3734_v26  ;;  %v681_v18 = vsel %vm678_vm13, %v680_v13, %v676_v15  ;;  %6315 = vst [vmem:[#allocation9_spill] sm:$0xff] %v4923_v36  ;;  %vm6297_vm13 = vcmask 785408  }
 0x19f   :  { %v682_v16 = vmul.f32 %v681_v18, %v657_v8 }
 0x1a0   :  { %v732_v61 = vmul.f32 %v728_v5, %v560_v4  ;;  %v4903_v22 = vpop.permute.xlu0 %1177  ;;  %v6260_v4 = vperm.slane %v4936_v44, 3 }
 0x1a1   :  { %v3733_v17 = vclamps-f32 %v682_v16, 1.0 }
 0x1a2   :  { %743 = vrot.lane.b32.xlu1 %v732_v61, %s4055_s24 }
 0x1a3   :  { %737 = vrot.lane.b32.xlu0 %v729_v11, %s4055_s24  ;;  %v727_v46 = vadd.f32 1.0, %v3733_v17  ;;  %v4905_v31 = vpop.permute.xlu1 %885 }
 0x1a4   :  { %v4929_v40 = vpop.permute.xlu2 %1037  ;;  %v4947_v51 = vsel %vm893_vm15, %v4905_v31, %v4886_v28 }
 0x1a5   :  { %v731_v58 = vmul.f32 %v727_v46, %v559_v1  ;;  %6317 = vst [vmem:[#allocation11_spill] sm:$0xff] %v4929_v40  ;;  %v5050_v17 = vsel %vm1039_vm14, %v4893_v20, %v4929_v40 }
 0x1a6   :  { %6322 = vst [vmem:[#allocation16_spill] sm:$0xff] %v5050_v17 }
 0x1a8   :  { %v4907_v23 = vpop.permute.xlu0 %1443 }
 0x1a9   :  { %6311 = vst [vmem:[#allocation3_spill] sm:$0xff] %v4907_v23 }
 0x1aa   :  { %1728 = vrot.lane.b32.xlu1 %v1724_v14, %s4053_s22  ;;  %v5041_v14 = vsel %vm893_vm15, %v4917_v32, %v4923_v36  ;;  %vm6295_vm15 = vcmask 769024  }
 0x1ab   :  { %741 = vrot.lane.b32.xlu0 %v731_v58, %s4055_s24  ;;  %v4909_v12 = vpop.permute.xlu1 %1183  ;;  %6321 = vst [vmem:[#allocation15_spill] sm:$0xff] %v5041_v14 }
 0x1ac   :  { %6312 = vst [vmem:[#allocation4_spill] sm:$0xff] %v4909_v12  ;;  %v4938_v45 = vpop.permute.xlu2 %1179 }
 0x1ad   :  { %v5015_v57 = vsel %vm1185_vm3, %v4903_v22, %v4938_v45 }
 0x1b0   :  { %v4911_v24 = vpop.permute.xlu0 %1589 }
 0x1b1   :  { %6313 = vst [vmem:[#allocation7_spill] sm:$0xff] %v4911_v24 }
 0x1b2   :  { %1874 = vrot.lane.b32.xlu1 %v1870_v19, %s4054_s23 }
 0x1b3   :  { %v4913_v29 = vpop.permute.xlu1 %1439 }
 0x1b4   :  { %v4970_v59 = vpop.permute.xlu2 %1031 }
 0x1b5   :  { %v4976_v26 = vsel %vm1039_vm14, %v4970_v59, %v1034_v21  ;;  %v5069_v21 = vsel %vm1185_vm3, %v4901_v42, %v4909_v12  ;;  %vm6296_vm14 = vcmask 777216  }
 0x1b6   :  { %6324 = vst [vmem:[#allocation18_spill] sm:$0xff] %v5069_v21 }
 0x1b8   :  { %v4915_v30 = vpop.permute.xlu0 %1437 }
 0x1b9   :  { %6314 = vst [vmem:[#allocation8_spill] sm:$0xff] %v4915_v30  ;;  %v5060_v58 = vsel %vm1445_vm4, %v4915_v30, %v4913_v29 }
 0x1ba   :  { %6323 = vst [vmem:[#allocation17_spill] sm:$0xff] %v5060_v58 }
 0x1bb   :  { %v4919_v33 = vpop.permute.xlu1 %1585 }
 0x1bc   :  { %v1442_v46 = vpop.permute.xlu2 %1441 }
 0x1c3   :  { %v4925_v38 = vpop.permute.xlu1 %1734 }
 0x1c4   :  { %6316 = vst [vmem:[#allocation10_spill] sm:$0xff] %v4925_v38 }
 0x1c8   :  { %v4921_v35 = vpop.permute.xlu0 %1732 }
 0x1cb   :  { %v4931_v41 = vpop.permute.xlu1 %1583 }
 0x1cc   :  { %6318 = vst [vmem:[#allocation12_spill] sm:$0xff] %v4931_v41 }
 0x1d3   :  { %v4927_v39 = vpop.permute.xlu0 %1878 }
 0x1d4   :  { %v4940_v47 = vpop.permute.xlu1 %1880 }
 0x1d5   :  { %6319 = vst [vmem:[#allocation13_spill] sm:$0xff] %v4940_v47 }
 0x20d   :  { %v740_v43 = vpop.permute.xlu0 %739 }
 0x214   :  { %v744_v60 = vpop.permute.xlu1 %743 }
 0x215   :  { %v738_v50 = vpop.permute.xlu0 %737  ;;  %v4979_v2 = vsel %vm745_vm1, %v744_v60, 0.0 }
 0x216   :  { %v4950_v52 = vsel %vm745_vm1, %v738_v50, %v740_v43  ;;  %v4953_v53 = vsel %vm745_vm1, 0.0, %v738_v50  ;;  %v906_v28 = vmul.f32 %v4923_v36, %v4979_v2  ;;  %v1052_v15 = vmul.f32 %v4929_v40, %v4979_v2  ;;  %v5615_v40 = vld [vmem:[%s6244_s1 + $0x90] sm:$0xff]  ;;  %v5664_v36 = vld [vmem:[%s6244_s1 + $0x80] sm:$0xff] }
 0x217   :  { %1320 = vrot.lane.b32.xlu1 %v4953_v53, %s4056_s3  ;;  %1322 = vrot.lane.b32.xlu2 %v4950_v52, %s4056_s3  ;;  %v772_v55 = vmul.f32 %v6263_v49, %v4953_v53  ;;  %v903_v27 = vmul.f32 %v4947_v51, %v4950_v52  ;;  %v773_v56 = vmul.f32 %v6262_v37, %v4950_v52  ;;  %v5477_v37 = vld [vmem:[%s6244_s1 + $0x1e8] sm:$0xff]  ;;  %v5483_v49 = vld [vmem:[%s6244_s1 + $0x38] sm:$0xff] }
 0x218   :  { %v902_v62 = vmul.f32 %v4905_v31, %v4953_v53  ;;  %v1049_v10 = vmul.f32 %v4976_v26, %v4950_v52  ;;  %v1048_v11 = vmul.f32 %v4970_v59, %v4953_v53  ;;  %v1195_v63 = vmul.f32 %v5015_v57, %v4950_v52 }
 0x219   :  { %3735 = vmatpush.msk.msra.mxu0 %vm781_vm2, %v772_v55  ;;  %916 = vrot.lane.b32.xlu0 %v903_v27, %s4057_s27  ;;  %v1194_v13 = vmul.f32 %v4903_v22, %v4953_v53  ;;  %v1454_v8 = vmul.f32 %v4915_v30, %v4953_v53  ;;  %v1198_v16 = vmul.f32 %v4909_v12, %v4979_v2  ;;  %v5603_v12 = vld [vmem:[%s6244_s1 + $0x10] sm:$0xff] }
 0x21a   :  { %3737 = vmatpush.msk.msra.mxu1 %vm781_vm2, %v773_v56  ;;  %v1455_v20 = vmul.f32 %v5060_v58, %v4950_v52  ;;  %v5079_v50 = vsel %vm1185_vm3, %v4938_v45, %v4901_v42  ;;  %v5102_v45 = vsel %vm1736_vm5, %v4921_v35, %v4925_v38  ;;  %v5657_v30 = vld [vmem:[%s6244_s1 + $0x110] sm:$0xff]  ;;  %v5671_v58 = vld [vmem:[%s6244_s1 + $0x108] sm:$0xff] }
 0x21b   :  { %6325 = vst [vmem:[#allocation19_spill] sm:$0xff] %v5079_v50 }
 0x21c   :  { %6328 = vst [vmem:[#allocation22_spill] sm:$0xff] %v5102_v45 }
 0x21d   :  { %v742_v5 = vpop.permute.xlu0 %741 }
 0x21e   :  { %v4990_v34 = vsel %vm745_vm1, %v740_v43, %v742_v5  ;;  %v4993_v6 = vsel %vm745_vm1, %v742_v5, %v744_v60  ;;  %v1588_v43 = vpop.permute.xlu2 %1587  ;;  %v5092_v60 = vsel %vm304_vm0, %v4931_v41, %v4919_v33 }
 0x21f   :  { %1328 = vrot.lane.b32.xlu1 %v4979_v2, %s4056_s3  ;;  %914 = vrot.lane.b32.xlu2 %v902_v62, %s4057_s27  ;;  %v774_v61 = vmul.f32 %v6261_v3, %v4990_v34  ;;  %v775_v7 = vmul.f32 %v6260_v4, %v4993_v6  ;;  %v904_v0 = vmul.f32 %v5004_v9, %v4990_v34  ;;  %v5465_v4 = vld [vmem:[%s6244_s1 + $0x150] sm:$0xff]  ;;  %v5471_v3 = vld [vmem:[%s6244_s1 + $0xc0] sm:$0xff] }
 0x220   :  { %v905_v18 = vmul.f32 %v5041_v14, %v4993_v6  ;;  %v1051_v1 = vmul.f32 %v5050_v17, %v4993_v6  ;;  %v1050_v19 = vmul.f32 %v4898_v25, %v4990_v34  ;;  %v1197_v32 = vmul.f32 %v5069_v21, %v4993_v6  ;;  %6327 = vst [vmem:[#allocation21_spill] sm:$0xff] %v5092_v60  ;;  %v5621_v17 = vld [vmem:[%s6244_s1 + $0x1b8] sm:$0xff]  ;;  %v5639_v21 = vld [vmem:[%s6244_s1 + $0x88] sm:$0xff]  ;;  %v5645_v9 = vld [vmem:[%s6244_s1 + $0x1b0] sm:$0xff] }
 0x221   :  { %1062 = vrot.lane.b32.xlu0 %v1049_v10, %s4058_s28  ;;  %3739 = vmatpush.msk.msra.mxu2 %vm781_vm2, %v774_v61  ;;  %v5083_v55 = vsel %vm304_vm0, %v4919_v33, %v1588_v43  ;;  %v1196_v27 = vmul.f32 %v5079_v50, %v4990_v34  ;;  %v1600_v42 = vmul.f32 %v5092_v60, %v4950_v52  ;;  %v5597_v50 = vld [vmem:[%s6244_s1 + $0x1c0] sm:$0xff]  ;;  %v5627_v60 = vld [vmem:[%s6244_s1 + $0x8] sm:$0xff]  ;;  %v5633_v14 = vld [vmem:[%s6244_s1 + $0x118] sm:$0xff] }
 0x222   :  { %3741 = vmatpush.msk.msra.mxu3 %vm781_vm2, %v775_v7  ;;  %6326 = vst [vmem:[#allocation20_spill] sm:$0xff] %v5083_v55  ;;  %v1601_v56 = vmul.f32 %v5083_v55, %v4990_v34  ;;  %v1599_v33 = vmul.f32 %v4931_v41, %v4953_v53  ;;  %v1748_v62 = vmul.f32 %v5102_v45, %v4993_v6  ;;  %v5525_v45 = vld [vmem:[%s6244_s1 + $0x1d8] sm:$0xff]  ;;  %v5543_v55 = vld [vmem:[%s6244_s1 + $0xa8] sm:$0xff]  ;;  %v5651_v25 = vld [vmem:[%s6244_s1] sm:$0xff] }
 0x223   :  { %v5110_v10 = vsel %vm1445_vm4, %v1442_v46, %v4907_v23  ;;  %v5119_v61 = vsel %vm1445_vm4, %v4913_v29, %v1442_v46  ;;  %v5134_v29 = vsel %vm304_vm0, %v1588_v43, %v4911_v24  ;;  %v5585_v41 = vld [vmem:[%s6244_s1 + $0x128] sm:$0xff] }
 0x224   :  { %6329 = vst [vmem:[#allocation23_spill] sm:$0xff] %v5110_v10  ;;  %v1457_v5 = vmul.f32 %v5110_v10, %v4993_v6  ;;  %v1456_v7 = vmul.f32 %v5119_v61, %v4990_v34  ;;  %v5567_v10 = vld [vmem:[%s6244_s1 + $0xa0] sm:$0xff] }
 0x225   :  { %6330 = vst [vmem:[#allocation24_spill] sm:$0xff] %v5119_v61  ;;  %v5609_v61 = vld [vmem:[%s6244_s1 + $0x120] sm:$0xff] }
 0x226   :  { %6332 = vst [vmem:[#allocation26_spill] sm:$0xff] %v5134_v29 }
 0x227   :  { %1060 = vrot.lane.b32.xlu2 %v1048_v11, %s4058_s28  ;;  %918 = vrot.lane.b32.xlu1 %v904_v0, %s4057_s27  ;;  %v1749_v11 = vmul.f32 %v4925_v38, %v4979_v2  ;;  %v1731_v0 = vpop.permute.xlu2 %1730  ;;  %v5573_v38 = vld [vmem:[%s6244_s1 + $0x1c8] sm:$0xff] }
 0x229   :  { %1208 = vrot.lane.b32.xlu0 %v1195_v63, %s4059_s29  ;;  %v1458_v63 = vmul.f32 %v4907_v23, %v4979_v2  ;;  %v5561_v23 = vld [vmem:[%s6244_s1 + $0x130] sm:$0xff] }
 0x22f   :  { %1206 = vrot.lane.b32.xlu2 %v1194_v13, %s4059_s29  ;;  %922 = vrot.lane.b32.xlu1 %v906_v28, %s4057_s27  ;;  %v5129_v13 = vpop.permute.xlu1 %1728 }
 0x230   :  { %6331 = vst [vmem:[#allocation25_spill] sm:$0xff] %v5129_v13  ;;  %v1745_v28 = vmul.f32 %v5129_v13, %v4953_v53 }
 0x231   :  { %1466 = vrot.lane.b32.xlu0 %v1454_v8, %s4060_s30  ;;  %v1602_v8 = vmul.f32 %v5134_v29, %v4993_v6  ;;  %v5591_v29 = vld [vmem:[%s6244_s1 + $0x98] sm:$0xff] }
 0x237   :  { %1324 = vrot.lane.b32.xlu2 %v4990_v34, %s4056_s3  ;;  %1068 = vrot.lane.b32.xlu1 %v1052_v15, %s4058_s28  ;;  %v5142_v15 = vsel %vm1736_vm5, %v1731_v0, %v4921_v35  ;;  %v1603_v35 = vmul.f32 %v4911_v24, %v4979_v2  ;;  %v5549_v24 = vld [vmem:[%s6244_s1 + $0x1d0] sm:$0xff] }
 0x238   :  { %6333 = vst [vmem:[#allocation27_spill] sm:$0xff] %v5142_v15 }
 0x239   :  { %1326 = vrot.lane.b32.xlu0 %v4993_v6, %s4056_s3 }
 0x23f   :  { %920 = vrot.lane.b32.xlu2 %v905_v18, %s4057_s27  ;;  %1214 = vrot.lane.b32.xlu1 %v1198_v16, %s4059_s29  ;;  %v1747_v18 = vmul.f32 %v5142_v15, %v4990_v34  ;;  %v1877_v16 = vpop.permute.xlu2 %1876  ;;  %v5531_v15 = vld [vmem:[%s6244_s1 + $0x28] sm:$0xff] }
 0x240   :  { %v5176_v43 = vsel %vm1882_vm6, %v1877_v16, %v4927_v39 }
 0x241   :  { %1066 = vrot.lane.b32.xlu0 %v1051_v1, %s4058_s28  ;;  %v5149_v1 = vpop.permute.xlu1 %1874  ;;  %6336 = vst [vmem:[#allocation30_spill] sm:$0xff] %v5176_v43 }
 0x242   :  { %6334 = vst [vmem:[#allocation28_spill] sm:$0xff] %v5149_v1  ;;  %v1891_v46 = vmul.f32 %v5149_v1, %v4953_v53 }
 0x247   :  { %1064 = vrot.lane.b32.xlu2 %v1050_v19, %s4058_s28  ;;  %1468 = vrot.lane.b32.xlu1 %v1455_v20, %s4060_s30  ;;  %v776_v19 = vld [vmem:[%s6250_s8] sm:$0xf]  ;;  %v5161_v20 = vsel %vm1882_vm6, %v4927_v39, %v4940_v47 }
 0x248   :  { %6335 = vst [vmem:[#allocation29_spill] sm:$0xff] %v5161_v20  ;;  %3736 = vmatmul.msk.f32.vlgmr.msra.gmra.mxu0 %vm777_vm7, %v776_v19  ;;  %3738 = vmatmul.msk.f32.vlgmr.msra.gmra.mxu1 %vm777_vm7, %v776_v19  ;;  %v1894_v53 = vmul.f32 %v5161_v20, %v4993_v6  ;;  %v1895_v6 = vmul.f32 %v4940_v47, %v4979_v2  ;;  %v5513_v47 = vld [vmem:[%s6244_s1 + $0x140] sm:$0xff]  ;;  %v5519_v20 = vld [vmem:[%s6244_s1 + $0xb0] sm:$0xff] }
 0x249   :  { %1212 = vrot.lane.b32.xlu0 %v1197_v32, %s4059_s29  ;;  %3740 = vmatmul.msk.f32.vlgmr.msra.gmra.mxu2 %vm777_vm7, %v776_v19 }
 0x24a   :  { %3742 = vmatmul.msk.f32.vlgmr.msra.gmra.mxu3 %vm777_vm7, %v776_v19 }
 0x24f   :  { %1210 = vrot.lane.b32.xlu2 %v1196_v27, %s4059_s29  ;;  %1615 = vrot.lane.b32.xlu1 %v1601_v56, %s4061_s13  ;;  %v1893_v27 = vmul.f32 %v5176_v43, %v4990_v34  ;;  %v5193_v34 = vsel %vm1882_vm6, %v5149_v1, %v1877_v16  ;;  %v5501_v1 = vld [vmem:[%s6244_s1 + $0x1e0] sm:$0xff]  ;;  %v5537_v43 = vld [vmem:[%s6244_s1 + $0x138] sm:$0xff] }
 0x250   :  { %6338 = vst [vmem:[#allocation32_spill] sm:$0xff] %v5193_v34  ;;  %v1892_v2 = vmul.f32 %v5193_v34, %v4950_v52  ;;  %v5507_v34 = vld [vmem:[%s6244_s1 + $0x30] sm:$0xff] }
 0x251   :  { %1613 = vrot.lane.b32.xlu0 %v1600_v42, %s4061_s13  ;;  %v5186_v42 = vsel %vm1736_vm5, %v5129_v13, %v1731_v0  ;;  %v5555_v13 = vld [vmem:[%s6244_s1 + $0x20] sm:$0xff] }
 0x252   :  { %6337 = vst [vmem:[#allocation31_spill] sm:$0xff] %v5186_v42 }
 0x257   :  { %1611 = vrot.lane.b32.xlu2 %v1599_v33, %s4061_s13  ;;  %1763 = vrot.lane.b32.xlu1 %v1748_v62, %s4062_s14  ;;  %v1746_v33 = vmul.f32 %v5186_v42, %v4950_v52  ;;  %v5579_v42 = vld [vmem:[%s6244_s1 + $0x18] sm:$0xff] }
 0x259   :  { %1472 = vrot.lane.b32.xlu0 %v1457_v5, %s4060_s30 }
 0x25f   :  { %1470 = vrot.lane.b32.xlu2 %v1456_v7, %s4060_s30  ;;  %1765 = vrot.lane.b32.xlu1 %v1749_v11, %s4062_s14  ;;  %v3744_v11 = vld [vmem:[%s6250_s8 + $0x4] sm:$0xf] }
 0x261   :  { %1474 = vrot.lane.b32.xlu0 %v1458_v63, %s4060_s30 }
 0x267   :  { %1617 = vrot.lane.b32.xlu2 %v1602_v8, %s4061_s13  ;;  %1757 = vrot.lane.b32.xlu1 %v1745_v28, %s4062_s14  ;;  %v3754_v8 = vld [vmem:[%s6250_s8 + $0x8] sm:$0xf] }
 0x269   :  { %1761 = vrot.lane.b32.xlu0 %v1747_v18, %s4062_s14 }
 0x26f   :  { %1619 = vrot.lane.b32.xlu2 %v1603_v35, %s4061_s13  ;;  %1903 = vrot.lane.b32.xlu1 %v1891_v46, %s4063_s17 }
 0x271   :  { %v5171_v32 = vpop.permute.xlu2 %1322  ;;  %1909 = vrot.lane.b32.xlu0 %v1894_v53, %s4063_s17 }
 0x277   :  { %1907 = vrot.lane.b32.xlu2 %v1893_v27, %s4063_s17 }
 0x279   :  { %v915_v56 = vpop.permute.xlu2 %914  ;;  %1911 = vrot.lane.b32.xlu0 %v1895_v6, %s4063_s17  ;;  %v3764_v6 = vld [vmem:[%s6250_s8 + $0xc] sm:$0xf] }
 0x27f   :  { %1759 = vrot.lane.b32.xlu2 %v1746_v33, %s4062_s14 }
 0x281   :  { %v1061_v39 = vpop.permute.xlu2 %1060 }
 0x287   :  { %1905 = vrot.lane.b32.xlu2 %v1892_v2, %s4063_s17 }
 0x289   :  { %v1321_v62 = vpop.permute.xlu1 %1320  ;;  %v1207_v5 = vpop.permute.xlu2 %1206 }
 0x28a   :  { %v1331_v33 = vsel %vm1330_vm11, %v1321_v62, %v5171_v32 }
 0x28b   :  { %v917_v7 = vpop.permute.xlu0 %916 }
 0x28c   :  { %v925_v0 = vsel %vm924_vm8, %v915_v56, %v917_v7  ;;  %v756_v56 = vld [vmem:[%s6251_s9] sm:$0xf] }
 0x28d   :  { %3745 = vmatpush.msk.msrb.mxu0 %vm781_vm2, %v925_v0 }
 0x28e   :  { %3746 = vmatmul.msk.f32.vlgmr.msrb.gmra.mxu0 %vm777_vm7, %v3744_v11 }
 0x291   :  { %v5204_v63 = vpop.permute.xlu1 %1328  ;;  %v5206_v28 = vpop.permute.xlu2 %1324 }
 0x293   :  { %v1063_v52 = vpop.permute.xlu0 %1062 }
 0x294   :  { %v1071_v18 = vsel %vm1070_vm9, %v1061_v39, %v1063_v52  ;;  %v4064_v39 = vmov 0  }
 0x295   :  { %3755 = vmatpush.msk.msra.mxu0 %vm781_vm2, %v1071_v18  ;;  %3932 = vset.pattern.permute.xlu0 %v4064_v39  ;;  %v3773_v18 = vld [vmem:[%s6250_s8 + $0x10] sm:$0xf] }
 0x296   :  { %3756 = vmatmul.msk.f32.vlgmr.msra.gmra.mxu0 %vm777_vm7, %v3754_v8  ;;  %759 = vperm.xlu0 %3932, %v756_v56  }
 0x297   :  { %3933 = vset.pattern.permute.xlu1 %v4064_v39 }
 0x299   :  { %v921_v16 = vpop.permute.xlu2 %920  ;;  %v919_v46 = vpop.permute.xlu1 %918 }
 0x29a   :  { %v926_v35 = vsel %vm924_vm8, %v917_v7, %v919_v46  ;;  %v927_v19 = vsel %vm924_vm8, %v919_v46, %v921_v16 }
 0x29b   :  { %3747 = vmatpush.msk.msrb.mxu1 %vm781_vm2, %v926_v35  ;;  %3749 = vmatpush.msk.msrb.mxu2 %vm781_vm2, %v927_v19  ;;  %v1209_v53 = vpop.permute.xlu0 %1208 }
 0x29c   :  { %v1217_v27 = vsel %vm1216_vm10, %v1207_v5, %v1209_v53  ;;  %3748 = vmatmul.msk.f32.vlgmr.msrb.gmra.mxu1 %vm777_vm7, %v3744_v11  ;;  %3750 = vmatmul.msk.f32.vlgmr.msrb.gmra.mxu2 %vm777_vm7, %v3744_v11 }
 0x29d   :  { %3765 = vmatpush.msk.msrb.mxu0 %vm781_vm2, %v1217_v27 }
 0x29e   :  { %3766 = vmatmul.msk.f32.vlgmr.msrb.gmra.mxu0 %vm777_vm7, %v3764_v6 }
 0x29f   :  { %3774 = vmatpush.msk.msra.mxu0 %vm781_vm2, %v1331_v33 }
 0x2a1   :  { %v1065_v2 = vpop.permute.xlu2 %1064  ;;  %v923_v5 = vpop.permute.xlu1 %922 }
 0x2a2   :  { %v1072_v7 = vsel %vm1070_vm9, %v1063_v52, %v1065_v2  ;;  %v928_v0 = vsel %vm924_vm8, %v921_v16, %v923_v5  ;;  %v1332_v16 = vsel %vm1330_vm11, %v5171_v32, %v5206_v28  ;;  %v3783_v5 = vld [vmem:[%s6250_s8 + $0x14] sm:$0xf] }
 0x2a3   :  { %3751 = vmatpush.msk.msrb.mxu3 %vm781_vm2, %v928_v0  ;;  %3757 = vmatpush.msk.msra.mxu1 %vm781_vm2, %v1072_v7  ;;  %v1467_v62 = vpop.permute.xlu0 %1466 }
 0x2a4   :  { %3758 = vmatmul.msk.f32.vlgmr.msra.gmra.mxu1 %vm777_vm7, %v3754_v8  ;;  %3752 = vmatmul.msk.f32.vlgmr.msrb.gmra.mxu3 %vm777_vm7, %v3744_v11 }
 0x2a6   :  { %3775 = vmatmul.msk.f32.vlgmr.msra.gmra.mxu0 %vm777_vm7, %v3773_v18 }
 0x2a9   :  { %v1211_v46 = vpop.permute.xlu2 %1210  ;;  %v1069_v35 = vpop.permute.xlu1 %1068 }
 0x2aa   :  { %v1218_v52 = vsel %vm1216_vm10, %v1209_v53, %v1211_v46 }
 0x2ab   :  { %3767 = vmatpush.msk.msrb.mxu1 %vm781_vm2, %v1218_v52  ;;  %v1327_v19 = vpop.permute.xlu0 %1326 }
 0x2ac   :  { %3768 = vmatmul.msk.f32.vlgmr.msrb.gmra.mxu1 %vm777_vm7, %v3764_v6  ;;  %v1334_v52 = vsel %vm1330_vm11, %v1327_v19, %v5204_v63  ;;  %v3793_v63 = vld [vmem:[%s6250_s8 + $0x18] sm:$0xf] }
 0x2ad   :  { %3776 = vmatpush.msk.msra.mxu1 %vm781_vm2, %v1332_v16 }
 0x2b1   :  { %v1612_v11 = vpop.permute.xlu2 %1611  ;;  %v1215_v27 = vpop.permute.xlu1 %1214 }
 0x2b3   :  { %v1067_v56 = vpop.permute.xlu0 %1066 }
 0x2b4   :  { %v1073_v33 = vsel %vm1070_vm9, %v1065_v2, %v1067_v56  ;;  %v1074_v39 = vsel %vm1070_vm9, %v1067_v56, %v1069_v35  ;;  %3777 = vmatmul.msk.f32.vlgmr.msra.gmra.mxu1 %vm777_vm7, %v3773_v18 }
 0x2b5   :  { %3759 = vmatpush.msk.msra.mxu2 %vm781_vm2, %v1073_v33  ;;  %3761 = vmatpush.msk.msra.mxu3 %vm781_vm2, %v1074_v39 }
 0x2b6   :  { %3760 = vmatmul.msk.f32.vlgmr.msra.gmra.mxu2 %vm777_vm7, %v3754_v8  ;;  %3762 = vmatmul.msk.f32.vlgmr.msra.gmra.mxu3 %vm777_vm7, %v3754_v8 }
 0x2b9   :  { %v1471_v32 = vpop.permute.xlu2 %1470  ;;  %v1469_v53 = vpop.permute.xlu1 %1468 }
 0x2ba   :  { %v1477_v2 = vsel %vm1476_vm12, %v1467_v62, %v1469_v53  ;;  %v1478_v7 = vsel %vm1476_vm12, %v1469_v53, %v1471_v32  ;;  %v1333_v62 = vsel %vm1330_vm11, %v5206_v28, %v1327_v19 }
 0x2bb   :  { %3784 = vmatpush.msk.msrb.mxu0 %vm781_vm2, %v1477_v2  ;;  %3786 = vmatpush.msk.msrb.mxu1 %vm781_vm2, %v1478_v7  ;;  %v1213_v0 = vpop.permute.xlu0 %1212 }
 0x2bc   :  { %v1219_v8 = vsel %vm1216_vm10, %v1211_v46, %v1213_v0  ;;  %v1220_v35 = vsel %vm1216_vm10, %v1213_v0, %v1215_v27  ;;  %3785 = vmatmul.msk.f32.vlgmr.msrb.gmra.mxu0 %vm777_vm7, %v3783_v5  ;;  %3787 = vmatmul.msk.f32.vlgmr.msrb.gmra.mxu1 %vm777_vm7, %v3783_v5 }
 0x2bd   :  { %3769 = vmatpush.msk.msrb.mxu2 %vm781_vm2, %v1219_v8  ;;  %3771 = vmatpush.msk.msrb.mxu3 %vm781_vm2, %v1220_v35 }
 0x2be   :  { %3770 = vmatmul.msk.f32.vlgmr.msrb.gmra.mxu2 %vm777_vm7, %v3764_v6  ;;  %3772 = vmatmul.msk.f32.vlgmr.msrb.gmra.mxu3 %vm777_vm7, %v3764_v6 }
 0x2bf   :  { %3778 = vmatpush.msk.msra.mxu2 %vm781_vm2, %v1333_v62  ;;  %3780 = vmatpush.msk.msra.mxu3 %vm781_vm2, %v1334_v52  ;;  %v3803_v62 = vld [vmem:[%s6250_s8 + $0x1c] sm:$0xf] }
 0x2c1   :  { %v1618_v46 = vpop.permute.xlu2 %1617  ;;  %v1616_v16 = vpop.permute.xlu1 %1615 }
 0x2c2   :  { %v1624_v39 = vsel %vm6297_vm13, %v1616_v16, %v1618_v46 }
 0x2c3   :  { %v1614_v27 = vpop.permute.xlu0 %1613 }
 0x2c4   :  { %v1622_v56 = vsel %vm6297_vm13, %v1612_v11, %v1614_v27  ;;  %v1623_v28 = vsel %vm6297_vm13, %v1614_v27, %v1616_v16 }
 0x2c5   :  { %3794 = vmatpush.msk.msra.mxu0 %vm781_vm2, %v1622_v56  ;;  %3796 = vmatpush.msk.msra.mxu1 %vm781_vm2, %v1623_v28  ;;  %v3813_v28 = vld [vmem:[%s6250_s8 + $0x20] sm:$0xf] }
 0x2c6   :  { %3779 = vmatmul.msk.f32.vlgmr.msra.gmra.mxu2 %vm777_vm7, %v3773_v18  ;;  %3781 = vmatmul.msk.f32.vlgmr.msra.gmra.mxu3 %vm777_vm7, %v3773_v18 }
 0x2c7   :  { %3795 = vmatmul.msk.f32.vlgmr.msra.gmra.mxu0 %vm777_vm7, %v3793_v63  ;;  %3797 = vmatmul.msk.f32.vlgmr.msra.gmra.mxu1 %vm777_vm7, %v3793_v63 }
 0x2c9   :  { %v1620_v6 = vpop.permute.xlu2 %1619  ;;  %v1764_v19 = vpop.permute.xlu1 %1763 }
 0x2ca   :  { %v1625_v0 = vsel %vm6297_vm13, %v1618_v46, %v1620_v6 }
 0x2cb   :  { %v1473_v11 = vpop.permute.xlu0 %1472 }
 0x2cc   :  { %v1479_v33 = vsel %vm1476_vm12, %v1471_v32, %v1473_v11 }
 0x2cd   :  { %3788 = vmatpush.msk.msrb.mxu2 %vm781_vm2, %v1479_v33  ;;  %v5326_v33 = vld [vmem:[%s6244_s1 + $0xf8] sm:$0xff] }
 0x2ce   :  { %3789 = vmatmul.msk.f32.vlgmr.msrb.gmra.mxu2 %vm777_vm7, %v3783_v5 }
 0x2cf   :  { %3798 = vmatpush.msk.msra.mxu2 %vm781_vm2, %v1624_v39  ;;  %v5333_v39 = vld [vmem:[%s6244_s1 + $0x78] sm:$0xff] }
 0x2d1   :  { %v1908_v53 = vpop.permute.xlu2 %1907  ;;  %v1766_v2 = vpop.permute.xlu1 %1765 }
 0x2d2   :  { %v1771_v32 = vsel %vm6296_vm14, %v1764_v19, %v1766_v2  ;;  %v5348_v2 = vld [vmem:[%s6244_s1 + $0xf0] sm:$0xff] }
 0x2d3   :  { %v1475_v18 = vpop.permute.xlu0 %1474 }
 0x2d4   :  { %v1480_v7 = vsel %vm1476_vm12, %v1473_v11, %v1475_v18  ;;  %v5354_v18 = vld [vmem:[%s6244_s1 + $0x178] sm:$0xff] }
 0x2d5   :  { %3790 = vmatpush.msk.msrb.mxu3 %vm781_vm2, %v1480_v7  ;;  %v5360_v7 = vld [vmem:[%s6244_s1 + $0x68] sm:$0xff] }
 0x2d6   :  { %3791 = vmatmul.msk.f32.vlgmr.msrb.gmra.mxu3 %vm777_vm7, %v3783_v5  ;;  %3799 = vmatmul.msk.f32.vlgmr.msra.gmra.mxu2 %vm777_vm7, %v3793_v63 }
 0x2d7   :  { %3800 = vmatpush.msk.msra.mxu3 %vm781_vm2, %v1625_v0  ;;  %v5366_v0 = vld [vmem:[%s6244_s1 + $0xe8] sm:$0xff] }
 0x2d9   :  { %3810 = vmatpush.msk.msrb.mxu3 %vm781_vm2, %v1771_v32  ;;  %v1760_v8 = vpop.permute.xlu2 %1759  ;;  %v1758_v35 = vpop.permute.xlu1 %1757  ;;  %v5372_v32 = vld [vmem:[%s6244_s1 + $0x170] sm:$0xff] }
 0x2da   :  { %v1768_v52 = vsel %vm6296_vm14, %v1758_v35, %v1760_v8  ;;  %v5378_v35 = vld [vmem:[%s6244_s1 + $0x60] sm:$0xff] }
 0x2db   :  { %3804 = vmatpush.msk.msrb.mxu0 %vm781_vm2, %v1768_v52  ;;  %v1762_v46 = vpop.permute.xlu0 %1761  ;;  %v5385_v52 = vld [vmem:[%s6244_s1 + $0xe0] sm:$0xff] }
 0x2dc   :  { %v1769_v5 = vsel %vm6296_vm14, %v1760_v8, %v1762_v46  ;;  %v1770_v16 = vsel %vm6296_vm14, %v1762_v46, %v1764_v19  ;;  %3805 = vmatmul.msk.f32.vlgmr.msrb.gmra.mxu0 %vm777_vm7, %v3803_v62  ;;  %v5391_v46 = vld [vmem:[%s6244_s1 + $0x168] sm:$0xff] }
 0x2dd   :  { %3806 = vmatpush.msk.msrb.mxu1 %vm781_vm2, %v1769_v5  ;;  %3808 = vmatpush.msk.msrb.mxu2 %vm781_vm2, %v1770_v16  ;;  %v5398_v5 = vld [vmem:[%s6244_s1 + $0x58] sm:$0xff] }
 0x2de   :  { %3801 = vmatmul.msk.f32.vlgmr.msra.gmra.mxu3 %vm777_vm7, %v3793_v63  ;;  %3807 = vmatmul.msk.f32.vlgmr.msrb.gmra.mxu1 %vm777_vm7, %v3803_v62  ;;  %v5405_v16 = vld [vmem:[%s6244_s1 + $0xd8] sm:$0xff] }
 0x2df   :  { %3809 = vmatmul.msk.f32.vlgmr.msrb.gmra.mxu2 %vm777_vm7, %v3803_v62 }
 0x2e1   :  { %v1906_v27 = vpop.permute.xlu2 %1905  ;;  %v1904_v56 = vpop.permute.xlu1 %1903 }
 0x2e2   :  { %v1915_v6 = vsel %vm6295_vm15, %v1906_v27, %v1908_v53  ;;  %v1914_v19 = vsel %vm6295_vm15, %v1904_v56, %v1906_v27  ;;  %v5411_v27 = vld [vmem:[%s6244_s1 + $0x50] sm:$0xff]  ;;  %v5417_v56 = vld [vmem:[%s6244_s1 + $0x160] sm:$0xff] }
 0x2e3   :  { %3814 = vmatpush.msk.msra.mxu0 %vm781_vm2, %v1914_v19  ;;  %3816 = vmatpush.msk.msra.mxu1 %vm781_vm2, %v1915_v6  ;;  %v1910_v63 = vpop.permute.xlu0 %1909  ;;  %v5429_v6 = vld [vmem:[%s6244_s1 + $0x1f8] sm:$0xff]  ;;  %v5435_v19 = vld [vmem:[%s6244_s1 + $0x48] sm:$0xff] }
 0x2e4   :  { %v1916_v11 = vsel %vm6295_vm15, %v1908_v53, %v1910_v63  ;;  %3815 = vmatmul.msk.f32.vlgmr.msra.gmra.mxu0 %vm777_vm7, %v3813_v28  ;;  %v5342_v53 = vld [vmem:[%s6244_s1 + $0x70] sm:$0xff] }
 0x2e5   :  { %2035 = vmatpush.msrb.mxu1 %v5326_v33  ;;  %3818 = vmatpush.msk.msra.mxu2 %vm781_vm2, %v1916_v11  ;;  %v5447_v11 = vld [vmem:[%s6244_s1 + $0xc8] sm:$0xff] }
 0x2e6   :  { %2015 = vmatpush.msrb.mxu0 %v5333_v39  ;;  %3811 = vmatmul.msk.f32.vlgmr.msrb.gmra.mxu3 %vm777_vm7, %v3803_v62 }
 0x2e7   :  { %3817 = vmatmul.msk.f32.vlgmr.msra.gmra.mxu1 %vm777_vm7, %v3813_v28  ;;  %3819 = vmatmul.msk.f32.vlgmr.msra.gmra.mxu2 %vm777_vm7, %v3813_v28 }
 0x2e8   :  { %2016 = vmatpush.msrb.mxu0 %v5342_v53  ;;  %2036 = vmatpush.msrb.mxu1 %v5348_v2 }
 0x2e9   :  { %2055 = vmatpush.msrb.mxu2 %v5354_v18 }
 0x2ea   :  { %2017 = vmatpush.msrb.mxu0 %v5360_v7  ;;  %2037 = vmatpush.msrb.mxu1 %v5366_v0 }
 0x2eb   :  { %2056 = vmatpush.msrb.mxu2 %v5372_v32  ;;  %v1912_v8 = vpop.permute.xlu0 %1911 }
 0x2ec   :  { %2018 = vmatpush.msrb.mxu0 %v5378_v35  ;;  %v1917_v62 = vsel %vm6295_vm15, %v1910_v63, %v1912_v8  ;;  %2038 = vmatpush.msrb.mxu1 %v5385_v52  ;;  %v5441_v63 = vld [vmem:[%s6244_s1 + $0x158] sm:$0xff]  ;;  %v5453_v8 = vld [vmem:[%s6244_s1 + $0x1f0] sm:$0xff] }
 0x2ed   :  { %2057 = vmatpush.msrb.mxu2 %v5391_v46  ;;  %3820 = vmatpush.msk.msra.mxu3 %vm781_vm2, %v1917_v62  ;;  %v5459_v62 = vld [vmem:[%s6244_s1 + $0x40] sm:$0xff] }
 0x2ee   :  { %2019 = vmatpush.msrb.mxu0 %v5398_v5  ;;  %3821 = vmatmul.msk.f32.vlgmr.msra.gmra.mxu3 %vm777_vm7, %v3813_v28  ;;  %v5423_v28 = vld [vmem:[%s6244_s1 + $0xd0] sm:$0xff] }
 0x2ef   :  { %2039 = vmatpush.msrb.mxu1 %v5405_v16  ;;  %2058 = vmatpush.msrb.mxu2 %v5417_v56 }
 0x2f0   :  { %2020 = vmatpush.msrb.mxu0 %v5411_v27  ;;  %2075 = vmatpush.msrb.mxu3 %v5429_v6 }
 0x2f1   :  { %2040 = vmatpush.msrb.mxu1 %v5423_v28  ;;  %2059 = vmatpush.msrb.mxu2 %v5441_v63 }
 0x2f2   :  { %2021 = vmatpush.msrb.mxu0 %v5435_v19  ;;  %2076 = vmatpush.msrb.mxu3 %v5453_v8 }
 0x2f3   :  { %2041 = vmatpush.msrb.mxu1 %v5447_v11  ;;  %2060 = vmatpush.msrb.mxu2 %v5465_v4 }
 0x2f4   :  { %2022 = vmatpush.msrb.mxu0 %v5459_v62  ;;  %2077 = vmatpush.msrb.mxu3 %v5477_v37 }
 0x2f5   :  { %2042 = vmatpush.msrb.mxu1 %v5471_v3  ;;  %2061 = vmatpush.msrb.mxu2 %v5489_v48 }
 0x2f6   :  { %2023 = vmatpush.msrb.mxu0 %v5483_v49  ;;  %2078 = vmatpush.msrb.mxu3 %v5501_v1 }
 0x2f7   :  { %2043 = vmatpush.msrb.mxu1 %v5495_v54  ;;  %2062 = vmatpush.msrb.mxu2 %v5513_v47 }
 0x2f8   :  { %2024 = vmatpush.msrb.mxu0 %v5507_v34  ;;  %2079 = vmatpush.msrb.mxu3 %v5525_v45 }
 0x2f9   :  { %2044 = vmatpush.msrb.mxu1 %v5519_v20  ;;  %2063 = vmatpush.msrb.mxu2 %v5537_v43 }
 0x2fa   :  { %2025 = vmatpush.msrb.mxu0 %v5531_v15  ;;  %2080 = vmatpush.msrb.mxu3 %v5549_v24 }
 0x2fb   :  { %2045 = vmatpush.msrb.mxu1 %v5543_v55  ;;  %2064 = vmatpush.msrb.mxu2 %v5561_v23 }
 0x2fc   :  { %2026 = vmatpush.msrb.mxu0 %v5555_v13  ;;  %2081 = vmatpush.msrb.mxu3 %v5573_v38 }
 0x2fd   :  { %2046 = vmatpush.msrb.mxu1 %v5567_v10  ;;  %2065 = vmatpush.msrb.mxu2 %v5585_v41 }
 0x2fe   :  { %2027 = vmatpush.msrb.mxu0 %v5579_v42  ;;  %2082 = vmatpush.msrb.mxu3 %v5597_v50 }
 0x2ff   :  { %2047 = vmatpush.msrb.mxu1 %v5591_v29  ;;  %2066 = vmatpush.msrb.mxu2 %v5609_v61 }
 0x300   :  { %2028 = vmatpush.msrb.mxu0 %v5603_v12  ;;  %2083 = vmatpush.msrb.mxu3 %v5621_v17 }
 0x301   :  { %2048 = vmatpush.msrb.mxu1 %v5615_v40  ;;  %2067 = vmatpush.msrb.mxu2 %v5633_v14 }
 0x302   :  { %2029 = vmatpush.msrb.mxu0 %v5627_v60  ;;  %2084 = vmatpush.msrb.mxu3 %v5645_v9 }
 0x303   :  { %2049 = vmatpush.msrb.mxu1 %v5639_v21  ;;  %2068 = vmatpush.msrb.mxu2 %v5657_v30 }
 0x304   :  { %2030 = vmatpush.msrb.mxu0 %v5651_v25 }
 0x305   :  { %2050 = vmatpush.msrb.mxu1 %v5664_v36  ;;  %2069 = vmatpush.msrb.mxu2 %v5671_v58 }
 0x306   :  { %2100 = vmatpush.msra.mxu0 %v5333_v39  ;;  %v5678_v39 = vld [vmem:[%s6244_s1 + $0x1a8] sm:$0xff] }
 0x307   :  { %2120 = vmatpush.msra.mxu1 %v5326_v33  ;;  %2085 = vmatpush.msrb.mxu3 %v5678_v39  ;;  %v5685_v33 = vld [vmem:[%s6244_s1 + $0x100] sm:$0xff] }
 0x308   :  { %2101 = vmatpush.msra.mxu0 %v5342_v53  ;;  %2070 = vmatpush.msrb.mxu2 %v5685_v33  ;;  %v5692_v53 = vld [vmem:[%s6244_s1 + $0x1a0] sm:$0xff] }
 0x309   :  { %2121 = vmatpush.msra.mxu1 %v5348_v2  ;;  %2086 = vmatpush.msrb.mxu3 %v5692_v53  ;;  %v5701_v2 = vld [vmem:[%s6244_s1 + $0x198] sm:$0xff] }
 0x30a   :  { %2102 = vmatpush.msra.mxu0 %v5360_v7  ;;  %2140 = vmatpush.msra.mxu2 %v5354_v18  ;;  %v5710_v7 = vld [vmem:[%s6244_s1 + $0x190] sm:$0xff]  ;;  %v4028_v18 = vld [vmem:[%s6244_s1 + $0x188] sm:$0xff] }
 0x30b   :  { %2122 = vmatpush.msra.mxu1 %v5366_v0  ;;  %2087 = vmatpush.msrb.mxu3 %v5701_v2  ;;  %v4029_v0 = vld [vmem:[%s6244_s1 + $0x180] sm:$0xff] }
 0x30c   :  { %2103 = vmatpush.msra.mxu0 %v5378_v35  ;;  %2141 = vmatpush.msra.mxu2 %v5372_v32  ;;  %v811_v32 = vpop.f32.mrf.mxu0  ;;  %v831_v35 = vpop.f32.mrf.mxu1 }
 0x30d   :  { %2123 = vmatpush.msra.mxu1 %v5385_v52  ;;  %2088 = vmatpush.msrb.mxu3 %v5710_v7 }
 0x30e   :  { %2104 = vmatpush.msra.mxu0 %v5398_v5  ;;  %2142 = vmatpush.msra.mxu2 %v5391_v46 }
 0x30f   :  { %2124 = vmatpush.msra.mxu1 %v5405_v16  ;;  %2089 = vmatpush.msrb.mxu3 %v4028_v18 }
 0x310   :  { %2105 = vmatpush.msra.mxu0 %v5411_v27  ;;  %2143 = vmatpush.msra.mxu2 %v5417_v56 }
 0x311   :  { %2125 = vmatpush.msra.mxu1 %v5423_v28  ;;  %2090 = vmatpush.msrb.mxu3 %v4029_v0 }
 0x312   :  { %2106 = vmatpush.msra.mxu0 %v5435_v19  ;;  %2144 = vmatpush.msra.mxu2 %v5441_v63 }
 0x313   :  { %2126 = vmatpush.msra.mxu1 %v5447_v11  ;;  %2160 = vmatpush.msra.mxu3 %v5429_v6 }
 0x314   :  { %2107 = vmatpush.msra.mxu0 %v5459_v62  ;;  %2145 = vmatpush.msra.mxu2 %v5465_v4 }
 0x315   :  { %2127 = vmatpush.msra.mxu1 %v5471_v3  ;;  %2161 = vmatpush.msra.mxu3 %v5453_v8 }
 0x316   :  { %2108 = vmatpush.msra.mxu0 %v5483_v49  ;;  %2146 = vmatpush.msra.mxu2 %v5489_v48 }
 0x317   :  { %2128 = vmatpush.msra.mxu1 %v5495_v54  ;;  %2162 = vmatpush.msra.mxu3 %v5477_v37  ;;  %v957_v54 = vpop.f32.mrf.mxu0 }
 0x318   :  { %2109 = vmatpush.msra.mxu0 %v5507_v34  ;;  %2147 = vmatpush.msra.mxu2 %v5513_v47 }
 0x319   :  { %2129 = vmatpush.msra.mxu1 %v5519_v20  ;;  %2163 = vmatpush.msra.mxu3 %v5501_v1  ;;  %v977_v48 = vpop.f32.mrf.mxu1 }
 0x31a   :  { %2110 = vmatpush.msra.mxu0 %v5531_v15  ;;  %2148 = vmatpush.msra.mxu2 %v5537_v43 }
 0x31b   :  { %2130 = vmatpush.msra.mxu1 %v5543_v55  ;;  %2164 = vmatpush.msra.mxu3 %v5525_v45 }
 0x31c   :  { %2111 = vmatpush.msra.mxu0 %v5555_v13  ;;  %2149 = vmatpush.msra.mxu2 %v5561_v23  ;;  %v851_v23 = vpop.f32.mrf.mxu2 }
 0x31d   :  { %2131 = vmatpush.msra.mxu1 %v5567_v10  ;;  %2165 = vmatpush.msra.mxu3 %v5549_v24 }
 0x31e   :  { %2112 = vmatpush.msra.mxu0 %v5579_v42  ;;  %2150 = vmatpush.msra.mxu2 %v5585_v41 }
 0x31f   :  { %2132 = vmatpush.msra.mxu1 %v5591_v29  ;;  %2166 = vmatpush.msra.mxu3 %v5573_v38 }
 0x320   :  { %2113 = vmatpush.msra.mxu0 %v5603_v12  ;;  %2151 = vmatpush.msra.mxu2 %v5609_v61  ;;  %v871_v12 = vpop.f32.mrf.mxu3 }
 0x321   :  { %2133 = vmatpush.msra.mxu1 %v5615_v40  ;;  %2167 = vmatpush.msra.mxu3 %v5597_v50  ;;  %v1123_v24 = vpop.f32.mrf.mxu1 }
 0x322   :  { %2114 = vmatpush.msra.mxu0 %v5627_v60  ;;  %2152 = vmatpush.msra.mxu2 %v5633_v14 }
 0x323   :  { %2134 = vmatpush.msra.mxu1 %v5639_v21  ;;  %2168 = vmatpush.msra.mxu3 %v5621_v17 }
 0x324   :  { %2115 = vmatpush.msra.mxu0 %v5651_v25  ;;  %2153 = vmatpush.msra.mxu2 %v5657_v30  ;;  %v1103_v25 = vpop.f32.mrf.mxu0 }
 0x325   :  { %2135 = vmatpush.msra.mxu1 %v5664_v36  ;;  %2169 = vmatpush.msra.mxu3 %v5645_v9  ;;  %v997_v36 = vpop.f32.mrf.mxu2  ;;  %v760_v9 = vpop.permute.xlu0 %759 }
 0x326   :  { %2154 = vmatpush.msra.mxu2 %v5671_v58  ;;  %v874_v17 = vadd.f32 %v811_v32, %v760_v9  ;;  %v875_v50 = vadd.f32 %v831_v35, %v760_v9  ;;  %v876_v43 = vadd.f32 %v851_v23, %v760_v9  ;;  %v877_v63 = vadd.f32 %v871_v12, %v760_v9  ;;  %v4030_v23 = vld [vmem:[%s6246_s2 + $0x60] sm:$0xff] }
 0x327   :  { %2170 = vmatpush.msra.mxu3 %v5678_v39 }
 0x328   :  { %2155 = vmatpush.msra.mxu2 %v5685_v33  ;;  %v1017_v30 = vpop.f32.mrf.mxu3  ;;  %v1020_v55 = vadd.f32 %v957_v54, %v874_v17  ;;  %v1021_v60 = vadd.f32 %v977_v48, %v875_v50  ;;  %v1022_v27 = vadd.f32 %v997_v36, %v876_v43  ;;  %v4032_v36 = vld [vmem:[%s6246_s2 + $0x40] sm:$0xff]  ;;  %v4038_v50 = vld [vmem:[%s6246_s2 + $0x8] sm:$0xff] }
 0x329   :  { %2171 = vmatpush.msra.mxu3 %v5692_v53  ;;  %v1269_v40 = vpop.f32.mrf.mxu1  ;;  %v1023_v32 = vadd.f32 %v1017_v30, %v877_v63  ;;  %v4036_v17 = vld [vmem:[%s6246_s2] sm:$0xff] }
 0x32a   :  { %v1166_v45 = vadd.f32 %v1103_v25, %v1020_v55  ;;  %v1167_v13 = vadd.f32 %v1123_v24, %v1021_v60  ;;  %v4031_v25 = vld [vmem:[%s6246_s2 + $0x68] sm:$0xff]  ;;  %v4039_v60 = vld [vmem:[%s6246_s2 + $0x50] sm:$0xff] }
 0x32b   :  { %2172 = vmatpush.msra.mxu3 %v5701_v2 }
 0x32c   :  { %v1249_v38 = vpop.f32.mrf.mxu0  ;;  %v1313_v20 = vadd.f32 %v1269_v40, %v1167_v13  ;;  %v4033_v40 = vld [vmem:[%s6246_s2 + $0x48] sm:$0xff] }
 0x32d   :  { %2173 = vmatpush.msra.mxu3 %v5710_v7  ;;  %v1312_v1 = vadd.f32 %v1249_v38, %v1166_v45 }
 0x32f   :  { %2174 = vmatpush.msra.mxu3 %v4028_v18 }
 0x331   :  { %2175 = vmatpush.msra.mxu3 %v4029_v0  ;;  %v1383_v37 = vpop.f32.mrf.mxu1 }
 0x332   :  { %v1427_v46 = vadd.f32 %v1383_v37, %v1313_v20  ;;  %v4044_v20 = vld [vmem:[%s6246_s2 + $0x38] sm:$0xff] }
 0x334   :  { %v1363_v49 = vpop.f32.mrf.mxu0 }
 0x335   :  { %v1426_v42 = vadd.f32 %v1363_v49, %v1312_v1  ;;  %v4034_v49 = vld [vmem:[%s6246_s2 + $0x20] sm:$0xff]  ;;  %v4043_v1 = vld [vmem:[%s6246_s2 + $0x58] sm:$0xff] }
 0x339   :  { %v1143_v41 = vpop.f32.mrf.mxu2  ;;  %v1163_v47 = vpop.f32.mrf.mxu3 }
 0x33a   :  { %v1529_v58 = vpop.f32.mrf.mxu1  ;;  %v1168_v6 = vadd.f32 %v1143_v41, %v1022_v27  ;;  %v1169_v48 = vadd.f32 %v1163_v47, %v1023_v32 }
 0x33b   :  { %v1573_v28 = vadd.f32 %v1529_v58, %v1427_v46 }
 0x33c   :  { %v1509_v14 = vpop.f32.mrf.mxu0 }
 0x33d   :  { %v1572_v56 = vadd.f32 %v1509_v14, %v1426_v42  ;;  %v4045_v42 = vld [vmem:[%s6246_s2 + $0x18] sm:$0xff] }
 0x341   :  { %v1289_v3 = vpop.f32.mrf.mxu2  ;;  %v1309_v4 = vpop.f32.mrf.mxu3 }
 0x342   :  { %v1314_v8 = vadd.f32 %v1289_v3, %v1168_v6  ;;  %v1315_v24 = vadd.f32 %v1309_v4, %v1169_v48  ;;  %v4035_v4 = vld [vmem:[%s6246_s2 + $0x28] sm:$0xff] }
 0x344   :  { %v1654_v29 = vpop.f32.mrf.mxu0  ;;  %v1674_v15 = vpop.f32.mrf.mxu1 }
 0x345   :  { %v1717_v19 = vadd.f32 %v1654_v29, %v1572_v56  ;;  %v1718_v11 = vadd.f32 %v1674_v15, %v1573_v28  ;;  %v4041_v29 = vld [vmem:[%s6246_s2 + $0x10] sm:$0xff]  ;;  %v4042_v15 = vld [vmem:[%s6246_s2 + $0x78] sm:$0xff] }
 0x349   :  { %v1403_v21 = vpop.f32.mrf.mxu2  ;;  %v1423_v10 = vpop.f32.mrf.mxu3 }
 0x34a   :  { %v1428_v7 = vadd.f32 %v1403_v21, %v1314_v8  ;;  %v1429_v41 = vadd.f32 %v1423_v10, %v1315_v24  ;;  %v4037_v21 = vld [vmem:[%s6246_s2 + $0x70] sm:$0xff] }
 0x351   :  { %v1549_v61 = vpop.f32.mrf.mxu2 }
 0x352   :  { %v1574_v54 = vadd.f32 %v1549_v61, %v1428_v7  ;;  %v4040_v61 = vld [vmem:[%s6246_s2 + $0x30] sm:$0xff] }
 0x359   :  { %v1569_v34 = vpop.f32.mrf.mxu3  ;;  %v1694_v52 = vpop.f32.mrf.mxu2 }
 0x35a   :  { %v1800_v5 = vpop.f32.mrf.mxu0  ;;  %v1719_v12 = vadd.f32 %v1694_v52, %v1574_v54  ;;  %v1575_v9 = vadd.f32 %v1569_v34, %v1429_v41 }
 0x35b   :  { %v1820_v16 = vpop.f32.mrf.mxu1  ;;  %v1863_v62 = vadd.f32 %v1800_v5, %v1717_v19 }
 0x35c   :  { %v1864_v33 = vadd.f32 %v1820_v16, %v1718_v11 }
 0x361   :  { %v1714_v39 = vpop.f32.mrf.mxu3 }
 0x362   :  { %v1840_v53 = vpop.f32.mrf.mxu2  ;;  %v1946_v2 = vpop.f32.mrf.mxu0  ;;  %v1720_v58 = vadd.f32 %v1714_v39, %v1575_v9 }
 0x363   :  { %v5770_v18 = vadd.f32 %v1946_v2, %v1863_v62  ;;  %v1865_v30 = vadd.f32 %v1840_v53, %v1719_v12 }
 0x364   :  { %v1966_v0 = vpop.f32.mrf.mxu1 }
 0x365   :  { %v5772_v35 = vadd.f32 %v1966_v0, %v1864_v33  ;;  %2031 = vmatmul.f32.vlgmr.msrb.gmra.mxu0 %v5770_v18  ;;  %v2096_v37 = vmul.f32 %v5770_v18, %v5770_v18 }
 0x366   :  { %2196 = vmatpush.msrb.mxu0 %v4030_v23 }
 0x367   :  { %2051 = vmatmul.f32.vlgmr.msrb.gmra.mxu1 %v5772_v35  ;;  %v2097_v14 = vmul.f32 %v5772_v35, %v5772_v35 }
 0x368   :  { %2216 = vmatpush.msrb.mxu1 %v4031_v25  ;;  %2197 = vmatpush.msrb.mxu0 %v4032_v36 }
 0x369   :  { %v1860_v38 = vpop.f32.mrf.mxu3 }
 0x36a   :  { %2217 = vmatpush.msrb.mxu1 %v4033_v40  ;;  %v1986_v47 = vpop.f32.mrf.mxu2  ;;  %2198 = vmatpush.msrb.mxu0 %v4034_v49  ;;  %v1866_v55 = vadd.f32 %v1860_v38, %v1720_v58 }
 0x36b   :  { %v5793_v3 = vadd.f32 %v1986_v47, %v1865_v30 }
 0x36c   :  { %2218 = vmatpush.msrb.mxu1 %v4035_v4  ;;  %2199 = vmatpush.msrb.mxu0 %v4036_v17 }
 0x36d   :  { %2071 = vmatmul.f32.vlgmr.msrb.gmra.mxu2 %v5793_v3  ;;  %2116 = vmatmul.f32.vlgmr.msra.gmra.mxu0 %v2096_v37  ;;  %v2098_v13 = vmul.f32 %v5793_v3, %v5793_v3 }
 0x36e   :  { %2236 = vmatpush.msrb.mxu2 %v4037_v21  ;;  %2219 = vmatpush.msrb.mxu1 %v4038_v50 }
 0x36f   :  { %2136 = vmatmul.f32.vlgmr.msra.gmra.mxu1 %v2097_v14  ;;  %2279 = vmatpush.msra.mxu0 %v4030_v23 }
 0x370   :  { %2237 = vmatpush.msrb.mxu2 %v4039_v60  ;;  %2299 = vmatpush.msra.mxu1 %v4031_v25 }
 0x371   :  { %v2006_v45 = vpop.f32.mrf.mxu3  ;;  %2280 = vmatpush.msra.mxu0 %v4032_v36 }
 0x372   :  { %v5813_v10 = vadd.f32 %v2006_v45, %v1866_v55  ;;  %2238 = vmatpush.msrb.mxu2 %v4040_v61  ;;  %2300 = vmatpush.msra.mxu1 %v4033_v40 }
 0x373   :  { %2281 = vmatpush.msra.mxu0 %v4034_v49 }
 0x374   :  { %2091 = vmatmul.f32.vlgmr.msrb.gmra.mxu3 %v5813_v10  ;;  %2239 = vmatpush.msrb.mxu2 %v4041_v29  ;;  %v2099_v43 = vmul.f32 %v5813_v10, %v5813_v10 }
 0x375   :  { %2156 = vmatmul.f32.vlgmr.msra.gmra.mxu2 %v2098_v13  ;;  %2256 = vmatpush.msrb.mxu3 %v4042_v15  ;;  %v2013_v13 = vld [vmem:[%s6252_s6] sm:$0xf] }
 0x376   :  { %2319 = vmatpush.msra.mxu2 %v4037_v21  ;;  %2301 = vmatpush.msra.mxu1 %v4035_v4 }
 0x377   :  { %2257 = vmatpush.msrb.mxu3 %v4043_v1  ;;  %2282 = vmatpush.msra.mxu0 %v4036_v17 }
 0x378   :  { %2320 = vmatpush.msra.mxu2 %v4039_v60  ;;  %2302 = vmatpush.msra.mxu1 %v4038_v50 }
 0x379   :  { %2258 = vmatpush.msrb.mxu3 %v4044_v20 }
 0x37a   :  { %2321 = vmatpush.msra.mxu2 %v4040_v61 }
 0x37b   :  { %2259 = vmatpush.msrb.mxu3 %v4045_v42 }
 0x37c   :  { %2176 = vmatmul.f32.vlgmr.msra.gmra.mxu3 %v2099_v43  ;;  %2322 = vmatpush.msra.mxu2 %v4041_v29 }
 0x37d   :  { %2339 = vmatpush.msra.mxu3 %v4042_v15 }
 0x37f   :  { %2340 = vmatpush.msra.mxu3 %v4043_v1 }
 0x381   :  { %2341 = vmatpush.msra.mxu3 %v4044_v20 }
 0x383   :  { %2342 = vmatpush.msra.mxu3 %v4045_v42 }
 0x3e2   :  { %v2032_v52 = vpop.f32.mrf.mxu0 }
 0x3e4   :  { %v2052_v34 = vpop.f32.mrf.mxu1 }
 0x3e5   :  { %v2053_v5 = vadd.f32 %v2052_v34, %v2032_v52  ;;  %v2014_v34 = vld [vmem:[%s6253_s7] sm:$0xf] }
 0x3ea   :  { %v2117_v19 = vpop.f32.mrf.mxu0 }
 0x3ec   :  { %v2137_v28 = vpop.f32.mrf.mxu1 }
 0x3ed   :  { %v2138_v11 = vadd.f32 %v2137_v28, %v2117_v19  ;;  %v2409_v28 = vperm.slane %v2013_v13, 1 }
 0x3f0   :  { %v2072_v46 = vpop.f32.mrf.mxu2 }
 0x3f1   :  { %v2073_v16 = vadd.f32 %v2072_v46, %v2053_v5  ;;  %v2408_v5 = vperm.slane %v2013_v13, 0 }
 0x3f7   :  { %v2092_v27 = vpop.f32.mrf.mxu3 }
 0x3f8   :  { %v2093_v56 = vadd.f32 %v2092_v27, %v2073_v16  ;;  %v2157_v63 = vpop.f32.mrf.mxu2 }
 0x3f9   :  { %v2158_v8 = vadd.f32 %v2157_v63, %v2138_v11  ;;  %v2421_v63 = vperm.slane %v2014_v34, 0 }
 0x3fa   :  { %v2095_v6 = vmul.f32 0.0625, %v2093_v56 }
 0x3fc   :  { %3822 = vmatmul.msk.f32.vlgmr.msrb.gmra.mxu0 %vm304_vm0, %v2095_v6  ;;  %3823 = vmatmul.msk.f32.vlgmr.msrb.gmra.mxu1 %vm304_vm0, %v2095_v6 }
 0x3fd   :  { %3824 = vmatmul.msk.f32.vlgmr.msrb.gmra.mxu2 %vm304_vm0, %v2095_v6  ;;  %3825 = vmatmul.msk.f32.vlgmr.msrb.gmra.mxu3 %vm304_vm0, %v2095_v6 }
 0x3ff   :  { %v2177_v62 = vpop.f32.mrf.mxu3 }
 0x400   :  { %v2178_v39 = vadd.f32 %v2177_v62, %v2158_v8  ;;  %v2422_v62 = vperm.slane %v2014_v34, 1 }
 0x402   :  { %v2180_v33 = vmul.f32 0.0625, %v2178_v39 }
 0x404   :  { %3826 = vmatmul.msk.f32.vlgmr.msra.gmra.mxu0 %vm304_vm0, %v2180_v33  ;;  %3827 = vmatmul.msk.f32.vlgmr.msra.gmra.mxu1 %vm304_vm0, %v2180_v33 }
 0x405   :  { %3828 = vmatmul.msk.f32.vlgmr.msra.gmra.mxu2 %vm304_vm0, %v2180_v33  ;;  %3829 = vmatmul.msk.f32.vlgmr.msra.gmra.mxu3 %vm304_vm0, %v2180_v33 }
 0x479   :  { %v2201_v53 = vpop.f32.mrf.mxu0  ;;  %v2221_v2 = vpop.f32.mrf.mxu1 }
 0x47a   :  { %v2347_v7 = vmul.f32 %v2201_v53, %v2201_v53  ;;  %v2348_v0 = vmul.f32 %v2221_v2, %v2221_v2  ;;  %v2355_v20 = vsub.f32 %v5770_v18, %v2201_v53  ;;  %v2356_v16 = vsub.f32 %v5772_v35, %v2221_v2 }
 0x480   :  { %v5846_v32 = vpop.f32.mrf.mxu2  ;;  %v5848_v54 = vpop.f32.mrf.mxu3 }
 0x481   :  { %v2284_v48 = vpop.f32.mrf.mxu0  ;;  %v2304_v23 = vpop.f32.mrf.mxu1  ;;  %v2349_v30 = vmul.f32 %v5846_v32, %v5846_v32  ;;  %v2350_v38 = vmul.f32 %v5848_v54, %v5848_v54  ;;  %v2357_v35 = vsub.f32 %v5793_v3, %v5846_v32 }
 0x482   :  { %v2351_v12 = vsub.f32 %v2284_v48, %v2347_v7  ;;  %v2352_v25 = vsub.f32 %v2304_v23, %v2348_v0 }
 0x484   :  { %v2359_v24 = vadd.f32 1e-05, %v2351_v12  ;;  %v2360_v36 = vadd.f32 1e-05, %v2352_v25  ;;  %v2410_v12 = vperm.slane %v2013_v13, 2  ;;  %v2358_v25 = vsub.f32 %v5813_v10, %v5848_v54 }
 0x486   :  { %3950 = vrsqrt.f32 %v2359_v24  ;;  %vm2369_vm4 = vweird.f32 %v2359_v24  ;;  %vm2379_vm6 = vweird.f32 %v2360_v36 }
 0x487   :  { %3952 = vrsqrt.f32 %v2360_v36 }
 0x488   :  { %v2324_v40 = vpop.f32.mrf.mxu2  ;;  %v2344_v41 = vpop.f32.mrf.mxu3 }
 0x489   :  { %v2353_v47 = vsub.f32 %v2324_v40, %v2349_v30  ;;  %v2354_v49 = vsub.f32 %v2344_v41, %v2350_v38  ;;  %v2411_v30 = vperm.slane %v2013_v13, 3  ;;  %v2423_v40 = vperm.slane %v2014_v34, 2 }
 0x48b   :  { %v2361_v37 = vadd.f32 1e-05, %v2353_v47  ;;  %v2362_v4 = vadd.f32 1e-05, %v2354_v49  ;;  %v2424_v49 = vperm.slane %v2014_v34, 3 }
 0x48c   :  { %v3951_v9 = vpop.eup %3950 }
 0x48d   :  { %v3953_v14 = vpop.eup %3952  ;;  %v2364_v17 = vmul.f32 %v3951_v9, %v2359_v24  ;;  %3954 = vrsqrt.f32 %v2361_v37  ;;  %vm2370_vm0 = vweird.f32 %v3951_v9 }
 0x48e   :  { %v2374_v58 = vmul.f32 %v3953_v14, %v2360_v36  ;;  %3956 = vrsqrt.f32 %v2362_v4  ;;  %vm2380_vm3 = vweird.f32 %v3953_v14  ;;  %vm2371_vm5 = vmor %vm2369_vm4, %vm2370_vm0 }
 0x48f   :  { %v2365_v21 = vmul.f32 %v3951_v9, %v2364_v17  ;;  %vm2381_vm15 = vmor %vm2379_vm6, %vm2380_vm3  ;;  %vm2389_vm3 = vweird.f32 %v2361_v37 }
 0x490   :  { %v2375_v50 = vmul.f32 %v3953_v14, %v2374_v58 }
 0x491   :  { %v2366_v55 = vmul.f32 0.5, %v2365_v21 }
 0x492   :  { %v2376_v60 = vmul.f32 0.5, %v2375_v50 }
 0x493   :  { %v3955_v45 = vpop.eup %3954  ;;  %v2367_v61 = vsub.f32 1.5, %v2366_v55 }
 0x494   :  { %v3957_v29 = vpop.eup %3956  ;;  %v2377_v15 = vsub.f32 1.5, %v2376_v60  ;;  %v2384_v1 = vmul.f32 %v3955_v45, %v2361_v37  ;;  %vm2390_vm14 = vweird.f32 %v3955_v45 }
 0x495   :  { %v2368_v43 = vmul.f32 %v3951_v9, %v2367_v61  ;;  %v2394_v42 = vmul.f32 %v3957_v29, %v2362_v4  ;;  %vm2400_vm0 = vweird.f32 %v3957_v29  ;;  %vm2391_vm4 = vmor %vm2389_vm3, %vm2390_vm14 }
 0x496   :  { %v2378_v52 = vmul.f32 %v3953_v14, %v2377_v15  ;;  %v2385_v46 = vmul.f32 %v3955_v45, %v2384_v1 }
 0x497   :  { %v2372_v27 = vsel %vm2371_vm5, %v3951_v9, %v2368_v43  ;;  %v2395_v56 = vmul.f32 %v3957_v29, %v2394_v42 }
 0x498   :  { %v2403_v6 = vmul.f32 %v2372_v27, %v2355_v20  ;;  %v2382_v18 = vsel %vm2381_vm15, %v3953_v14, %v2378_v52  ;;  %v2386_v19 = vmul.f32 0.5, %v2385_v46  ;;  %vm2399_vm15 = vweird.f32 %v2362_v4 }
 0x499   :  { %v2404_v11 = vmul.f32 %v2382_v18, %v2356_v16  ;;  %v2396_v8 = vmul.f32 0.5, %v2395_v56  ;;  %vm2401_vm5 = vmor %vm2399_vm15, %vm2400_vm0 }
 0x49a   :  { %v2387_v39 = vsub.f32 1.5, %v2386_v19  ;;  %v2416_v33 = vmul.f32 %v2408_v5, %v2403_v6 }
 0x49b   :  { %v2397_v53 = vsub.f32 1.5, %v2396_v8  ;;  %v2417_v7 = vmul.f32 %v2409_v28, %v2404_v11 }
 0x49c   :  { %v2388_v2 = vmul.f32 %v3955_v45, %v2387_v39  ;;  %v5864_v0 = vadd.f32 %v2421_v63, %v2416_v33 }
 0x49d   :  { %v2398_v48 = vmul.f32 %v3957_v29, %v2397_v53  ;;  %v5866_v23 = vadd.f32 %v2422_v62, %v2417_v7 }
 0x49e   :  { %v2392_v24 = vsel %vm2391_vm4, %v3955_v45, %v2388_v2  ;;  %v5871_v36 = vmul.f32 0.70710677, %v5864_v0 }
 0x49f   :  { %v2405_v3 = vmul.f32 %v2392_v24, %v2357_v35  ;;  %v2402_v32 = vsel %vm2401_vm5, %v3957_v29, %v2398_v48  ;;  %v5874_v38 = vmul.f32 0.70710677, %v5866_v23 }
 0x4a0   :  { %v2406_v41 = vmul.f32 %v2402_v32, %v2358_v25  ;;  %v2441_v47 = vmul.f32 %v5871_v36, %v5871_v36 }
 0x4a1   :  { %v2481_v10 = vmul.f32 %v5874_v38, %v5874_v38  ;;  %v2418_v54 = vmul.f32 %v2410_v12, %v2405_v3 }
 0x4a2   :  { %v2442_v37 = vmin.f32 %v2441_v47, 16.0  ;;  %v2419_v4 = vmul.f32 %v2411_v30, %v2406_v41 }
 0x4a3   :  { %v5880_v9 = vmin.f32 %v2481_v10, 16.0  ;;  %v5882_v14 = vadd.f32 %v2423_v40, %v2418_v54 }
 0x4a4   :  { %v2443_v17 = vmul.f32 2.1237322e-06, %v2442_v37  ;;  %v2454_v58 = vmul.f32 3.8918573e-05, %v2442_v37  ;;  %v5884_v21 = vadd.f32 %v2424_v49, %v2419_v4 }
 0x4a5   :  { %v2483_v50 = vmul.f32 2.1237322e-06, %v5880_v9  ;;  %v2494_v55 = vmul.f32 3.8918573e-05, %v5880_v9  ;;  %v5889_v61 = vmul.f32 0.70710677, %v5882_v14 }
 0x4a6   :  { %v2444_v60 = vadd.f32 0.00028619796, %v2443_v17  ;;  %v2455_v45 = vadd.f32 0.001143296, %v2454_v58  ;;  %v5894_v43 = vmul.f32 0.70710677, %v5884_v21 }
 0x4a7   :  { %v2484_v13 = vadd.f32 0.00028619796, %v2483_v50  ;;  %v2495_v29 = vadd.f32 0.001143296, %v2494_v55  ;;  %v2521_v20 = vmul.f32 %v5889_v61, %v5889_v61 }
 0x4a8   :  { %v2445_v15 = vmul.f32 %v2444_v60, %v2442_v37  ;;  %v2456_v1 = vmul.f32 %v2455_v45, %v2442_v37  ;;  %v2561_v16 = vmul.f32 %v5894_v43, %v5894_v43 }
 0x4a9   :  { %v2485_v42 = vmul.f32 %v2484_v13, %v5880_v9  ;;  %v2496_v34 = vmul.f32 %v2495_v29, %v5880_v9  ;;  %v5898_v5 = vmin.f32 %v2521_v20, 16.0 }
 0x4aa   :  { %v2446_v52 = vadd.f32 0.0036580483, %v2445_v15  ;;  %v2457_v46 = vadd.f32 0.014752088, %v2456_v1  ;;  %v5906_v8 = vmin.f32 %v2561_v16, 16.0 }
 0x4ab   :  { %v2486_v27 = vadd.f32 0.0036580483, %v2485_v42  ;;  %v2497_v56 = vadd.f32 0.014752088, %v2496_v34  ;;  %v2523_v18 = vmul.f32 2.1237322e-06, %v5898_v5 }
 0x4ac   :  { %v2447_v28 = vmul.f32 %v2446_v52, %v2442_v37  ;;  %v2458_v6 = vmul.f32 %v2457_v46, %v2442_v37  ;;  %v2534_v19 = vmul.f32 3.8918573e-05, %v5898_v5  ;;  %v2563_v30 = vmul.f32 2.1237322e-06, %v5906_v8 }
 0x4ad   :  { %v2487_v63 = vmul.f32 %v2486_v27, %v5880_v9  ;;  %v2498_v11 = vmul.f32 %v2497_v56, %v5880_v9  ;;  %v2524_v33 = vadd.f32 0.00028619796, %v2523_v18  ;;  %v2574_v3 = vmul.f32 3.8918573e-05, %v5906_v8 }
 0x4ae   :  { %v2448_v62 = vadd.f32 0.05243302, %v2447_v28  ;;  %v2459_v39 = vadd.f32 0.112945676, %v2458_v6  ;;  %v2535_v7 = vadd.f32 0.001143296, %v2534_v19 }
 0x4af   :  { %v2499_v53 = vadd.f32 0.112945676, %v2498_v11  ;;  %v2488_v35 = vadd.f32 0.05243302, %v2487_v63  ;;  %v2525_v12 = vmul.f32 %v2524_v33, %v5898_v5  ;;  %v2564_v58 = vadd.f32 0.00028619796, %v2563_v30 }
 0x4b0   :  { %v2449_v2 = vmul.f32 %v2448_v62, %v2442_v37  ;;  %v2460_v48 = vmul.f32 %v2459_v39, %v2442_v37  ;;  %v2536_v24 = vmul.f32 %v2535_v7, %v5898_v5  ;;  %v2575_v50 = vadd.f32 0.001143296, %v2574_v3 }
 0x4b1   :  { %v2500_v25 = vmul.f32 %v2499_v53, %v5880_v9  ;;  %v2489_v47 = vmul.f32 %v2488_v35, %v5880_v9  ;;  %v2526_v54 = vadd.f32 0.0036580483, %v2525_v12  ;;  %v2565_v20 = vmul.f32 %v2564_v58, %v5906_v8 }
 0x4b2   :  { %v2461_v32 = vadd.f32 0.4994258, %v2460_v48  ;;  %v2537_v41 = vadd.f32 0.014752088, %v2536_v24  ;;  %v2450_v49 = vadd.f32 0.18741608, %v2449_v2  ;;  %v2576_v13 = vmul.f32 %v2575_v50, %v5906_v8 }
 0x4b3   :  { %v2501_v40 = vadd.f32 0.4994258, %v2500_v25  ;;  %v2490_v29 = vadd.f32 0.18741608, %v2489_v47  ;;  %v2527_v1 = vmul.f32 %v2526_v54, %v5898_v5  ;;  %v2566_v56 = vadd.f32 0.0036580483, %v2565_v20 }
 0x4b4   :  { %v2462_v10 = vmul.f32 %v2461_v32, %v2442_v37  ;;  %v2538_v17 = vmul.f32 %v2537_v41, %v5898_v5  ;;  %v2451_v15 = vmul.f32 %v2450_v49, %v2442_v37  ;;  %v2577_v34 = vadd.f32 0.014752088, %v2576_v13 }
 0x4b5   :  { %v2502_v4 = vmul.f32 %v2501_v40, %v5880_v9  ;;  %v2491_v52 = vmul.f32 %v2490_v29, %v5880_v9  ;;  %v2528_v16 = vadd.f32 0.05243302, %v2527_v1  ;;  %v2567_v7 = vmul.f32 %v2566_v56, %v5906_v8 }
 0x4b6   :  { %v2463_v55 = vadd.f32 1.0, %v2462_v10  ;;  %v2539_v45 = vadd.f32 0.112945676, %v2538_v17  ;;  %v2452_v46 = vadd.f32 1.1283791, %v2451_v15  ;;  %v2578_v28 = vmul.f32 %v2577_v34, %v5906_v8 }
 0x4b7   :  { %v2503_v60 = vadd.f32 1.0, %v2502_v4  ;;  %v2492_v63 = vadd.f32 1.1283791, %v2491_v52  ;;  %v2529_v53 = vmul.f32 %v2528_v16, %v5898_v5  ;;  %v2568_v41 = vadd.f32 0.05243302, %v2567_v7 }
 0x4b8   :  { %3958 = vrcp.f32 %v2463_v55  ;;  %v2540_v42 = vmul.f32 %v2539_v45, %v5898_v5  ;;  %v2453_v62 = vmul.f32 %v2452_v46, %v5871_v36  ;;  %v2579_v39 = vadd.f32 0.112945676, %v2578_v28 }
 0x4b9   :  { %3960 = vrcp.f32 %v2503_v60  ;;  %v2473_v2 = vand.u32 2147483647, %v2463_v55  ;;  %v2475_v48 = vand.u32 2147483648, %v2463_v55  ;;  %v2515_v25 = vand.u32 2147483648, %v2503_v60 }
 0x4ba   :  { %v2541_v27 = vadd.f32 0.4994258, %v2540_v42  ;;  %v2580_v12 = vmul.f32 %v2579_v39, %v5906_v8  ;;  %v2513_v36 = vand.u32 2147483647, %v2503_v60  ;;  %vm2469_vm0 = vweird.f32 %v2463_v55 }
 0x4bb   :  { %v2530_v40 = vadd.f32 0.18741608, %v2529_v53  ;;  %vm2509_vm3 = vweird.f32 %v2503_v60  ;;  %v2476_v49 = vor.u32 1.1754944e-38, %v2475_v48  ;;  %v2493_v54 = vmul.f32 %v2492_v63, %v5874_v38 }
 0x4bc   :  { %v2542_v19 = vmul.f32 %v2541_v27, %v5898_v5  ;;  %v2581_v3 = vadd.f32 0.4994258, %v2580_v12  ;;  %v2516_v4 = vor.u32 1.1754944e-38, %v2515_v25  ;;  %vm2474_vm5 = vcmp.eq.f32.partialorder %v2473_v2, 8.507059e+37 }
 0x4bd   :  { %vm2514_vm13 = vcmp.eq.f32.partialorder %v2513_v36, 8.507059e+37  ;;  %v2531_v15 = vmul.f32 %v2530_v40, %v5898_v5  ;;  %v2434_v38 = vmul.f32 0.5, %v5866_v23  ;;  %v2433_v52 = vmul.f32 0.5, %v5864_v0 }
 0x4be   :  { %v3959_v6 = vpop.eup %3958  ;;  %v5925_v9 = vadd.f32 1.0, %v2542_v19  ;;  %v2582_v10 = vmul.f32 %v2581_v3, %v5906_v8 }
 0x4bf   :  { %v3961_v18 = vpop.eup %3960  ;;  %v2465_v37 = vmul.f32 %v3959_v6, %v2463_v55  ;;  %vm2470_vm14 = vweird.f32 %v3959_v6  ;;  %v2532_v27 = vadd.f32 1.1283791, %v2531_v15 }
 0x4c0   :  { %v2505_v11 = vmul.f32 %v3961_v18, %v2503_v60  ;;  %3962 = vrcp.f32 %v5925_v9  ;;  %vm2510_vm6 = vweird.f32 %v3961_v18  ;;  %vm2471_vm4 = vmor %vm2469_vm0, %vm2470_vm14  ;;  %v2583_v45 = vadd.f32 1.0, %v2582_v10 }
 0x4c1   :  { %v2466_v33 = vsub.f32 1.0, %v2465_v37  ;;  %vm2511_vm15 = vmor %vm2509_vm3, %vm2510_vm6  ;;  %v2569_v60 = vmul.f32 %v2568_v41, %v5906_v8  ;;  %v2555_v56 = vand.u32 2147483648, %v5925_v9  ;;  %vm2549_vm14 = vweird.f32 %v5925_v9 }
 0x4c2   :  { %v2506_v35 = vsub.f32 1.0, %v2505_v11  ;;  %3964 = vrcp.f32 %v2583_v45  ;;  %v2595_v48 = vand.u32 2147483648, %v2583_v45  ;;  %v2593_v25 = vand.u32 2147483647, %v2583_v45 }
 0x4c3   :  { %v2467_v24 = vmul.f32 %v3959_v6, %v2466_v33  ;;  %v2570_v28 = vadd.f32 0.18741608, %v2569_v60  ;;  %v2556_v0 = vor.u32 1.1754944e-38, %v2555_v56 }
 0x4c4   :  { %v2507_v30 = vmul.f32 %v3961_v18, %v2506_v35  ;;  %v2596_v36 = vor.u32 1.1754944e-38, %v2595_v48  ;;  %v6355_v48 = vld [vmem:[#allocation19_spill] sm:$0xff] }
 0x4c5   :  { %v2468_v32 = vadd.f32 %v3959_v6, %v2467_v24  ;;  %v2571_v11 = vmul.f32 %v2570_v28, %v5906_v8  ;;  %v2435_v24 = vmul.f32 0.5, %v5882_v14  ;;  %v6346_v28 = vld [vmem:[#allocation2_spill] sm:$0xff] }
 0x4c6   :  { %v2508_v47 = vadd.f32 %v3961_v18, %v2507_v30  ;;  %v3963_v13 = vpop.eup %3962 }
 0x4c7   :  { %v2472_v17 = vsel %vm2471_vm4, %v3959_v6, %v2468_v32  ;;  %v2545_v20 = vmul.f32 %v3963_v13, %v5925_v9  ;;  %v2572_v2 = vadd.f32 1.1283791, %v2571_v11  ;;  %vm2589_vm4 = vweird.f32 %v2583_v45  ;;  %v6351_v11 = vld [vmem:[#allocation16_spill] sm:$0xff] }
 0x4c8   :  { %v2512_v58 = vsel %vm2511_vm15, %v3961_v18, %v2508_v47  ;;  %v2477_v50 = vsel %vm2474_vm5, %v2476_v49, %v2472_v17  ;;  %v2553_v18 = vand.u32 2147483647, %v5925_v9  ;;  %v3965_v23 = vpop.eup %3964  ;;  %vm2594_vm5 = vcmp.eq.f32.partialorder %v2593_v25, 8.507059e+37 }
 0x4c9   :  { %v2517_v55 = vsel %vm2514_vm13, %v2516_v4, %v2512_v58  ;;  %v2478_v29 = vmul.f32 %v2477_v50, %v2453_v62  ;;  %v2546_v46 = vsub.f32 1.0, %v2545_v20  ;;  %vm2550_vm13 = vweird.f32 %v3963_v13 }
 0x4ca   :  { %v2518_v1 = vmul.f32 %v2517_v55, %v2493_v54  ;;  %vm2551_vm6 = vmor %vm2549_vm14, %vm2550_vm13  ;;  %v2533_v62 = vmul.f32 %v2532_v27, %v5889_v61  ;;  %vm2554_vm0 = vcmp.eq.f32.partialorder %v2553_v18, 8.507059e+37  ;;  %v2585_v33 = vmul.f32 %v3965_v23, %v2583_v45  ;;  %v6348_v18 = vld [vmem:[#allocation18_spill] sm:$0xff] }
 0x4cb   :  { %v3830_v42 = vclamps-f32 %v2478_v29, 1.0  ;;  %v2547_v5 = vmul.f32 %v3963_v13, %v2546_v46  ;;  %vm2590_vm3 = vweird.f32 %v3965_v23  ;;  %v2573_v3 = vmul.f32 %v2572_v2, %v5894_v43 }
 0x4cc   :  { %v3831_v34 = vclamps-f32 %v2518_v1, 1.0  ;;  %v2586_v35 = vsub.f32 1.0, %v2585_v33  ;;  %vm2591_vm15 = vmor %vm2589_vm4, %vm2590_vm3  ;;  %v2436_v49 = vmul.f32 0.5, %v5884_v21  ;;  %v6339_v43 = vperm.slane %v4936_v44, 0 }
 0x4cd   :  { %v2601_v16 = vadd.f32 1.0, %v3830_v42  ;;  %v2548_v63 = vadd.f32 %v3963_v13, %v2547_v5  ;;  %v6340_v55 = vperm.slane %v4936_v44, 1  ;;  %v6341_v42 = vperm.slane %v4936_v44, 2 }
 0x4ce   :  { %v2602_v6 = vadd.f32 1.0, %v3831_v34  ;;  %v2587_v12 = vmul.f32 %v3965_v23, %v2586_v35  ;;  %v6354_v35 = vld [vmem:[#allocation4_spill] sm:$0xff]  ;;  %vm6378_vm13 = vcmask 769024  }
 0x4cf   :  { %v2605_v37 = vmul.f32 %v2601_v16, %v2433_v52  ;;  %v2552_v39 = vsel %vm2551_vm6, %v3963_v13, %v2548_v63  ;;  %v6343_v52 = vld [vmem:[#allocation17_spill] sm:$0xff] }
 0x4d0   :  { %v2606_v19 = vmul.f32 %v2602_v6, %v2434_v38  ;;  %v2557_v53 = vsel %vm2554_vm0, %v2556_v0, %v2552_v39  ;;  %v2588_v8 = vadd.f32 %v3965_v23, %v2587_v12  ;;  %v6344_v16 = vld [vmem:[#allocation9_spill] sm:$0xff]  ;;  %v6352_v39 = vld [vmem:[#allocation11_spill] sm:$0xff]  ;;  %v6356_v12 = vld [vmem:[#allocation26_spill] sm:$0xff] }
 0x4d1   :  { %2613 = vrot.lane.b32.xlu2 %v2605_v37, %s4055_s24  ;;  %v2558_v7 = vmul.f32 %v2557_v53, %v2533_v62  ;;  %v6353_v53 = vld [vmem:[#allocation24_spill] sm:$0xff]  ;;  %vm6381_vm0 = vmmov %vm6378_vm13 }
 0x4d2   :  { %2615 = vrot.lane.b32.xlu1 %v2606_v19, %s4055_s24  ;;  %v2592_v32 = vsel %vm2591_vm15, %v3965_v23, %v2588_v8  ;;  %v6349_v19 = vld [vmem:[#allocation15_spill] sm:$0xff]  ;;  %v6350_v23 = vld [vmem:[#allocation21_spill] sm:$0xff]  ;;  %vm6382_vm3 = vmmov %vm6381_vm0 }
 0x4d3   :  { %v3832_v9 = vclamps-f32 %v2558_v7, 1.0  ;;  %v2597_v40 = vsel %vm2594_vm5, %v2596_v36, %v2592_v32  ;;  %v6358_v8 = vld [vmem:[#allocation31_spill] sm:$0xff]  ;;  %vm6383_vm4 = vmmov %vm6381_vm0 }
 0x4d4   :  { %v2598_v41 = vmul.f32 %v2597_v40, %v2573_v3  ;;  %v6360_v32 = vld [vmem:[#allocation23_spill] sm:$0xff] }
 0x4d5   :  { %v2603_v30 = vadd.f32 1.0, %v3832_v9 }
 0x4d6   :  { %v3833_v47 = vclamps-f32 %v2598_v41, 1.0  ;;  %v6361_v41 = vld [vmem:[#allocation3_spill] sm:$0xff] }
 0x4d7   :  { %v2607_v61 = vmul.f32 %v2603_v30, %v2435_v24  ;;  %v6357_v24 = vld [vmem:[#allocation12_spill] sm:$0xff] }
 0x4d8   :  { %v2604_v10 = vadd.f32 1.0, %v3833_v47 }
 0x4da   :  { %2617 = vrot.lane.b32.xlu1 %v2607_v61, %s4055_s24  ;;  %v2608_v54 = vmul.f32 %v2604_v10, %v2436_v49  ;;  %v6359_v61 = vld [vmem:[#allocation10_spill] sm:$0xff]  ;;  %v6362_v49 = vld [vmem:[#allocation25_spill] sm:$0xff] }
 0x4dc   :  { %2619 = vrot.lane.b32.xlu2 %v2608_v54, %s4055_s24  ;;  %v6363_v54 = vld [vmem:[#allocation7_spill] sm:$0xff] }
 0x52b   :  { %v2614_v14 = vpop.permute.xlu2 %2613 }
 0x52c   :  { %v5950_v4 = vsel %vm745_vm1, 0.0, %v2614_v14 }
 0x52d   :  { %3108 = vrot.lane.b32.xlu1 %v5950_v4, %s4056_s3  ;;  %v2637_v17 = vmul.f32 %v5950_v4, %v6339_v43  ;;  %v2741_v21 = vmul.f32 %v5950_v4, %v4905_v31  ;;  %v2862_v34 = vmul.f32 %v5950_v4, %v4970_v59  ;;  %v6347_v59 = vld [vmem:[#allocation14_spill] sm:$0xff]  ;;  %v3338_v30 = vmul.f32 %v5950_v4, %v6357_v24  ;;  %v6364_v43 = vld [vmem:[#allocation20_spill] sm:$0xff] }
 0x52e   :  { %v3459_v10 = vmul.f32 %v5950_v4, %v6362_v49  ;;  %v3887_v49 = vld [vmem:[%s6254_s10 + $0x18] sm:$0xf] }
 0x52f   :  { %3834 = vmatpush.msk.msrb.mxu0 %vm781_vm2, %v2637_v17 }
 0x535   :  { %2753 = vrot.lane.b32.xlu1 %v2741_v21, %s4057_s27  ;;  %v6365_v21 = vld [vmem:[#allocation30_spill] sm:$0xff] }
 0x536   :  { %v2620_v31 = vpop.permute.xlu2 %2619 }
 0x544   :  { %v2616_v58 = vpop.permute.xlu1 %2615 }
 0x545   :  { %v5962_v50 = vsel %vm745_vm1, %v2614_v14, %v2616_v58 }
 0x546   :  { %3110 = vrot.lane.b32.xlu0 %v5962_v50, %s4056_s3  ;;  %v2984_v45 = vmul.f32 %v5962_v50, %v5015_v57  ;;  %v2863_v13 = vmul.f32 %v5962_v50, %v4976_v26  ;;  %v2638_v29 = vmul.f32 %v5962_v50, %v6340_v55  ;;  %v2742_v15 = vmul.f32 %v5962_v50, %v4947_v51  ;;  %v2641_v55 = vld [vmem:[%s6254_s10] sm:$0xf] }
 0x547   :  { %v2983_v26 = vmul.f32 %v5950_v4, %v4903_v22  ;;  %v5982_v57 = vsel %vm745_vm1, %v2620_v31, 0.0  ;;  %v6342_v51 = vperm.slane %v4936_v44, 3  ;;  %v3218_v46 = vmul.f32 %v5962_v50, %v6343_v52  ;;  %v6345_v44 = vld [vmem:[#allocation8_spill] sm:$0xff]  ;;  %3835 = vmatmul.msk.f32.vlgmr.msrb.gmra.mxu0 %vm777_vm7, %v2641_v55 }
 0x548   :  { %2997 = vrot.lane.b32.xlu1 %v2984_v45, %s4059_s29  ;;  %2876 = vrot.lane.b32.xlu2 %v2863_v13, %s4058_s28  ;;  %v2745_v27 = vmul.f32 %v5982_v57, %v6344_v16  ;;  %v3217_v56 = vmul.f32 %v5950_v4, %v6345_v44  ;;  %v3339_v0 = vmul.f32 %v5962_v50, %v6350_v23  ;;  %v6366_v45 = vld [vmem:[#allocation27_spill] sm:$0xff]  ;;  %v6371_v52 = vld [vmem:[#allocation28_spill] sm:$0xff] }
 0x549   :  { %3836 = vmatpush.msk.msrb.mxu1 %vm781_vm2, %v2638_v29  ;;  %v2866_v33 = vmul.f32 %v5982_v57, %v6352_v39  ;;  %v2987_v2 = vmul.f32 %v5982_v57, %v6354_v35  ;;  %v3460_v36 = vmul.f32 %v5962_v50, %v6358_v8  ;;  %v3463_v3 = vmul.f32 %v5982_v57, %v6359_v61  ;;  %v6367_v29 = vld [vmem:[#allocation22_spill] sm:$0xff]  ;;  %v2631_v35 = vld [vmem:[%s6255_s11] sm:$0xf]  ;;  %v3878_v61 = vld [vmem:[%s6254_s10 + $0x14] sm:$0xf] }
 0x54a   :  { %v3221_v47 = vmul.f32 %v5982_v57, %v6361_v41  ;;  %v3342_v14 = vmul.f32 %v5982_v57, %v6363_v54  ;;  %3837 = vmatmul.msk.f32.vlgmr.msrb.gmra.mxu1 %vm777_vm7, %v2641_v55 }
 0x54c   :  { %v2618_v60 = vpop.permute.xlu1 %2617 }
 0x54d   :  { %v2622_v1 = vsel %vm745_vm1, %v2616_v58, %v2618_v60  ;;  %v5986_v20 = vsel %vm745_vm1, %v2618_v60, %v2620_v31  ;;  %vm6372_vm1 = vcmask 785408  }
 0x54e   :  { %2755 = vrot.lane.b32.xlu0 %v2742_v15, %s4057_s27  ;;  %v2639_v38 = vmul.f32 %v2622_v1, %v6341_v42  ;;  %v2640_v22 = vmul.f32 %v5986_v20, %v6342_v51  ;;  %v2864_v6 = vmul.f32 %v2622_v1, %v6346_v28  ;;  %v2743_v5 = vmul.f32 %v2622_v1, %v6347_v59  ;;  %v6368_v15 = vld [vmem:[#allocation29_spill] sm:$0xff] }
 0x54f   :  { %v2986_v37 = vmul.f32 %v5986_v20, %v6348_v18  ;;  %v2744_v63 = vmul.f32 %v5986_v20, %v6349_v19  ;;  %v2865_v62 = vmul.f32 %v5986_v20, %v6351_v11  ;;  %v3219_v7 = vmul.f32 %v2622_v1, %v6353_v53  ;;  %v3851_v18 = vld [vmem:[%s6254_s10 + $0x8] sm:$0xf] }
 0x550   :  { %2995 = vrot.lane.b32.xlu2 %v2983_v26, %s4059_s29  ;;  %3116 = vrot.lane.b32.xlu1 %v5982_v57, %s4056_s3  ;;  %v2985_v9 = vmul.f32 %v2622_v1, %v6355_v48  ;;  %v3341_v25 = vmul.f32 %v5986_v20, %v6356_v12  ;;  %v3220_v40 = vmul.f32 %v5986_v20, %v6360_v32  ;;  %v3869_v48 = vld [vmem:[%s6254_s10 + $0x10] sm:$0xf] }
 0x551   :  { %3838 = vmatpush.msk.msrb.mxu2 %vm781_vm2, %v2639_v38  ;;  %3840 = vmatpush.msk.msrb.mxu3 %vm781_vm2, %v2640_v22  ;;  %v3340_v17 = vmul.f32 %v2622_v1, %v6364_v43  ;;  %v3582_v58 = vmul.f32 %v2622_v1, %v6365_v21  ;;  %v3461_v13 = vmul.f32 %v2622_v1, %v6366_v45  ;;  %v6370_v38 = vld [vmem:[#allocation32_spill] sm:$0xff] }
 0x552   :  { %v3462_v31 = vmul.f32 %v5986_v20, %v6367_v29  ;;  %3839 = vmatmul.msk.f32.vlgmr.msrb.gmra.mxu2 %vm777_vm7, %v2641_v55  ;;  %3841 = vmatmul.msk.f32.vlgmr.msrb.gmra.mxu3 %vm777_vm7, %v2641_v55  ;;  %v3583_v60 = vmul.f32 %v5986_v20, %v6368_v15  ;;  %v3581_v51 = vmul.f32 %v5962_v50, %v6370_v38  ;;  %v3842_v50 = vld [vmem:[%s6254_s10 + $0x4] sm:$0xf] }
 0x556   :  { %2874 = vrot.lane.b32.xlu0 %v2862_v34, %s4058_s28 }
 0x558   :  { %3231 = vrot.lane.b32.xlu2 %v3218_v46, %s4060_s30  ;;  %2761 = vrot.lane.b32.xlu1 %v2745_v27, %s4057_s27  ;;  %v3580_v46 = vmul.f32 %v5950_v4, %v6371_v52 }
 0x55e   :  { %3229 = vrot.lane.b32.xlu0 %v3217_v56, %s4060_s30 }
 0x560   :  { %3112 = vrot.lane.b32.xlu2 %v2622_v1, %s4056_s3  ;;  %2878 = vrot.lane.b32.xlu1 %v2864_v6, %s4058_s28  ;;  %v6369_v1 = vld [vmem:[#allocation13_spill] sm:$0xff] }
 0x561   :  { %v3584_v42 = vmul.f32 %v5982_v57, %v6369_v1 }
 0x566   :  { %3114 = vrot.lane.b32.xlu0 %v5986_v20, %s4056_s3 }
 0x568   :  { %2757 = vrot.lane.b32.xlu2 %v2743_v5, %s4057_s27  ;;  %3001 = vrot.lane.b32.xlu1 %v2986_v37, %s4059_s29 }
 0x56e   :  { %2759 = vrot.lane.b32.xlu0 %v2744_v63, %s4057_s27 }
 0x570   :  { %3352 = vrot.lane.b32.xlu1 %v3339_v0, %s4061_s13  ;;  %2880 = vrot.lane.b32.xlu2 %v2865_v62, %s4058_s28  ;;  %v3860_v62 = vld [vmem:[%s6254_s10 + $0xc] sm:$0xf] }
 0x576   :  { %2882 = vrot.lane.b32.xlu0 %v2866_v33, %s4058_s28 }
 0x578   :  { %3233 = vrot.lane.b32.xlu1 %v3219_v7, %s4060_s30  ;;  %3003 = vrot.lane.b32.xlu2 %v2987_v2, %s4059_s29 }
 0x57e   :  { %2999 = vrot.lane.b32.xlu0 %v2985_v9, %s4059_s29 }
 0x580   :  { %3356 = vrot.lane.b32.xlu1 %v3341_v25, %s4061_s13  ;;  %3350 = vrot.lane.b32.xlu2 %v3338_v30, %s4061_s13 }
 0x586   :  { %3473 = vrot.lane.b32.xlu0 %v3460_v36, %s4062_s14 }
 0x588   :  { %3479 = vrot.lane.b32.xlu1 %v3463_v3, %s4062_s14  ;;  %3235 = vrot.lane.b32.xlu2 %v3220_v40, %s4060_s30 }
 0x58e   :  { %3237 = vrot.lane.b32.xlu0 %v3221_v47, %s4060_s30 }
 0x590   :  { %3471 = vrot.lane.b32.xlu1 %v3459_v10, %s4062_s14  ;;  %3358 = vrot.lane.b32.xlu2 %v3342_v14, %s4061_s13 }
 0x596   :  { %3354 = vrot.lane.b32.xlu0 %v3340_v17, %s4061_s13 }
 0x598   :  { %3596 = vrot.lane.b32.xlu1 %v3582_v58, %s4063_s17  ;;  %3475 = vrot.lane.b32.xlu2 %v3461_v13, %s4062_s14 }
 0x59e   :  { %3477 = vrot.lane.b32.xlu0 %v3462_v31, %s4062_s14 }
 0x59f   :  { %v3109_v22 = vpop.permute.xlu1 %3108 }
 0x5a0   :  { %3598 = vrot.lane.b32.xlu2 %v3583_v60, %s4063_s17  ;;  %2634 = vperm.xlu1 %3933, %v2631_v35  }
 0x5a2   :  { %v2877_v26 = vpop.permute.xlu2 %2876 }
 0x5a6   :  { %3600 = vrot.lane.b32.xlu0 %v3584_v42, %s4063_s17 }
 0x5a7   :  { %v2754_v20 = vpop.permute.xlu1 %2753 }
 0x5a8   :  { %3594 = vrot.lane.b32.xlu2 %v3581_v51, %s4063_s17  ;;  %v3896_v51 = vld [vmem:[%s6254_s10 + $0x1c] sm:$0xf] }
 0x5aa   :  { %v2996_v34 = vpop.permute.xlu2 %2995 }
 0x5ae   :  { %3592 = vrot.lane.b32.xlu0 %v3580_v46, %s4063_s17 }
 0x5b2   :  { %v6091_v16 = vpop.permute.xlu2 %3231 }
 0x5b8   :  { %v6093_v27 = vpop.permute.xlu0 %3110 }
 0x5b9   :  { %v3118_v0 = vsel %vm1330_vm11, %v3109_v22, %v6093_v27 }
 0x5ba   :  { %v6095_v57 = vpop.permute.xlu1 %2997  ;;  %v6097_v44 = vpop.permute.xlu2 %3112 }
 0x5bb   :  { %v3005_v23 = vsel %vm1216_vm10, %v2996_v34, %v6095_v57  ;;  %v3119_v45 = vsel %vm1330_vm11, %v6093_v27, %v6097_v44 }
 0x5c0   :  { %v2756_v56 = vpop.permute.xlu0 %2755 }
 0x5c1   :  { %v2763_v28 = vsel %vm924_vm8, %v2754_v20, %v2756_v56 }
 0x5c2   :  { %3843 = vmatpush.msk.msra.mxu0 %vm781_vm2, %v2763_v28  ;;  %v3117_v4 = vpop.permute.xlu1 %3116  ;;  %v2758_v6 = vpop.permute.xlu2 %2757 }
 0x5c3   :  { %v2764_v59 = vsel %vm924_vm8, %v2756_v56, %v2758_v6  ;;  %3844 = vmatmul.msk.f32.vlgmr.msra.gmra.mxu0 %vm777_vm7, %v3842_v50 }
 0x5c4   :  { %3845 = vmatpush.msk.msra.mxu1 %vm781_vm2, %v2764_v59  ;;  %v3905_v59 = vld [vmem:[%s6254_s10 + $0x20] sm:$0xf] }
 0x5c5   :  { %3846 = vmatmul.msk.f32.vlgmr.msra.gmra.mxu1 %vm777_vm7, %v3842_v50 }
 0x5c8   :  { %v2875_v5 = vpop.permute.xlu0 %2874 }
 0x5c9   :  { %v2884_v37 = vsel %vm1070_vm9, %v2875_v5, %v2877_v26 }
 0x5ca   :  { %v2762_v19 = vpop.permute.xlu1 %2761  ;;  %3852 = vmatpush.msk.msrb.mxu0 %vm781_vm2, %v2884_v37  ;;  %v2881_v63 = vpop.permute.xlu2 %2880 }
 0x5cb   :  { %3853 = vmatmul.msk.f32.vlgmr.msrb.gmra.mxu0 %vm777_vm7, %v3851_v18 }
 0x5cc   :  { %3861 = vmatpush.msk.msra.mxu0 %vm781_vm2, %v3005_v23 }
 0x5ce   :  { %3870 = vmatpush.msk.msrb.mxu0 %vm781_vm2, %v3118_v0 }
 0x5d0   :  { %v3230_v11 = vpop.permute.xlu0 %3229 }
 0x5d1   :  { %v3239_v39 = vsel %vm1476_vm12, %v3230_v11, %v6091_v16 }
 0x5d2   :  { %v2879_v33 = vpop.permute.xlu1 %2878  ;;  %v3004_v53 = vpop.permute.xlu2 %3003 }
 0x5d3   :  { %v2885_v7 = vsel %vm1070_vm9, %v2877_v26, %v2879_v33  ;;  %3862 = vmatmul.msk.f32.vlgmr.msra.gmra.mxu0 %vm777_vm7, %v3860_v62  ;;  %v2886_v3 = vsel %vm1070_vm9, %v2879_v33, %v2881_v63 }
 0x5d4   :  { %3879 = vmatpush.msk.msra.mxu0 %vm781_vm2, %v3239_v39  ;;  %3854 = vmatpush.msk.msrb.mxu1 %vm781_vm2, %v2885_v7 }
 0x5d5   :  { %3855 = vmatmul.msk.f32.vlgmr.msrb.gmra.mxu1 %vm777_vm7, %v3851_v18  ;;  %v2714_v23 = vpop.f32.mrf.mxu2  ;;  %v2734_v0 = vpop.f32.mrf.mxu3 }
 0x5d8   :  { %v3115_v2 = vpop.permute.xlu0 %3114 }
 0x5d9   :  { %v3121_v54 = vsel %vm1330_vm11, %v3115_v2, %v3117_v4  ;;  %v3120_v13 = vsel %vm1330_vm11, %v6097_v44, %v3115_v2  ;;  %vm6376_vm11 = vmmov %vm6372_vm1 }
 0x5da   :  { %v3002_v9 = vpop.permute.xlu1 %3001  ;;  %v3351_v12 = vpop.permute.xlu2 %3350 }
 0x5db   :  { %3871 = vmatmul.msk.f32.vlgmr.msrb.gmra.mxu0 %vm777_vm7, %v3869_v48  ;;  %v3008_v10 = vsel %vm1216_vm10, %v3002_v9, %v3004_v53 }
 0x5e0   :  { %v2760_v25 = vpop.permute.xlu0 %2759 }
 0x5e1   :  { %v2765_v24 = vsel %vm924_vm8, %v2758_v6, %v2760_v25  ;;  %v2766_v30 = vsel %vm924_vm8, %v2760_v25, %v2762_v19  ;;  %vm6373_vm8 = vcmask 777216   ;;  %v2674_v19 = vpop.f32.mrf.mxu0 }
 0x5e2   :  { %v6139_v8 = vpop.permute.xlu1 %3352  ;;  %3847 = vmatpush.msk.msra.mxu2 %vm781_vm2, %v2765_v24  ;;  %3849 = vmatpush.msk.msra.mxu3 %vm781_vm2, %v2766_v30  ;;  %v3236_v36 = vpop.permute.xlu2 %3235  ;;  %vm6379_vm14 = vmmov %vm6373_vm8 }
 0x5e3   :  { %v3360_v32 = vsel %vm6372_vm1, %v3351_v12, %v6139_v8  ;;  %3848 = vmatmul.msk.f32.vlgmr.msra.gmra.mxu2 %vm777_vm7, %v3842_v50  ;;  %3850 = vmatmul.msk.f32.vlgmr.msra.gmra.mxu3 %vm777_vm7, %v3842_v50  ;;  %vm6380_vm6 = vmmov %vm6373_vm8 }
 0x5e4   :  { %3856 = vmatpush.msk.msrb.mxu2 %vm781_vm2, %v2886_v3  ;;  %3888 = vmatpush.msk.msrb.mxu0 %vm781_vm2, %v3360_v32 }
 0x5e5   :  { %3880 = vmatmul.msk.f32.vlgmr.msra.gmra.mxu0 %vm777_vm7, %v3878_v61 }
 0x5e8   :  { %v2883_v40 = vpop.permute.xlu0 %2882 }
 0x5e9   :  { %v2887_v41 = vsel %vm1070_vm9, %v2881_v63, %v2883_v40  ;;  %vm6374_vm9 = vmmov %vm6372_vm1  ;;  %v2694_v63 = vpop.f32.mrf.mxu1 }
 0x5ea   :  { %v3234_v47 = vpop.permute.xlu1 %3233  ;;  %3858 = vmatpush.msk.msrb.mxu3 %vm781_vm2, %v2887_v41  ;;  %v3359_v14 = vpop.permute.xlu2 %3358 }
 0x5eb   :  { %3857 = vmatmul.msk.f32.vlgmr.msrb.gmra.mxu2 %vm777_vm7, %v3851_v18  ;;  %3859 = vmatmul.msk.f32.vlgmr.msrb.gmra.mxu3 %vm777_vm7, %v3851_v18  ;;  %v3240_v55 = vsel %vm1476_vm12, %v6091_v16, %v3234_v47  ;;  %v3241_v29 = vsel %vm1476_vm12, %v3234_v47, %v3236_v36 }
 0x5ec   :  { %3867 = vmatpush.msk.msra.mxu3 %vm781_vm2, %v3008_v10 }
 0x5ed   :  { %3889 = vmatmul.msk.f32.vlgmr.msrb.gmra.mxu0 %vm777_vm7, %v3887_v49 }
 0x5ee   :  { %3876 = vmatpush.msk.msrb.mxu3 %vm781_vm2, %v3121_v54 }
 0x5f0   :  { %v3000_v43 = vpop.permute.xlu0 %2999 }
 0x5f1   :  { %v3006_v17 = vsel %vm1216_vm10, %v6095_v57, %v3000_v43  ;;  %v3007_v21 = vsel %vm1216_vm10, %v3000_v43, %v3002_v9  ;;  %vm6375_vm10 = vmmov %vm6372_vm1 }
 0x5f2   :  { %v3357_v58 = vpop.permute.xlu1 %3356  ;;  %3863 = vmatpush.msk.msra.mxu1 %vm781_vm2, %v3006_v17  ;;  %3865 = vmatpush.msk.msra.mxu2 %vm781_vm2, %v3007_v21  ;;  %v3476_v31 = vpop.permute.xlu2 %3475 }
 0x5f3   :  { %3864 = vmatmul.msk.f32.vlgmr.msra.gmra.mxu1 %vm777_vm7, %v3860_v62  ;;  %3866 = vmatmul.msk.f32.vlgmr.msra.gmra.mxu2 %vm777_vm7, %v3860_v62  ;;  %v3363_v34 = vsel %vm6374_vm9, %v3357_v58, %v3359_v14 }
 0x5f4   :  { %3868 = vmatmul.msk.f32.vlgmr.msra.gmra.mxu3 %vm777_vm7, %v3860_v62  ;;  %3872 = vmatpush.msk.msrb.mxu1 %vm781_vm2, %v3119_v45 }
 0x5f5   :  { %3874 = vmatpush.msk.msrb.mxu2 %vm781_vm2, %v3120_v13 }
 0x5f6   :  { %3881 = vmatpush.msk.msra.mxu1 %vm781_vm2, %v3240_v55 }
 0x5f7   :  { %3883 = vmatpush.msk.msra.mxu2 %vm781_vm2, %v3241_v29 }
 0x5f8   :  { %v3474_v15 = vpop.permute.xlu0 %3473 }
 0x5fa   :  { %v3480_v60 = vpop.permute.xlu1 %3479  ;;  %v3599_v26 = vpop.permute.xlu2 %3598 }
 0x5fb   :  { %3873 = vmatmul.msk.f32.vlgmr.msrb.gmra.mxu1 %vm777_vm7, %v3869_v48  ;;  %3875 = vmatmul.msk.f32.vlgmr.msrb.gmra.mxu2 %vm777_vm7, %v3869_v48 }
 0x5fc   :  { %3877 = vmatmul.msk.f32.vlgmr.msrb.gmra.mxu3 %vm777_vm7, %v3869_v48 }
 0x600   :  { %v3238_v1 = vpop.permute.xlu0 %3237 }
 0x601   :  { %v3242_v42 = vsel %vm1476_vm12, %v3236_v36, %v3238_v1  ;;  %vm6377_vm12 = vmmov %vm6373_vm8 }
 0x602   :  { %v3472_v38 = vpop.permute.xlu1 %3471  ;;  %3885 = vmatpush.msk.msra.mxu3 %vm781_vm2, %v3242_v42  ;;  %v3595_v16 = vpop.permute.xlu2 %3594  ;;  %v3482_v57 = vsel %vm6377_vm12, %v3474_v15, %v3476_v31 }
 0x603   :  { %v3481_v22 = vsel %vm6373_vm8, %v3472_v38, %v3474_v15  ;;  %3882 = vmatmul.msk.f32.vlgmr.msra.gmra.mxu1 %vm777_vm7, %v3878_v61  ;;  %3884 = vmatmul.msk.f32.vlgmr.msra.gmra.mxu2 %vm777_vm7, %v3878_v61 }
 0x604   :  { %3886 = vmatmul.msk.f32.vlgmr.msra.gmra.mxu3 %vm777_vm7, %v3878_v61  ;;  %3897 = vmatpush.msk.msra.mxu0 %vm781_vm2, %v3481_v22 }
 0x605   :  { %3894 = vmatpush.msk.msrb.mxu3 %vm781_vm2, %v3363_v34  ;;  %3898 = vmatmul.msk.f32.vlgmr.msra.gmra.mxu0 %vm777_vm7, %v3896_v51 }
 0x608   :  { %v3355_v52 = vpop.permute.xlu0 %3354 }
 0x609   :  { %v3361_v46 = vsel %vm6375_vm10, %v6139_v8, %v3355_v52  ;;  %v3362_v20 = vsel %vm6376_vm11, %v3355_v52, %v3357_v58 }
 0x60a   :  { %v3597_v27 = vpop.permute.xlu1 %3596  ;;  %3890 = vmatpush.msk.msrb.mxu1 %vm781_vm2, %v3361_v46  ;;  %3892 = vmatpush.msk.msrb.mxu2 %vm781_vm2, %v3362_v20 }
 0x60b   :  { %v3603_v44 = vsel %vm6378_vm13, %v3595_v16, %v3597_v27  ;;  %3891 = vmatmul.msk.f32.vlgmr.msrb.gmra.mxu1 %vm777_vm7, %v3887_v49  ;;  %3893 = vmatmul.msk.f32.vlgmr.msrb.gmra.mxu2 %vm777_vm7, %v3887_v49  ;;  %v3604_v4 = vsel %vm6381_vm0, %v3597_v27, %v3599_v26 }
 0x60c   :  { %3895 = vmatmul.msk.f32.vlgmr.msrb.gmra.mxu3 %vm777_vm7, %v3887_v49  ;;  %3899 = vmatpush.msk.msra.mxu1 %vm781_vm2, %v3482_v57 }
 0x60e   :  { %3908 = vmatpush.msk.msrb.mxu1 %vm781_vm2, %v3603_v44 }
 0x610   :  { %v3478_v56 = vpop.permute.xlu0 %3477 }
 0x611   :  { %v3483_v50 = vsel %vm6379_vm14, %v3476_v31, %v3478_v56  ;;  %v3484_v28 = vsel %vm6380_vm6, %v3478_v56, %v3480_v60 }
 0x612   :  { %3901 = vmatpush.msk.msra.mxu2 %vm781_vm2, %v3483_v50  ;;  %3903 = vmatpush.msk.msra.mxu3 %vm781_vm2, %v3484_v28  ;;  %v2635_v3 = vpop.permute.xlu1 %2634 }
 0x613   :  { %3900 = vmatmul.msk.f32.vlgmr.msra.gmra.mxu1 %vm777_vm7, %v3896_v51  ;;  %3902 = vmatmul.msk.f32.vlgmr.msra.gmra.mxu2 %vm777_vm7, %v3896_v51  ;;  %v2737_v32 = vadd.f32 %v2674_v19, %v2635_v3  ;;  %v2738_v47 = vadd.f32 %v2694_v63, %v2635_v3  ;;  %v2739_v45 = vadd.f32 %v2714_v23, %v2635_v3 }
 0x614   :  { %3904 = vmatmul.msk.f32.vlgmr.msra.gmra.mxu3 %vm777_vm7, %v3896_v51  ;;  %3910 = vmatpush.msk.msrb.mxu2 %vm781_vm2, %v3604_v4  ;;  %v2740_v13 = vadd.f32 %v2734_v0, %v2635_v3 }
 0x618   :  { %v3601_v6 = vpop.permute.xlu0 %3600 }
 0x619   :  { %v3605_v5 = vsel %vm6382_vm3, %v3599_v26, %v3601_v6 }
 0x61a   :  { %3912 = vmatpush.msk.msrb.mxu3 %vm781_vm2, %v3605_v5 }
 0x61b   :  { %3909 = vmatmul.msk.f32.vlgmr.msrb.gmra.mxu1 %vm777_vm7, %v3905_v59  ;;  %3911 = vmatmul.msk.f32.vlgmr.msrb.gmra.mxu2 %vm777_vm7, %v3905_v59 }
 0x61c   :  { %3913 = vmatmul.msk.f32.vlgmr.msrb.gmra.mxu3 %vm777_vm7, %v3905_v59 }
 0x620   :  { %v3593_v18 = vpop.permute.xlu0 %3592 }
 0x621   :  { %v3602_v37 = vsel %vm6383_vm4, %v3593_v18, %v3595_v16 }
 0x622   :  { %3906 = vmatpush.msk.msrb.mxu0 %vm781_vm2, %v3602_v37 }
 0x623   :  { %3907 = vmatmul.msk.f32.vlgmr.msrb.gmra.mxu0 %vm777_vm7, %v3905_v59 }
 0x640   :  { %v2795_v11 = vpop.f32.mrf.mxu0 }
 0x641   :  { %v2858_v54 = vadd.f32 %v2795_v11, %v2737_v32  ;;  %v6384_v11 = vld [vmem:[#allocation6_spill] sm:$0xff] }
 0x642   :  { %v2815_v62 = vpop.f32.mrf.mxu1 }
 0x643   :  { %v2859_v14 = vadd.f32 %v2815_v62, %v2738_v47 }
 0x648   :  { %v2916_v53 = vpop.f32.mrf.mxu0 }
 0x649   :  { %v2979_v43 = vadd.f32 %v2916_v53, %v2858_v54 }
 0x650   :  { %v3037_v9 = vpop.f32.mrf.mxu0 }
 0x651   :  { %v3100_v31 = vadd.f32 %v3037_v9, %v2979_v43 }
 0x652   :  { %v2936_v7 = vpop.f32.mrf.mxu1 }
 0x653   :  { %v2980_v21 = vadd.f32 %v2936_v7, %v2859_v14 }
 0x658   :  { %v3150_v30 = vpop.f32.mrf.mxu0 }
 0x659   :  { %v3213_v51 = vadd.f32 %v3150_v30, %v3100_v31 }
 0x662   :  { %v3271_v40 = vpop.f32.mrf.mxu0 }
 0x663   :  { %v3334_v50 = vadd.f32 %v3271_v40, %v3213_v51 }
 0x666   :  { %v2835_v39 = vpop.f32.mrf.mxu2  ;;  %v2855_v33 = vpop.f32.mrf.mxu3 }
 0x667   :  { %v2860_v60 = vadd.f32 %v2835_v39, %v2739_v45  ;;  %v2861_v26 = vadd.f32 %v2855_v33, %v2740_v13 }
 0x66a   :  { %v3392_v55 = vpop.f32.mrf.mxu0 }
 0x66b   :  { %v3455_v37 = vadd.f32 %v3392_v55, %v3334_v50 }
 0x66e   :  { %v2956_v35 = vpop.f32.mrf.mxu2  ;;  %v2976_v2 = vpop.f32.mrf.mxu3 }
 0x66f   :  { %v2981_v42 = vadd.f32 %v2956_v35, %v2860_v60  ;;  %v2982_v38 = vadd.f32 %v2976_v2, %v2861_v26  ;;  %v4046_v2 = vld.sshfl [vmem:[#allocation1 + $0x8] sm:$0xff pattern:$0x75316420] }
 0x670   :  { %v3057_v48 = vpop.f32.mrf.mxu1 }
 0x671   :  { %v3101_v15 = vadd.f32 %v3057_v48, %v2980_v21 }
 0x676   :  { %v3077_v12 = vpop.f32.mrf.mxu2 }
 0x677   :  { %v3097_v25 = vpop.f32.mrf.mxu3  ;;  %v3102_v34 = vadd.f32 %v3077_v12, %v2981_v42  ;;  %v6385_v12 = vld [vmem:[#allocation5_spill] sm:$0xff] }
 0x678   :  { %v3170_v24 = vpop.f32.mrf.mxu1  ;;  %v3103_v52 = vadd.f32 %v3097_v25, %v2982_v38 }
 0x679   :  { %v3214_v1 = vadd.f32 %v3170_v24, %v3101_v15  ;;  %v4047_v24 = vld.sshfl [vmem:[#allocation1] sm:$0xff pattern:$0x75316420] }
 0x67e   :  { %v3190_v8 = vpop.f32.mrf.mxu2 }
 0x67f   :  { %v3210_v36 = vpop.f32.mrf.mxu3  ;;  %v3215_v27 = vadd.f32 %v3190_v8, %v3102_v34 }
 0x680   :  { %v3291_v61 = vpop.f32.mrf.mxu1  ;;  %v3216_v57 = vadd.f32 %v3210_v36, %v3103_v52 }
 0x681   :  { %v3335_v22 = vadd.f32 %v3291_v61, %v3214_v1 }
 0x682   :  { %v3513_v44 = vpop.f32.mrf.mxu0 }
 0x683   :  { %v3576_v0 = vadd.f32 %v3513_v44, %v3455_v37 }
 0x686   :  { %v3311_v41 = vpop.f32.mrf.mxu2 }
 0x687   :  { %v3331_v49 = vpop.f32.mrf.mxu3  ;;  %v3336_v4 = vadd.f32 %v3311_v41, %v3215_v27 }
 0x688   :  { %v3412_v10 = vpop.f32.mrf.mxu1  ;;  %v3337_v6 = vadd.f32 %v3331_v49, %v3216_v57 }
 0x689   :  { %v3456_v20 = vadd.f32 %v3412_v10, %v3335_v22 }
 0x68e   :  { %v3432_v17 = vpop.f32.mrf.mxu2 }
 0x68f   :  { %v3452_v58 = vpop.f32.mrf.mxu3  ;;  %v3457_v5 = vadd.f32 %v3432_v17, %v3336_v4 }
 0x690   :  { %v3533_v29 = vpop.f32.mrf.mxu1  ;;  %v3458_v18 = vadd.f32 %v3452_v58, %v3337_v6 }
 0x691   :  { %v3577_v28 = vadd.f32 %v3533_v29, %v3456_v20 }
 0x696   :  { %v3553_v46 = vpop.f32.mrf.mxu2 }
 0x697   :  { %v3573_v16 = vpop.f32.mrf.mxu3  ;;  %v3578_v19 = vadd.f32 %v3553_v46, %v3457_v5 }
 0x698   :  { %v3654_v56 = vpop.f32.mrf.mxu1  ;;  %v3579_v63 = vadd.f32 %v3573_v16, %v3458_v18 }
 0x699   :  { %v3698_v59 = vadd.f32 %v3654_v56, %v3577_v28 }
 0x69b   :  { %v3702_v62 = vadd.f32 %v3698_v59, %v6384_v11 }
 0x69d   :  { %v3707_v9 = vrot.slane %v3702_v62, 4 }
 0x69e   :  { %v3674_v23 = vpop.f32.mrf.mxu2 }
 0x69f   :  { %v3694_v39 = vpop.f32.mrf.mxu3  ;;  %v3699_v33 = vadd.f32 %v3674_v23, %v3578_v19 }
 0x6a0   :  { %v3700_v53 = vadd.f32 %v3694_v39, %v3579_v63  ;;  %v3634_v7 = vpop.f32.mrf.mxu0 }
 0x6a1   :  { %v3697_v35 = vadd.f32 %v3634_v7, %v3576_v0  ;;  %v3703_v30 = vadd.f32 %v4047_v24, %v3699_v33 }
 0x6a2   :  { %v3704_v48 = vadd.f32 %v4046_v2, %v3700_v53 }
 0x6a3   :  { %v3701_v25 = vadd.f32 %v3697_v35, %v6385_v12 }
 0x6a4   :  { %v3713_v8 = vrot.slane %v3704_v48, 4 }
 0x6a5   :  { %v3708_v36 = vsel %vm781_vm2, %v3701_v25, %v3707_v9 }
 0x6a6   :  { %v3714_v61 = vsel %vm781_vm2, %v3703_v30, %v3713_v8  ;;  %3710 = vst [vmem:[%s6256_s12] sm:$0xff] %v3708_v36 }
 0x6a7   :  { %3914 = vst [vmem:[%s6256_s12 + $0x8] sm:$0xff] %v3714_v61 }

</bundles_post_ra>
